<compile_context>
chip_gen: v7x
topology: tpu7x:2x2x1
jax: 0.10.0
libtpu: 0.0.40
codegen_flags: <defaults>
</compile_context>

<pallas_src>
import functools

import numpy as np
import jax
import jax.numpy as jnp
from jax.experimental import pallas as pl
from jax.experimental.pallas import tpu as pltpu

BN_EPS = 1e-5
COMPUTE_DTYPE = jnp.bfloat16             # MXU operand / inter-layer dtype
MAX_TM, MAX_TN, MAX_TK = 512, 256, 512   # tile caps (TN=256 fills 2x256 MXU)
VMEM_LIMIT_BYTES = 32 * 1024 * 1024      # safe on v5e/v6e (128 MiB) and v7x (64 MiB)


def _round_up(x, m):
    return (x + m - 1) // m * m


def _pick_tile(dim, cap):
    """Largest 128-multiple tile <= cap that covers `dim` without waste."""
    return min(cap, _round_up(dim, 128))


# --------------------------------------------------------------------------
# Fused Pallas kernel: out = act((patches @ W_scaled) + bias [+ residual])
#   patches/W/residual are bf16 (MXU), accumulator + epilogue are f32.
# --------------------------------------------------------------------------
def _fused_matmul_kernel(*refs, activation, add_residual):
    if add_residual:
        p_ref, w_ref, b_ref, r_ref, o_ref, acc_ref = refs
    else:
        p_ref, w_ref, b_ref, o_ref, acc_ref = refs
        r_ref = None

    k = pl.program_id(2)

    @pl.when(k == 0)
    def _():
        acc_ref[...] = jnp.zeros_like(acc_ref)

    acc_ref[...] += jnp.dot(p_ref[...], w_ref[...],
                            preferred_element_type=jnp.float32)

    @pl.when(k == pl.num_programs(2) - 1)
    def _():
        y = acc_ref[...] + b_ref[...].astype(jnp.float32)
        if add_residual:
            y = y + r_ref[...].astype(jnp.float32)
        if activation == "relu":
            y = jnp.maximum(y, 0.0)
        elif activation == "tanh":
            y = jnp.tanh(y)
        o_ref[...] = y.astype(o_ref.dtype)


def fused_matmul(patches, w_mat, bias, residual=None, activation="none",
                 out_dtype=COMPUTE_DTYPE):
    """act((patches @ w_mat) + bias [+ residual]) via one pallas_call.

    `w_mat` must already carry any per-output-channel (BN) scale folded in.
    """
    M, K = patches.shape
    K2, Cout = w_mat.shape
    assert K == K2

    TM = _pick_tile(M, MAX_TM)
    TN = _pick_tile(Cout, MAX_TN)
    TK = _pick_tile(K, MAX_TK)
    Mp, Kp, Np = _round_up(M, TM), _round_up(K, TK), _round_up(Cout, TN)

    p = jnp.pad(patches.astype(COMPUTE_DTYPE), ((0, Mp - M), (0, Kp - K)))
    w = jnp.pad(w_mat.astype(COMPUTE_DTYPE), ((0, Kp - K), (0, Np - Cout)))
    b = jnp.pad(bias.astype(jnp.float32), (0, Np - Cout)).reshape(1, Np)

    inputs = [p, w, b]
    in_specs = [
        pl.BlockSpec((TM, TK), lambda i, j, k: (i, k)),
        pl.BlockSpec((TK, TN), lambda i, j, k: (k, j)),
        pl.BlockSpec((1, TN), lambda i, j, k: (0, j)),
    ]
    add_residual = residual is not None
    if add_residual:
        r = jnp.pad(residual.astype(COMPUTE_DTYPE),
                    ((0, Mp - M), (0, Np - Cout)))
        inputs.append(r)
        in_specs.append(pl.BlockSpec((TM, TN), lambda i, j, k: (i, j)))

    kernel = functools.partial(_fused_matmul_kernel,
                               activation=activation,
                               add_residual=add_residual)
    out = pl.pallas_call(
        kernel,
        out_shape=jax.ShapeDtypeStruct((Mp, Np), out_dtype),
        grid_spec=pltpu.PrefetchScalarGridSpec(
            num_scalar_prefetch=0,
            grid=(Mp // TM, Np // TN, Kp // TK),
            in_specs=in_specs,
            out_specs=pl.BlockSpec((TM, TN), lambda i, j, k: (i, j)),
            scratch_shapes=[pltpu.VMEM((TM, TN), jnp.float32)],
        ),
        compiler_params=pltpu.CompilerParams(
            dimension_semantics=("parallel", "parallel", "arbitrary"),
            vmem_limit_bytes=VMEM_LIMIT_BYTES),
    )(*inputs)
    return out[:M, :Cout]


def _matmul_act(patches, w_mat, bias, residual=None, activation="none",
                out_dtype=COMPUTE_DTYPE, use_pallas=True):
    """Dispatch: Pallas hot path or a same-recipe pure-jnp reference."""
    if use_pallas:
        return fused_matmul(patches, w_mat, bias, residual=residual,
                            activation=activation, out_dtype=out_dtype)
    out = jnp.dot(patches.astype(COMPUTE_DTYPE), w_mat.astype(COMPUTE_DTYPE),
                  preferred_element_type=jnp.float32)
    out = out + bias[None, :].astype(jnp.float32)
    if residual is not None:
        out = out + residual.astype(COMPUTE_DTYPE).astype(jnp.float32)
    if activation == "relu":
        out = jnp.maximum(out, 0.0)
    elif activation == "tanh":
        out = jnp.tanh(out)
    return out.astype(out_dtype)


# --------------------------------------------------------------------------
# Convolution glue (padding / im2col / weight reshaping) in plain JAX (bf16)
# --------------------------------------------------------------------------
def _im2col(x, kh, kw, stride):
    """x: (N, Hp, Wp, C) already padded -> (N*Ho*Wo, kh*kw*C), tap-major rows."""
    N, Hp, Wp, C = x.shape
    Ho = (Hp - kh) // stride + 1
    Wo = (Wp - kw) // stride + 1
    cols = []
    for dy in range(kh):
        for dx in range(kw):
            cols.append(x[:, dy:dy + Ho * stride:stride,
                          dx:dx + Wo * stride:stride, :])
    patches = jnp.concatenate(cols, axis=-1)        # (N, Ho, Wo, kh*kw*C)
    return patches.reshape(N * Ho * Wo, kh * kw * C), Ho, Wo


def _conv2d(x_nhwc, w_oihw, scale, bias, stride=1, residual=None,
            activation="none", out_dtype=COMPUTE_DTYPE, use_pallas=True):
    """VALID conv (x already padded) with BN scale folded into the weights,
    fused bias + activation (+ residual)."""
    N = x_nhwc.shape[0]
    Cout, Cin, kh, kw = w_oihw.shape
    patches, Ho, Wo = _im2col(x_nhwc.astype(COMPUTE_DTYPE), kh, kw, stride)
    w_mat = jnp.transpose(w_oihw, (2, 3, 1, 0)).reshape(kh * kw * Cin, Cout)
    w_mat = w_mat * scale[None, :]                    # fold BN scale
    res_flat = (residual.reshape(N * Ho * Wo, Cout)
                if residual is not None else None)
    out = _matmul_act(patches, w_mat, bias, residual=res_flat,
                      activation=activation, out_dtype=out_dtype,
                      use_pallas=use_pallas)
    return out.reshape(N, Ho, Wo, Cout)


def _conv_transpose2x(x_nhwc, w_iohw, scale, bias, activation="relu",
                      out_dtype=COMPUTE_DTYPE, use_pallas=True):
    """ConvTranspose2d(k=3, s=2, p=1, output_padding=1) + folded-BN affine +
    activation as ONE fused matmul (sub-pixel phase decomposition).

    out[2i+r, 2j+c, o] = sum_{a,b in {0,1}} x[i+a, j+b, :] . Wt[:, o, ky, kx]
      with ky = 1 for (r=0,a=0); ky = 2 for (r=1,a=0); ky = 0 for (r=1,a=1);
      no contribution for (r=0,a=1); same table for (c,b)->kx.
    Realised as a 2x2 stride-1 conv with a (4*Cin -> 4*Cout) weight matrix
    (missing taps zero) — no zero-stuffed dilated im2col.
    """
    N, H, W, Cin = x_nhwc.shape
    Cout = w_iohw.shape[1]
    tap_idx = {(0, 0): 1, (0, 1): None, (1, 0): 2, (1, 1): 0}   # (phase, tap)->k

    def tap_block(a, b):                      # rows for tap (a, b): (Cin, 4*Cout)
        cols = []
        for r in range(2):
            for c in range(2):
                ky, kx = tap_idx[(r, a)], tap_idx[(c, b)]
                if ky is None or kx is None:
                    cols.append(jnp.zeros((Cin, Cout), jnp.float32))
                else:
                    cols.append(w_iohw[:, :, ky, kx].astype(jnp.float32))
        return jnp.concatenate(cols, axis=1)

    w_big = jnp.concatenate([tap_block(a, b)
                             for a in range(2) for b in range(2)], axis=0)
    scale_big = jnp.tile(scale, 4)            # same per-channel affine each phase
    bias_big = jnp.tile(bias, 4)
    w_big = w_big * scale_big[None, :]

    xp = jnp.pad(x_nhwc, ((0, 0), (0, 1), (0, 1), (0, 0))).astype(COMPUTE_DTYPE)
    patches, Ho, Wo = _im2col(xp, 2, 2, 1)    # Ho == H, Wo == W
    out = _matmul_act(patches, w_big, bias_big, activation=activation,
                      out_dtype=out_dtype, use_pallas=use_pallas)
    out = out.reshape(N, H, W, 2, 2, Cout)                       # (n,i,j,r,c,o)
    out = jnp.transpose(out, (0, 1, 3, 2, 4, 5)).reshape(N, 2 * H, 2 * W, Cout)
    return out


def _fold_bn(conv_bias, bn):
    """Fold eval-mode BatchNorm into per-output-channel (scale, bias)."""
    if bn is None:
        return jnp.ones_like(conv_bias), conv_bias
    scale = bn["gamma"] / jnp.sqrt(bn["var"] + BN_EPS)
    bias = bn["beta"] + (conv_bias - bn["mean"]) * scale
    return scale, bias


# --------------------------------------------------------------------------
# Parameter init (deterministic, matches GlobalGenerator.__init__ shapes)
# --------------------------------------------------------------------------
def init_params(key, input_nc, output_nc, ngf, n_downsampling, n_blocks):
    keys = [key]

    def nk():
        keys[0], sub = jax.random.split(keys[0])
        return sub

    def bn_params(c):
        return {
            "gamma": 1.0 + 0.05 * jax.random.normal(nk(), (c,), jnp.float32),
            "beta": 0.05 * jax.random.normal(nk(), (c,), jnp.float32),
            "mean": jnp.zeros((c,), jnp.float32),
            "var": jnp.ones((c,), jnp.float32),
        }

    def conv_layer(cin, cout, k, with_bn=True, transposed=False):
        wshape = (cin, cout, k, k) if transposed else (cout, cin, k, k)
        return {
            "w": 0.05 * jax.random.normal(nk(), wshape, jnp.float32),
            "b": 0.05 * jax.random.normal(nk(), (cout,), jnp.float32),
            "bn": bn_params(cout) if with_bn else None,
        }

    params = {
        "head": conv_layer(input_nc, ngf, 7),
        "down": [conv_layer(ngf * 2 ** i, ngf * 2 ** (i + 1), 3)
                 for i in range(n_downsampling)],
        "blocks": [],
        "up": [],
        "tail": conv_layer(ngf, output_nc, 7, with_bn=False),
    }
    dim = ngf * 2 ** n_downsampling
    for _ in range(n_blocks):
        params["blocks"].append({"conv1": conv_layer(dim, dim, 3),
                                 "conv2": conv_layer(dim, dim, 3)})
    for i in range(n_downsampling):
        mult = 2 ** (n_downsampling - i)
        params["up"].append(conv_layer(ngf * mult, (ngf * mult) // 2, 3,
                                       transposed=True))
    return params


# --------------------------------------------------------------------------
# GlobalGenerator forward (NCHW in / NCHW out, like the PyTorch module)
# --------------------------------------------------------------------------
def global_generator_forward(params, x_nchw, use_pallas=True):
    x = jnp.transpose(x_nchw, (0, 2, 3, 1)).astype(COMPUTE_DTYPE)   # -> NHWC

    # ReflectionPad2d(3) + Conv 7x7 + BN + ReLU
    p = params["head"]
    scale, bias = _fold_bn(p["b"], p["bn"])
    xp = jnp.pad(x, ((0, 0), (3, 3), (3, 3), (0, 0)), mode="reflect")
    x = _conv2d(xp, p["w"], scale, bias, stride=1,
                activation="relu", use_pallas=use_pallas)

    # Downsampling: Conv 3x3 stride 2 pad 1 (zeros) + BN + ReLU
    for p in params["down"]:
        scale, bias = _fold_bn(p["b"], p["bn"])
        xp = jnp.pad(x, ((0, 0), (1, 1), (1, 1), (0, 0)))
        x = _conv2d(xp, p["w"], scale, bias, stride=2,
                    activation="relu", use_pallas=use_pallas)

    # ResnetBlocks (padding_type='reflect'):
    #   x + [ReflPad1, Conv3x3, BN, ReLU, ReflPad1, Conv3x3, BN](x)
    for blk in params["blocks"]:
        p1, p2 = blk["conv1"], blk["conv2"]
        s1, b1 = _fold_bn(p1["b"], p1["bn"])
        s2, b2 = _fold_bn(p2["b"], p2["bn"])
        h = jnp.pad(x, ((0, 0), (1, 1), (1, 1), (0, 0)), mode="reflect")
        h = _conv2d(h, p1["w"], s1, b1, stride=1,
                    activation="relu", use_pallas=use_pallas)
        h = jnp.pad(h, ((0, 0), (1, 1), (1, 1), (0, 0)), mode="reflect")
        x = _conv2d(h, p2["w"], s2, b2, stride=1, residual=x,
                    activation="none", use_pallas=use_pallas)

    # Upsampling: ConvTranspose 3x3 s2 p1 op1 + BN + ReLU (single fused matmul)
    for p in params["up"]:
        scale, bias = _fold_bn(p["b"], p["bn"])
        x = _conv_transpose2x(x, p["w"], scale, bias, activation="relu",
                              use_pallas=use_pallas)

    # ReflectionPad2d(3) + Conv 7x7 + Tanh  (final output in f32)
    p = params["tail"]
    xp = jnp.pad(x, ((0, 0), (3, 3), (3, 3), (0, 0)), mode="reflect")
    x = _conv2d(xp, p["w"], jnp.ones_like(p["b"]), p["b"], stride=1,
                activation="tanh", out_dtype=jnp.float32,
                use_pallas=use_pallas)

    return jnp.transpose(x, (0, 3, 1, 2))   # NHWC -> NCHW


# --------------------------------------------------------------------------
if __name__ == "__main__":
    key = jax.random.PRNGKey(0)
    pkey, xkey = jax.random.split(key)

    # Small-but-consistent config: input_nc=4, output_nc=3, ngf=8,
    # n_downsampling=2, n_blocks=2, input (2, 4, 16, 16).
    input_nc, output_nc, ngf, n_down, n_blocks = 4, 3, 8, 2, 2
    params = init_params(pkey, input_nc, output_nc, ngf, n_down, n_blocks)
    x = jax.random.normal(xkey, (2, input_nc, 16, 16), jnp.float32)

    fwd_pallas = jax.jit(functools.partial(global_generator_forward,
                                           use_pallas=True))
    out = jax.block_until_ready(fwd_pallas(params, x))
    assert out.shape == (2, output_nc, 16, 16), out.shape
    assert np.all(np.isfinite(np.asarray(out)))

    # Sanity check the Pallas hot path against a pure-jnp reference that uses
    # the same bf16-operand / f32-accumulate recipe.
    fwd_ref = jax.jit(functools.partial(global_generator_forward,
                                        use_pallas=False))
    ref = jax.block_until_ready(fwd_ref(params, x))
    np.testing.assert_allclose(np.asarray(out), np.asarray(ref),
                               rtol=2e-2, atol=2e-2)

    print("KERNEL_OK")
</pallas_src>

<mosaic_0001>
module attributes {stable_mosaic.version = 11 : i64} {
  func.func @_fused_matmul_kernel(%arg0: i32, %arg1: i32, %arg2: i32, %arg3: memref<512x256xbf16, #tpu.memory_space<vmem>>, %arg4: memref<256x128xbf16, #tpu.memory_space<vmem>>, %arg5: memref<1x128xf32, #tpu.memory_space<vmem>>, %arg6: memref<512x128xbf16, #tpu.memory_space<vmem>>, %arg7: memref<512x128xf32, #tpu.memory_space<vmem>>) attributes {dimension_semantics = [#tpu.dimension_semantics<parallel>, #tpu.dimension_semantics<parallel>, #tpu.dimension_semantics<arbitrary>], iteration_bounds = array<i64: 1, 1, 1>, scalar_prefetch = 0 : i64, scratch_operands = 1 : i64, tpu.core_type = #tpu.core_type<tc>, window_params = [{transform_indices = @transform_0, window_bounds = array<i64: 512, 256>}, {transform_indices = @transform_1, window_bounds = array<i64: 256, 128>}, {transform_indices = @transform_2, window_bounds = array<i64: 1, 128>}, {transform_indices = @transform_3, window_bounds = array<i64: 512, 128>}]} {
    %c0_i32 = arith.constant 0 : i32
    %0 = arith.cmpi eq, %arg2, %c0_i32 : i32
    %1 = arith.extui %0 : i1 to i32
    %c0_i32_0 = arith.constant 0 : i32
    %2 = arith.cmpi ne, %1, %c0_i32_0 : i32
    scf.if %2 {
      %cst_10 = arith.constant 0.000000e+00 : f32
      %12 = vector.broadcast %cst_10 : f32 to vector<512x128xf32>
      %c0_11 = arith.constant 0 : index
      %c0_12 = arith.constant 0 : index
      %13 = vector.load %arg7[%c0_11, %c0_12] : memref<512x128xf32, #tpu.memory_space<vmem>>, vector<512x128xf32>
      tpu.vector_store %arg7[%c0_11, %c0_12], %12 {strides = array<i32>} : memref<512x128xf32, #tpu.memory_space<vmem>>, vector<512x128xf32>,
    } else {
    }
    %c0 = arith.constant 0 : index
    %c0_1 = arith.constant 0 : index
    %3 = vector.load %arg7[%c0, %c0_1] : memref<512x128xf32, #tpu.memory_space<vmem>>, vector<512x128xf32>
    %c0_2 = arith.constant 0 : index
    %c0_3 = arith.constant 0 : index
    %4 = vector.load %arg3[%c0_2, %c0_3] : memref<512x256xbf16, #tpu.memory_space<vmem>>, vector<512x256xbf16>
    %c0_4 = arith.constant 0 : index
    %c0_5 = arith.constant 0 : index
    %5 = vector.load %arg4[%c0_4, %c0_5] : memref<256x128xbf16, #tpu.memory_space<vmem>>, vector<256x128xbf16>
    %cst = arith.constant dense<0.000000e+00> : vector<512x128xf32>
    %6 = tpu.matmul %4, %5, %cst {dimension_numbers = #tpu.dot_dimension_numbers<[1], [0], [0], [1], [0, 0, 1, 1], [], []>} : vector<512x256xbf16>, vector<256x128xbf16>, vector<512x128xf32> -> vector<512x128xf32>
    %7 = arith.addf %3, %6 : vector<512x128xf32>
    %c0_6 = arith.constant 0 : index
    %c0_7 = arith.constant 0 : index
    %8 = vector.load %arg7[%c0_6, %c0_7] : memref<512x128xf32, #tpu.memory_space<vmem>>, vector<512x128xf32>
    tpu.vector_store %arg7[%c0_6, %c0_7], %7 {strides = array<i32>} : memref<512x128xf32, #tpu.memory_space<vmem>>, vector<512x128xf32>,
    %c0_i32_8 = arith.constant 0 : i32
    %9 = arith.cmpi eq, %arg2, %c0_i32_8 : i32
    %10 = arith.extui %9 : i1 to i32
    %c0_i32_9 = arith.constant 0 : i32
    %11 = arith.cmpi ne, %10, %c0_i32_9 : i32
    scf.if %11 {
      %c0_10 = arith.constant 0 : index
      %c0_11 = arith.constant 0 : index
      %12 = vector.load %arg7[%c0_10, %c0_11] : memref<512x128xf32, #tpu.memory_space<vmem>>, vector<512x128xf32>
      %c0_12 = arith.constant 0 : index
      %c0_13 = arith.constant 0 : index
      %13 = vector.load %arg5[%c0_12, %c0_13] : memref<1x128xf32, #tpu.memory_space<vmem>>, vector<1x128xf32>
      %14 = vector.broadcast %13 : vector<1x128xf32> to vector<512x128xf32>
      %15 = arith.addf %12, %14 : vector<512x128xf32>
      %cst_14 = arith.constant 0.000000e+00 : f32
      %16 = vector.broadcast %cst_14 : f32 to vector<512x128xf32>
      %17 = arith.maximumf %15, %16 : vector<512x128xf32>
      %18 = arith.truncf %17 : vector<512x128xf32> to vector<512x128xbf16>
      %c0_15 = arith.constant 0 : index
      %c0_16 = arith.constant 0 : index
      %19 = vector.load %arg6[%c0_15, %c0_16] : memref<512x128xbf16, #tpu.memory_space<vmem>>, vector<512x128xbf16>
      tpu.vector_store %arg6[%c0_15, %c0_16], %18 {strides = array<i32>} : memref<512x128xbf16, #tpu.memory_space<vmem>>, vector<512x128xbf16>,
    } else {
    }
    return
  }
  func.func @transform_0(%arg0: i32, %arg1: i32, %arg2: i32) -> (i32, i32) {
    %c0_i32 = arith.constant 0 : i32
    return %arg0, %arg2 : i32, i32
  }
  func.func @transform_1(%arg0: i32, %arg1: i32, %arg2: i32) -> (i32, i32) {
    %c0_i32 = arith.constant 0 : i32
    return %arg2, %arg1 : i32, i32
  }
  func.func @transform_2(%arg0: i32, %arg1: i32, %arg2: i32) -> (i32, i32) {
    %c0_i32 = arith.constant 0 : i32
    %c0_i32_0 = arith.constant 0 : i32
    return %c0_i32, %arg1 : i32, i32
  }
  func.func @transform_3(%arg0: i32, %arg1: i32, %arg2: i32) -> (i32, i32) {
    %c0_i32 = arith.constant 0 : i32
    return %arg0, %arg1 : i32, i32
  }
}

module attributes {stable_mosaic.version = 11 : i64} {
  func.func @_fused_matmul_kernel(%arg0: i32, %arg1: i32, %arg2: i32, %arg3: memref<128x128xbf16, #tpu.memory_space<vmem>>, %arg4: memref<128x128xbf16, #tpu.memory_space<vmem>>, %arg5: memref<1x128xf32, #tpu.memory_space<vmem>>, %arg6: memref<128x128xbf16, #tpu.memory_space<vmem>>, %arg7: memref<128x128xf32, #tpu.memory_space<vmem>>) attributes {dimension_semantics = [#tpu.dimension_semantics<parallel>, #tpu.dimension_semantics<parallel>, #tpu.dimension_semantics<arbitrary>], iteration_bounds = array<i64: 1, 1, 1>, scalar_prefetch = 0 : i64, scratch_operands = 1 : i64, tpu.core_type = #tpu.core_type<tc>, window_params = [{transform_indices = @transform_0, window_bounds = array<i64: 128, 128>}, {transform_indices = @transform_1, window_bounds = array<i64: 128, 128>}, {transform_indices = @transform_2, window_bounds = array<i64: 1, 128>}, {transform_indices = @transform_3, window_bounds = array<i64: 128, 128>}]} {
    %c0_i32 = arith.constant 0 : i32
    %0 = arith.cmpi eq, %arg2, %c0_i32 : i32
    %1 = arith.extui %0 : i1 to i32
    %c0_i32_0 = arith.constant 0 : i32
    %2 = arith.cmpi ne, %1, %c0_i32_0 : i32
    scf.if %2 {
      %cst_10 = arith.constant 0.000000e+00 : f32
      %12 = vector.broadcast %cst_10 : f32 to vector<128x128xf32>
      %c0_11 = arith.constant 0 : index
      %c0_12 = arith.constant 0 : index
      %13 = vector.load %arg7[%c0_11, %c0_12] : memref<128x128xf32, #tpu.memory_space<vmem>>, vector<128x128xf32>
      tpu.vector_store %arg7[%c0_11, %c0_12], %12 {strides = array<i32>} : memref<128x128xf32, #tpu.memory_space<vmem>>, vector<128x128xf32>,
    } else {
    }
    %c0 = arith.constant 0 : index
    %c0_1 = arith.constant 0 : index
    %3 = vector.load %arg7[%c0, %c0_1] : memref<128x128xf32, #tpu.memory_space<vmem>>, vector<128x128xf32>
    %c0_2 = arith.constant 0 : index
    %c0_3 = arith.constant 0 : index
    %4 = vector.load %arg3[%c0_2, %c0_3] : memref<128x128xbf16, #tpu.memory_space<vmem>>, vector<128x128xbf16>
    %c0_4 = arith.constant 0 : index
    %c0_5 = arith.constant 0 : index
    %5 = vector.load %arg4[%c0_4, %c0_5] : memref<128x128xbf16, #tpu.memory_space<vmem>>, vector<128x128xbf16>
    %cst = arith.constant dense<0.000000e+00> : vector<128x128xf32>
    %6 = tpu.matmul %4, %5, %cst {dimension_numbers = #tpu.dot_dimension_numbers<[1], [0], [0], [1], [0, 0, 1, 1], [], []>} : vector<128x128xbf16>, vector<128x128xbf16>, vector<128x128xf32> -> vector<128x128xf32>
    %7 = arith.addf %3, %6 : vector<128x128xf32>
    %c0_6 = arith.constant 0 : index
    %c0_7 = arith.constant 0 : index
    %8 = vector.load %arg7[%c0_6, %c0_7] : memref<128x128xf32, #tpu.memory_space<vmem>>, vector<128x128xf32>
    tpu.vector_store %arg7[%c0_6, %c0_7], %7 {strides = array<i32>} : memref<128x128xf32, #tpu.memory_space<vmem>>, vector<128x128xf32>,
    %c0_i32_8 = arith.constant 0 : i32
    %9 = arith.cmpi eq, %arg2, %c0_i32_8 : i32
    %10 = arith.extui %9 : i1 to i32
    %c0_i32_9 = arith.constant 0 : i32
    %11 = arith.cmpi ne, %10, %c0_i32_9 : i32
    scf.if %11 {
      %c0_10 = arith.constant 0 : index
      %c0_11 = arith.constant 0 : index
      %12 = vector.load %arg7[%c0_10, %c0_11] : memref<128x128xf32, #tpu.memory_space<vmem>>, vector<128x128xf32>
      %c0_12 = arith.constant 0 : index
      %c0_13 = arith.constant 0 : index
      %13 = vector.load %arg5[%c0_12, %c0_13] : memref<1x128xf32, #tpu.memory_space<vmem>>, vector<1x128xf32>
      %14 = vector.broadcast %13 : vector<1x128xf32> to vector<128x128xf32>
      %15 = arith.addf %12, %14 : vector<128x128xf32>
      %cst_14 = arith.constant 0.000000e+00 : f32
      %16 = vector.broadcast %cst_14 : f32 to vector<128x128xf32>
      %17 = arith.maximumf %15, %16 : vector<128x128xf32>
      %18 = arith.truncf %17 : vector<128x128xf32> to vector<128x128xbf16>
      %c0_15 = arith.constant 0 : index
      %c0_16 = arith.constant 0 : index
      %19 = vector.load %arg6[%c0_15, %c0_16] : memref<128x128xbf16, #tpu.memory_space<vmem>>, vector<128x128xbf16>
      tpu.vector_store %arg6[%c0_15, %c0_16], %18 {strides = array<i32>} : memref<128x128xbf16, #tpu.memory_space<vmem>>, vector<128x128xbf16>,
    } else {
    }
    return
  }
  func.func @transform_0(%arg0: i32, %arg1: i32, %arg2: i32) -> (i32, i32) {
    %c0_i32 = arith.constant 0 : i32
    return %arg0, %arg2 : i32, i32
  }
  func.func @transform_1(%arg0: i32, %arg1: i32, %arg2: i32) -> (i32, i32) {
    %c0_i32 = arith.constant 0 : i32
    return %arg2, %arg1 : i32, i32
  }
  func.func @transform_2(%arg0: i32, %arg1: i32, %arg2: i32) -> (i32, i32) {
    %c0_i32 = arith.constant 0 : i32
    %c0_i32_0 = arith.constant 0 : i32
    return %c0_i32, %arg1 : i32, i32
  }
  func.func @transform_3(%arg0: i32, %arg1: i32, %arg2: i32) -> (i32, i32) {
    %c0_i32 = arith.constant 0 : i32
    return %arg0, %arg1 : i32, i32
  }
}

module attributes {stable_mosaic.version = 11 : i64} {
  func.func @_fused_matmul_kernel(%arg0: i32, %arg1: i32, %arg2: i32, %arg3: memref<128x256xbf16, #tpu.memory_space<vmem>>, %arg4: memref<256x128xbf16, #tpu.memory_space<vmem>>, %arg5: memref<1x128xf32, #tpu.memory_space<vmem>>, %arg6: memref<128x128xbf16, #tpu.memory_space<vmem>>, %arg7: memref<128x128xf32, #tpu.memory_space<vmem>>) attributes {dimension_semantics = [#tpu.dimension_semantics<parallel>, #tpu.dimension_semantics<parallel>, #tpu.dimension_semantics<arbitrary>], iteration_bounds = array<i64: 1, 1, 1>, scalar_prefetch = 0 : i64, scratch_operands = 1 : i64, tpu.core_type = #tpu.core_type<tc>, window_params = [{transform_indices = @transform_0, window_bounds = array<i64: 128, 256>}, {transform_indices = @transform_1, window_bounds = array<i64: 256, 128>}, {transform_indices = @transform_2, window_bounds = array<i64: 1, 128>}, {transform_indices = @transform_3, window_bounds = array<i64: 128, 128>}]} {
    %c0_i32 = arith.constant 0 : i32
    %0 = arith.cmpi eq, %arg2, %c0_i32 : i32
    %1 = arith.extui %0 : i1 to i32
    %c0_i32_0 = arith.constant 0 : i32
    %2 = arith.cmpi ne, %1, %c0_i32_0 : i32
    scf.if %2 {
      %cst_10 = arith.constant 0.000000e+00 : f32
      %12 = vector.broadcast %cst_10 : f32 to vector<128x128xf32>
      %c0_11 = arith.constant 0 : index
      %c0_12 = arith.constant 0 : index
      %13 = vector.load %arg7[%c0_11, %c0_12] : memref<128x128xf32, #tpu.memory_space<vmem>>, vector<128x128xf32>
      tpu.vector_store %arg7[%c0_11, %c0_12], %12 {strides = array<i32>} : memref<128x128xf32, #tpu.memory_space<vmem>>, vector<128x128xf32>,
    } else {
    }
    %c0 = arith.constant 0 : index
    %c0_1 = arith.constant 0 : index
    %3 = vector.load %arg7[%c0, %c0_1] : memref<128x128xf32, #tpu.memory_space<vmem>>, vector<128x128xf32>
    %c0_2 = arith.constant 0 : index
    %c0_3 = arith.constant 0 : index
    %4 = vector.load %arg3[%c0_2, %c0_3] : memref<128x256xbf16, #tpu.memory_space<vmem>>, vector<128x256xbf16>
    %c0_4 = arith.constant 0 : index
    %c0_5 = arith.constant 0 : index
    %5 = vector.load %arg4[%c0_4, %c0_5] : memref<256x128xbf16, #tpu.memory_space<vmem>>, vector<256x128xbf16>
    %cst = arith.constant dense<0.000000e+00> : vector<128x128xf32>
    %6 = tpu.matmul %4, %5, %cst {dimension_numbers = #tpu.dot_dimension_numbers<[1], [0], [0], [1], [0, 0, 1, 1], [], []>} : vector<128x256xbf16>, vector<256x128xbf16>, vector<128x128xf32> -> vector<128x128xf32>
    %7 = arith.addf %3, %6 : vector<128x128xf32>
    %c0_6 = arith.constant 0 : index
    %c0_7 = arith.constant 0 : index
    %8 = vector.load %arg7[%c0_6, %c0_7] : memref<128x128xf32, #tpu.memory_space<vmem>>, vector<128x128xf32>
    tpu.vector_store %arg7[%c0_6, %c0_7], %7 {strides = array<i32>} : memref<128x128xf32, #tpu.memory_space<vmem>>, vector<128x128xf32>,
    %c0_i32_8 = arith.constant 0 : i32
    %9 = arith.cmpi eq, %arg2, %c0_i32_8 : i32
    %10 = arith.extui %9 : i1 to i32
    %c0_i32_9 = arith.constant 0 : i32
    %11 = arith.cmpi ne, %10, %c0_i32_9 : i32
    scf.if %11 {
      %c0_10 = arith.constant 0 : index
      %c0_11 = arith.constant 0 : index
      %12 = vector.load %arg7[%c0_10, %c0_11] : memref<128x128xf32, #tpu.memory_space<vmem>>, vector<128x128xf32>
      %c0_12 = arith.constant 0 : index
      %c0_13 = arith.constant 0 : index
      %13 = vector.load %arg5[%c0_12, %c0_13] : memref<1x128xf32, #tpu.memory_space<vmem>>, vector<1x128xf32>
      %14 = vector.broadcast %13 : vector<1x128xf32> to vector<128x128xf32>
      %15 = arith.addf %12, %14 : vector<128x128xf32>
      %cst_14 = arith.constant 0.000000e+00 : f32
      %16 = vector.broadcast %cst_14 : f32 to vector<128x128xf32>
      %17 = arith.maximumf %15, %16 : vector<128x128xf32>
      %18 = arith.truncf %17 : vector<128x128xf32> to vector<128x128xbf16>
      %c0_15 = arith.constant 0 : index
      %c0_16 = arith.constant 0 : index
      %19 = vector.load %arg6[%c0_15, %c0_16] : memref<128x128xbf16, #tpu.memory_space<vmem>>, vector<128x128xbf16>
      tpu.vector_store %arg6[%c0_15, %c0_16], %18 {strides = array<i32>} : memref<128x128xbf16, #tpu.memory_space<vmem>>, vector<128x128xbf16>,
    } else {
    }
    return
  }
  func.func @transform_0(%arg0: i32, %arg1: i32, %arg2: i32) -> (i32, i32) {
    %c0_i32 = arith.constant 0 : i32
    return %arg0, %arg2 : i32, i32
  }
  func.func @transform_1(%arg0: i32, %arg1: i32, %arg2: i32) -> (i32, i32) {
    %c0_i32 = arith.constant 0 : i32
    return %arg2, %arg1 : i32, i32
  }
  func.func @transform_2(%arg0: i32, %arg1: i32, %arg2: i32) -> (i32, i32) {
    %c0_i32 = arith.constant 0 : i32
    %c0_i32_0 = arith.constant 0 : i32
    return %c0_i32, %arg1 : i32, i32
  }
  func.func @transform_3(%arg0: i32, %arg1: i32, %arg2: i32) -> (i32, i32) {
    %c0_i32 = arith.constant 0 : i32
    return %arg0, %arg1 : i32, i32
  }
}

module attributes {stable_mosaic.version = 11 : i64} {
  func.func @_fused_matmul_kernel(%arg0: i32, %arg1: i32, %arg2: i32, %arg3: memref<128x384xbf16, #tpu.memory_space<vmem>>, %arg4: memref<384x128xbf16, #tpu.memory_space<vmem>>, %arg5: memref<1x128xf32, #tpu.memory_space<vmem>>, %arg6: memref<128x128xbf16, #tpu.memory_space<vmem>>, %arg7: memref<128x128xf32, #tpu.memory_space<vmem>>) attributes {dimension_semantics = [#tpu.dimension_semantics<parallel>, #tpu.dimension_semantics<parallel>, #tpu.dimension_semantics<arbitrary>], iteration_bounds = array<i64: 1, 1, 1>, scalar_prefetch = 0 : i64, scratch_operands = 1 : i64, tpu.core_type = #tpu.core_type<tc>, window_params = [{transform_indices = @transform_0, window_bounds = array<i64: 128, 384>}, {transform_indices = @transform_1, window_bounds = array<i64: 384, 128>}, {transform_indices = @transform_2, window_bounds = array<i64: 1, 128>}, {transform_indices = @transform_3, window_bounds = array<i64: 128, 128>}]} {
    %c0_i32 = arith.constant 0 : i32
    %0 = arith.cmpi eq, %arg2, %c0_i32 : i32
    %1 = arith.extui %0 : i1 to i32
    %c0_i32_0 = arith.constant 0 : i32
    %2 = arith.cmpi ne, %1, %c0_i32_0 : i32
    scf.if %2 {
      %cst_10 = arith.constant 0.000000e+00 : f32
      %12 = vector.broadcast %cst_10 : f32 to vector<128x128xf32>
      %c0_11 = arith.constant 0 : index
      %c0_12 = arith.constant 0 : index
      %13 = vector.load %arg7[%c0_11, %c0_12] : memref<128x128xf32, #tpu.memory_space<vmem>>, vector<128x128xf32>
      tpu.vector_store %arg7[%c0_11, %c0_12], %12 {strides = array<i32>} : memref<128x128xf32, #tpu.memory_space<vmem>>, vector<128x128xf32>,
    } else {
    }
    %c0 = arith.constant 0 : index
    %c0_1 = arith.constant 0 : index
    %3 = vector.load %arg7[%c0, %c0_1] : memref<128x128xf32, #tpu.memory_space<vmem>>, vector<128x128xf32>
    %c0_2 = arith.constant 0 : index
    %c0_3 = arith.constant 0 : index
    %4 = vector.load %arg3[%c0_2, %c0_3] : memref<128x384xbf16, #tpu.memory_space<vmem>>, vector<128x384xbf16>
    %c0_4 = arith.constant 0 : index
    %c0_5 = arith.constant 0 : index
    %5 = vector.load %arg4[%c0_4, %c0_5] : memref<384x128xbf16, #tpu.memory_space<vmem>>, vector<384x128xbf16>
    %cst = arith.constant dense<0.000000e+00> : vector<128x128xf32>
    %6 = tpu.matmul %4, %5, %cst {dimension_numbers = #tpu.dot_dimension_numbers<[1], [0], [0], [1], [0, 0, 1, 1], [], []>} : vector<128x384xbf16>, vector<384x128xbf16>, vector<128x128xf32> -> vector<128x128xf32>
    %7 = arith.addf %3, %6 : vector<128x128xf32>
    %c0_6 = arith.constant 0 : index
    %c0_7 = arith.constant 0 : index
    %8 = vector.load %arg7[%c0_6, %c0_7] : memref<128x128xf32, #tpu.memory_space<vmem>>, vector<128x128xf32>
    tpu.vector_store %arg7[%c0_6, %c0_7], %7 {strides = array<i32>} : memref<128x128xf32, #tpu.memory_space<vmem>>, vector<128x128xf32>,
    %c0_i32_8 = arith.constant 0 : i32
    %9 = arith.cmpi eq, %arg2, %c0_i32_8 : i32
    %10 = arith.extui %9 : i1 to i32
    %c0_i32_9 = arith.constant 0 : i32
    %11 = arith.cmpi ne, %10, %c0_i32_9 : i32
    scf.if %11 {
      %c0_10 = arith.constant 0 : index
      %c0_11 = arith.constant 0 : index
      %12 = vector.load %arg7[%c0_10, %c0_11] : memref<128x128xf32, #tpu.memory_space<vmem>>, vector<128x128xf32>
      %c0_12 = arith.constant 0 : index
      %c0_13 = arith.constant 0 : index
      %13 = vector.load %arg5[%c0_12, %c0_13] : memref<1x128xf32, #tpu.memory_space<vmem>>, vector<1x128xf32>
      %14 = vector.broadcast %13 : vector<1x128xf32> to vector<128x128xf32>
      %15 = arith.addf %12, %14 : vector<128x128xf32>
      %cst_14 = arith.constant 0.000000e+00 : f32
      %16 = vector.broadcast %cst_14 : f32 to vector<128x128xf32>
      %17 = arith.maximumf %15, %16 : vector<128x128xf32>
      %18 = arith.truncf %17 : vector<128x128xf32> to vector<128x128xbf16>
      %c0_15 = arith.constant 0 : index
      %c0_16 = arith.constant 0 : index
      %19 = vector.load %arg6[%c0_15, %c0_16] : memref<128x128xbf16, #tpu.memory_space<vmem>>, vector<128x128xbf16>
      tpu.vector_store %arg6[%c0_15, %c0_16], %18 {strides = array<i32>} : memref<128x128xbf16, #tpu.memory_space<vmem>>, vector<128x128xbf16>,
    } else {
    }
    return
  }
  func.func @transform_0(%arg0: i32, %arg1: i32, %arg2: i32) -> (i32, i32) {
    %c0_i32 = arith.constant 0 : i32
    return %arg0, %arg2 : i32, i32
  }
  func.func @transform_1(%arg0: i32, %arg1: i32, %arg2: i32) -> (i32, i32) {
    %c0_i32 = arith.constant 0 : i32
    return %arg2, %arg1 : i32, i32
  }
  func.func @transform_2(%arg0: i32, %arg1: i32, %arg2: i32) -> (i32, i32) {
    %c0_i32 = arith.constant 0 : i32
    %c0_i32_0 = arith.constant 0 : i32
    return %c0_i32, %arg1 : i32, i32
  }
  func.func @transform_3(%arg0: i32, %arg1: i32, %arg2: i32) -> (i32, i32) {
    %c0_i32 = arith.constant 0 : i32
    return %arg0, %arg1 : i32, i32
  }
}

module attributes {stable_mosaic.version = 11 : i64} {
  func.func @_fused_matmul_kernel(%arg0: i32, %arg1: i32, %arg2: i32, %arg3: memref<128x384xbf16, #tpu.memory_space<vmem>>, %arg4: memref<384x128xbf16, #tpu.memory_space<vmem>>, %arg5: memref<1x128xf32, #tpu.memory_space<vmem>>, %arg6: memref<128x128xbf16, #tpu.memory_space<vmem>>, %arg7: memref<128x128xbf16, #tpu.memory_space<vmem>>, %arg8: memref<128x128xf32, #tpu.memory_space<vmem>>) attributes {dimension_semantics = [#tpu.dimension_semantics<parallel>, #tpu.dimension_semantics<parallel>, #tpu.dimension_semantics<arbitrary>], iteration_bounds = array<i64: 1, 1, 1>, scalar_prefetch = 0 : i64, scratch_operands = 1 : i64, tpu.core_type = #tpu.core_type<tc>, window_params = [{transform_indices = @transform_0, window_bounds = array<i64: 128, 384>}, {transform_indices = @transform_1, window_bounds = array<i64: 384, 128>}, {transform_indices = @transform_2, window_bounds = array<i64: 1, 128>}, {transform_indices = @transform_3, window_bounds = array<i64: 128, 128>}, {transform_indices = @transform_4, window_bounds = array<i64: 128, 128>}]} {
    %c0_i32 = arith.constant 0 : i32
    %0 = arith.cmpi eq, %arg2, %c0_i32 : i32
    %1 = arith.extui %0 : i1 to i32
    %c0_i32_0 = arith.constant 0 : i32
    %2 = arith.cmpi ne, %1, %c0_i32_0 : i32
    scf.if %2 {
      %cst_10 = arith.constant 0.000000e+00 : f32
      %12 = vector.broadcast %cst_10 : f32 to vector<128x128xf32>
      %c0_11 = arith.constant 0 : index
      %c0_12 = arith.constant 0 : index
      %13 = vector.load %arg8[%c0_11, %c0_12] : memref<128x128xf32, #tpu.memory_space<vmem>>, vector<128x128xf32>
      tpu.vector_store %arg8[%c0_11, %c0_12], %12 {strides = array<i32>} : memref<128x128xf32, #tpu.memory_space<vmem>>, vector<128x128xf32>,
    } else {
    }
    %c0 = arith.constant 0 : index
    %c0_1 = arith.constant 0 : index
    %3 = vector.load %arg8[%c0, %c0_1] : memref<128x128xf32, #tpu.memory_space<vmem>>, vector<128x128xf32>
    %c0_2 = arith.constant 0 : index
    %c0_3 = arith.constant 0 : index
    %4 = vector.load %arg3[%c0_2, %c0_3] : memref<128x384xbf16, #tpu.memory_space<vmem>>, vector<128x384xbf16>
    %c0_4 = arith.constant 0 : index
    %c0_5 = arith.constant 0 : index
    %5 = vector.load %arg4[%c0_4, %c0_5] : memref<384x128xbf16, #tpu.memory_space<vmem>>, vector<384x128xbf16>
    %cst = arith.constant dense<0.000000e+00> : vector<128x128xf32>
    %6 = tpu.matmul %4, %5, %cst {dimension_numbers = #tpu.dot_dimension_numbers<[1], [0], [0], [1], [0, 0, 1, 1], [], []>} : vector<128x384xbf16>, vector<384x128xbf16>, vector<128x128xf32> -> vector<128x128xf32>
    %7 = arith.addf %3, %6 : vector<128x128xf32>
    %c0_6 = arith.constant 0 : index
    %c0_7 = arith.constant 0 : index
    %8 = vector.load %arg8[%c0_6, %c0_7] : memref<128x128xf32, #tpu.memory_space<vmem>>, vector<128x128xf32>
    tpu.vector_store %arg8[%c0_6, %c0_7], %7 {strides = array<i32>} : memref<128x128xf32, #tpu.memory_space<vmem>>, vector<128x128xf32>,
    %c0_i32_8 = arith.constant 0 : i32
    %9 = arith.cmpi eq, %arg2, %c0_i32_8 : i32
    %10 = arith.extui %9 : i1 to i32
    %c0_i32_9 = arith.constant 0 : i32
    %11 = arith.cmpi ne, %10, %c0_i32_9 : i32
    scf.if %11 {
      %c0_10 = arith.constant 0 : index
      %c0_11 = arith.constant 0 : index
      %12 = vector.load %arg8[%c0_10, %c0_11] : memref<128x128xf32, #tpu.memory_space<vmem>>, vector<128x128xf32>
      %c0_12 = arith.constant 0 : index
      %c0_13 = arith.constant 0 : index
      %13 = vector.load %arg5[%c0_12, %c0_13] : memref<1x128xf32, #tpu.memory_space<vmem>>, vector<1x128xf32>
      %14 = vector.broadcast %13 : vector<1x128xf32> to vector<128x128xf32>
      %15 = arith.addf %12, %14 : vector<128x128xf32>
      %c0_14 = arith.constant 0 : index
      %c0_15 = arith.constant 0 : index
      %16 = vector.load %arg6[%c0_14, %c0_15] : memref<128x128xbf16, #tpu.memory_space<vmem>>, vector<128x128xbf16>
      %17 = arith.extf %16 : vector<128x128xbf16> to vector<128x128xf32>
      %18 = arith.addf %15, %17 : vector<128x128xf32>
      %19 = arith.truncf %18 : vector<128x128xf32> to vector<128x128xbf16>
      %c0_16 = arith.constant 0 : index
      %c0_17 = arith.constant 0 : index
      %20 = vector.load %arg7[%c0_16, %c0_17] : memref<128x128xbf16, #tpu.memory_space<vmem>>, vector<128x128xbf16>
      tpu.vector_store %arg7[%c0_16, %c0_17], %19 {strides = array<i32>} : memref<128x128xbf16, #tpu.memory_space<vmem>>, vector<128x128xbf16>,
    } else {
    }
    return
  }
  func.func @transform_0(%arg0: i32, %arg1: i32, %arg2: i32) -> (i32, i32) {
    %c0_i32 = arith.constant 0 : i32
    return %arg0, %arg2 : i32, i32
  }
  func.func @transform_1(%arg0: i32, %arg1: i32, %arg2: i32) -> (i32, i32) {
    %c0_i32 = arith.constant 0 : i32
    return %arg2, %arg1 : i32, i32
  }
  func.func @transform_2(%arg0: i32, %arg1: i32, %arg2: i32) -> (i32, i32) {
    %c0_i32 = arith.constant 0 : i32
    %c0_i32_0 = arith.constant 0 : i32
    return %c0_i32, %arg1 : i32, i32
  }
  func.func @transform_3(%arg0: i32, %arg1: i32, %arg2: i32) -> (i32, i32) {
    %c0_i32 = arith.constant 0 : i32
    return %arg0, %arg1 : i32, i32
  }
  func.func @transform_4(%arg0: i32, %arg1: i32, %arg2: i32) -> (i32, i32) {
    %c0_i32 = arith.constant 0 : i32
    return %arg0, %arg1 : i32, i32
  }
}

module attributes {stable_mosaic.version = 11 : i64} {
  func.func @_fused_matmul_kernel(%arg0: i32, %arg1: i32, %arg2: i32, %arg3: memref<512x512xbf16, #tpu.memory_space<vmem>>, %arg4: memref<512x128xbf16, #tpu.memory_space<vmem>>, %arg5: memref<1x128xf32, #tpu.memory_space<vmem>>, %arg6: memref<512x128xf32, #tpu.memory_space<vmem>>, %arg7: memref<512x128xf32, #tpu.memory_space<vmem>>) attributes {dimension_semantics = [#tpu.dimension_semantics<parallel>, #tpu.dimension_semantics<parallel>, #tpu.dimension_semantics<arbitrary>], iteration_bounds = array<i64: 1, 1, 1>, scalar_prefetch = 0 : i64, scratch_operands = 1 : i64, tpu.core_type = #tpu.core_type<tc>, window_params = [{transform_indices = @transform_0, window_bounds = array<i64: 512, 512>}, {transform_indices = @transform_1, window_bounds = array<i64: 512, 128>}, {transform_indices = @transform_2, window_bounds = array<i64: 1, 128>}, {transform_indices = @transform_3, window_bounds = array<i64: 512, 128>}]} {
    %c0_i32 = arith.constant 0 : i32
    %0 = arith.cmpi eq, %arg2, %c0_i32 : i32
    %1 = arith.extui %0 : i1 to i32
    %c0_i32_0 = arith.constant 0 : i32
    %2 = arith.cmpi ne, %1, %c0_i32_0 : i32
    scf.if %2 {
      %cst_10 = arith.constant 0.000000e+00 : f32
      %12 = vector.broadcast %cst_10 : f32 to vector<512x128xf32>
      %c0_11 = arith.constant 0 : index
      %c0_12 = arith.constant 0 : index
      %13 = vector.load %arg7[%c0_11, %c0_12] : memref<512x128xf32, #tpu.memory_space<vmem>>, vector<512x128xf32>
      tpu.vector_store %arg7[%c0_11, %c0_12], %12 {strides = array<i32>} : memref<512x128xf32, #tpu.memory_space<vmem>>, vector<512x128xf32>,
    } else {
    }
    %c0 = arith.constant 0 : index
    %c0_1 = arith.constant 0 : index
    %3 = vector.load %arg7[%c0, %c0_1] : memref<512x128xf32, #tpu.memory_space<vmem>>, vector<512x128xf32>
    %c0_2 = arith.constant 0 : index
    %c0_3 = arith.constant 0 : index
    %4 = vector.load %arg3[%c0_2, %c0_3] : memref<512x512xbf16, #tpu.memory_space<vmem>>, vector<512x512xbf16>
    %c0_4 = arith.constant 0 : index
    %c0_5 = arith.constant 0 : index
    %5 = vector.load %arg4[%c0_4, %c0_5] : memref<512x128xbf16, #tpu.memory_space<vmem>>, vector<512x128xbf16>
    %cst = arith.constant dense<0.000000e+00> : vector<512x128xf32>
    %6 = tpu.matmul %4, %5, %cst {dimension_numbers = #tpu.dot_dimension_numbers<[1], [0], [0], [1], [0, 0, 1, 1], [], []>} : vector<512x512xbf16>, vector<512x128xbf16>, vector<512x128xf32> -> vector<512x128xf32>
    %7 = arith.addf %3, %6 : vector<512x128xf32>
    %c0_6 = arith.constant 0 : index
    %c0_7 = arith.constant 0 : index
    %8 = vector.load %arg7[%c0_6, %c0_7] : memref<512x128xf32, #tpu.memory_space<vmem>>, vector<512x128xf32>
    tpu.vector_store %arg7[%c0_6, %c0_7], %7 {strides = array<i32>} : memref<512x128xf32, #tpu.memory_space<vmem>>, vector<512x128xf32>,
    %c0_i32_8 = arith.constant 0 : i32
    %9 = arith.cmpi eq, %arg2, %c0_i32_8 : i32
    %10 = arith.extui %9 : i1 to i32
    %c0_i32_9 = arith.constant 0 : i32
    %11 = arith.cmpi ne, %10, %c0_i32_9 : i32
    scf.if %11 {
      %c0_10 = arith.constant 0 : index
      %c0_11 = arith.constant 0 : index
      %12 = vector.load %arg7[%c0_10, %c0_11] : memref<512x128xf32, #tpu.memory_space<vmem>>, vector<512x128xf32>
      %c0_12 = arith.constant 0 : index
      %c0_13 = arith.constant 0 : index
      %13 = vector.load %arg5[%c0_12, %c0_13] : memref<1x128xf32, #tpu.memory_space<vmem>>, vector<1x128xf32>
      %14 = vector.broadcast %13 : vector<1x128xf32> to vector<512x128xf32>
      %15 = arith.addf %12, %14 : vector<512x128xf32>
      %16 = math.tanh %15 : vector<512x128xf32>
      %c0_14 = arith.constant 0 : index
      %c0_15 = arith.constant 0 : index
      %17 = vector.load %arg6[%c0_14, %c0_15] : memref<512x128xf32, #tpu.memory_space<vmem>>, vector<512x128xf32>
      tpu.vector_store %arg6[%c0_14, %c0_15], %16 {strides = array<i32>} : memref<512x128xf32, #tpu.memory_space<vmem>>, vector<512x128xf32>,
    } else {
    }
    return
  }
  func.func @transform_0(%arg0: i32, %arg1: i32, %arg2: i32) -> (i32, i32) {
    %c0_i32 = arith.constant 0 : i32
    return %arg0, %arg2 : i32, i32
  }
  func.func @transform_1(%arg0: i32, %arg1: i32, %arg2: i32) -> (i32, i32) {
    %c0_i32 = arith.constant 0 : i32
    return %arg2, %arg1 : i32, i32
  }
  func.func @transform_2(%arg0: i32, %arg1: i32, %arg2: i32) -> (i32, i32) {
    %c0_i32 = arith.constant 0 : i32
    %c0_i32_0 = arith.constant 0 : i32
    return %c0_i32, %arg1 : i32, i32
  }
  func.func @transform_3(%arg0: i32, %arg1: i32, %arg2: i32) -> (i32, i32) {
    %c0_i32 = arith.constant 0 : i32
    return %arg0, %arg1 : i32, i32
  }
}

</mosaic_0001>

<bundles_post_ra>
// kernel: global_generator_forward.11
= control target key start
LH: loop header
LB: loop body
LE: loop exit
PB: predicated region body
PF: predicated region fallthrough
CT: control target
= control target key end

     0   :  { %s721_s1 = inlined_call_operand.vmem [shape: bf16[128,128], index: 1, kind: input, shape index: {}]   ;;  %s722_s0 = inlined_call_operand.vmem [shape: bf16[128,128], index: 0, kind: input, shape index: {}]   ;;  %s723_s2 = inlined_call_operand.vmem [shape: f32[1,128], index: 2, kind: input, shape index: {}]   ;;  %s724_s3 = inlined_call_operand.vmem [shape: bf16[128,128], index: 3, kind: output, shape index: {}]  }
   0x1   :  { %v610_v0 = vld [vmem:[%s721_s1] sm:$0xff]   ;;  %v611_v1 = vld [vmem:[%s721_s1 + $0x8] sm:$0xff]   ;;  %v612_v2 = vld [vmem:[%s721_s1 + $0x10] sm:$0xff]  }
   0x2   :  { %562 = vmatprep.subr.bf16.mxu0 %v610_v0  ;;  %594 = vmatprep.subr.bf16.mxu1 %v610_v0  ;;  %v613_v3 = vld [vmem:[%s721_s1 + $0x18] sm:$0xff]   ;;  %v618_v4 = vld [vmem:[%s722_s0] sm:$0xff]   ;;  %v615_v7 = vld [vmem:[%s721_s1 + $0x28] sm:$0xff]  }
   0x3   :  { %563 = vmatpush3.bf16.msra.mxu0 %v610_v0  ;;  %602 = vmatpush3.bf16.msra.mxu1 %v610_v0  ;;  %v619_v5 = vld [vmem:[%s722_s0 + $0x20] sm:$0xff]   ;;  %v616_v8 = vld [vmem:[%s721_s1 + $0x30] sm:$0xff]   ;;  %v617_v9 = vld [vmem:[%s721_s1 + $0x38] sm:$0xff]  }
   0x4   :  { %564 = vmatprep.subr.bf16.mxu0 %v611_v1  ;;  %595 = vmatprep.subr.bf16.mxu1 %v611_v1  ;;  %v614_v6 = vld [vmem:[%s721_s1 + $0x20] sm:$0xff]   ;;  %v620_v10 = vld [vmem:[%s722_s0 + $0x8] sm:$0xff]   ;;  %v622_v12 = vld [vmem:[%s722_s0 + $0x10] sm:$0xff]  }
   0x5   :  { %578 = vmatprep.mubr.bf16.mxu0 %v618_v4  ;;  %586 = vmatprep.mubr.bf16.mxu1 %v619_v5  ;;  %v621_v11 = vld [vmem:[%s722_s0 + $0x28] sm:$0xff]   ;;  %v623_v13 = vld [vmem:[%s722_s0 + $0x30] sm:$0xff]   ;;  %v624_v14 = vld [vmem:[%s722_s0 + $0x18] sm:$0xff]  }
   0x6   :  { %v625_v15 = vld [vmem:[%s722_s0 + $0x38] sm:$0xff]   ;;  %v466_v16 = vld [vmem:[%s723_s2] ss:$0 sm:$0xff] }
   0x7   :  { %565 = vmatpush3.bf16.msra.mxu0 %v611_v1  ;;  %603 = vmatpush3.bf16.msra.mxu1 %v611_v1 }
   0x8   :  { %566 = vmatprep.subr.bf16.mxu0 %v612_v2  ;;  %596 = vmatprep.subr.bf16.mxu1 %v612_v2 }
   0xb   :  { %567 = vmatpush3.bf16.msra.mxu0 %v612_v2  ;;  %604 = vmatpush3.bf16.msra.mxu1 %v612_v2 }
   0xc   :  { %568 = vmatprep.subr.bf16.mxu0 %v613_v3  ;;  %597 = vmatprep.subr.bf16.mxu1 %v613_v3 }
   0xf   :  { %569 = vmatpush3.bf16.msra.mxu0 %v613_v3  ;;  %605 = vmatpush3.bf16.msra.mxu1 %v613_v3 }
  0x10   :  { %570 = vmatprep.subr.bf16.mxu0 %v614_v6  ;;  %598 = vmatprep.subr.bf16.mxu1 %v614_v6 }
  0x13   :  { %571 = vmatpush3.bf16.msra.mxu0 %v614_v6  ;;  %606 = vmatpush3.bf16.msra.mxu1 %v614_v6 }
  0x14   :  { %572 = vmatprep.subr.bf16.mxu0 %v615_v7  ;;  %599 = vmatprep.subr.bf16.mxu1 %v615_v7 }
  0x17   :  { %573 = vmatpush3.bf16.msra.mxu0 %v615_v7  ;;  %607 = vmatpush3.bf16.msra.mxu1 %v615_v7 }
  0x18   :  { %574 = vmatprep.subr.bf16.mxu0 %v616_v8  ;;  %600 = vmatprep.subr.bf16.mxu1 %v616_v8 }
  0x1b   :  { %575 = vmatpush3.bf16.msra.mxu0 %v616_v8  ;;  %608 = vmatpush3.bf16.msra.mxu1 %v616_v8 }
  0x1c   :  { %576 = vmatprep.subr.bf16.mxu0 %v617_v9  ;;  %601 = vmatprep.subr.bf16.mxu1 %v617_v9 }
  0x1f   :  { %577 = vmatpush3.bf16.msra.mxu0 %v617_v9  ;;  %609 = vmatpush3.bf16.msra.mxu1 %v617_v9 }
  0x22   :  { %579 = vmatmul.mubr.bf16.vlgmr.msra.gmra.mrb[0].mxu0 %v620_v10  ;;  %587 = vmatmul.mubr.bf16.vlgmr.msra.gmra.mrb[0].mxu1 %v621_v11 }
  0x23   :  { %582 = vmatprep.mubr.bf16.mxu0 %v622_v12  ;;  %590 = vmatprep.mubr.bf16.mxu1 %v623_v13 }
  0x2a   :  { %583 = vmatmul.mubr.bf16.gmra.mrb[4].mxu0 %v624_v14  ;;  %591 = vmatmul.mubr.bf16.gmra.mrb[4].mxu1 %v625_v15 }
  0xf5   :  { %v580_v17 = vpop.f32.mrb[0].mxu0  ;;  %v588_v18 = vpop.f32.mrb[0].mxu1 }
  0xf6   :  { %v336_v19 = vadd.f32 %v580_v17, %v466_v16  ;;  %v344_v20 = vadd.f32 %v588_v18, %v466_v16  ;;  %v213_v21 = vpop.f32.mrb[1].mxu0  ;;  %v245_v22 = vpop.f32.mrb[1].mxu1 }
  0xf7   :  { %v334_v23 = vadd.f32 %v466_v16, %v213_v21  ;;  %v342_v24 = vadd.f32 %v466_v16, %v245_v22  ;;  %v581_v25 = vpop.f32.mrb[2].mxu0  ;;  %v589_v26 = vpop.f32.mrb[2].mxu1 }
  0xf8   :  { %v337_v27 = vadd.f32 %v581_v25, %v466_v16  ;;  %v345_v28 = vadd.f32 %v589_v26, %v466_v16  ;;  %v216_v29 = vpop.f32.mrb[3].mxu0  ;;  %v248_v30 = vpop.f32.mrb[3].mxu1  ;;  %v352_v33 = vmax.f32 %v336_v19, 0.0  ;;  %v360_v34 = vmax.f32 %v344_v20, 0.0 }
  0xf9   :  { %v335_v31 = vadd.f32 %v466_v16, %v216_v29  ;;  %v343_v32 = vadd.f32 %v466_v16, %v248_v30  ;;  %v350_v37 = vmax.f32 %v334_v23, 0.0  ;;  %v358_v38 = vmax.f32 %v342_v24, 0.0 }
  0xfa   :  { %v353_v35 = vmax.f32 %v337_v27, 0.0  ;;  %v361_v36 = vmax.f32 %v345_v28, 0.0 }
  0xfb   :  { %v351_v39 = vmax.f32 %v335_v31, 0.0  ;;  %v359_v40 = vmax.f32 %v343_v32, 0.0 }
  0xfc   :  { %v507_v41 = vpack.c.bf16 %v353_v35, %v352_v33  ;;  %v527_v42 = vpack.c.bf16 %v361_v36, %v360_v34 }
  0xfd   :  { %v502_v43 = vpack.c.bf16 %v351_v39, %v350_v37  ;;  %v522_v44 = vpack.c.bf16 %v359_v40, %v358_v38  ;;  %v584_v45 = vpop.f32.mrb[4].mxu0  ;;  %v592_v46 = vpop.f32.mrb[4].mxu1 }
  0xfe   :  { %539 = vst [vmem:[%s724_s3 + $0x8] sm:$0xff] %v507_v41   ;;  %543 = vst [vmem:[%s724_s3 + $0x28] sm:$0xff] %v527_v42   ;;  %v340_v47 = vadd.f32 %v584_v45, %v466_v16  ;;  %v348_v48 = vadd.f32 %v592_v46, %v466_v16  ;;  %v229_v49 = vpop.f32.mrb[5].mxu0  ;;  %v261_v50 = vpop.f32.mrb[5].mxu1 }
  0xff   :  { %503 = vst [vmem:[%s724_s3] sm:$0xff] %v502_v43   ;;  %542 = vst [vmem:[%s724_s3 + $0x20] sm:$0xff] %v522_v44   ;;  %v338_v51 = vadd.f32 %v466_v16, %v229_v49  ;;  %v346_v52 = vadd.f32 %v466_v16, %v261_v50  ;;  %v585_v53 = vpop.f32.mrb[6].mxu0  ;;  %v593_v54 = vpop.f32.mrb[6].mxu1 }
 0x100   :  { %v341_v55 = vadd.f32 %v585_v53, %v466_v16  ;;  %v349_v56 = vadd.f32 %v593_v54, %v466_v16  ;;  %v232_v57 = vpop.f32.mrb[7].mxu0  ;;  %v264_v58 = vpop.f32.mrb[7].mxu1  ;;  %v356_v61 = vmax.f32 %v340_v47, 0.0  ;;  %v364_v62 = vmax.f32 %v348_v48, 0.0 }
 0x101   :  { %v339_v59 = vadd.f32 %v466_v16, %v232_v57  ;;  %v347_v60 = vadd.f32 %v466_v16, %v264_v58  ;;  %v354_v1 = vmax.f32 %v338_v51, 0.0  ;;  %v362_v2 = vmax.f32 %v346_v52, 0.0 }
 0x102   :  { %v357_v63 = vmax.f32 %v341_v55, 0.0  ;;  %v365_v0 = vmax.f32 %v349_v56, 0.0 }
 0x103   :  { %v355_v3 = vmax.f32 %v339_v59, 0.0  ;;  %v363_v4 = vmax.f32 %v347_v60, 0.0 }
 0x104   :  { %v517_v5 = vpack.c.bf16 %v357_v63, %v356_v61  ;;  %v537_v6 = vpack.c.bf16 %v365_v0, %v364_v62 }
 0x105   :  { %v512_v7 = vpack.c.bf16 %v355_v3, %v354_v1  ;;  %v532_v8 = vpack.c.bf16 %v363_v4, %v362_v2 }
 0x106   :  { %541 = vst [vmem:[%s724_s3 + $0x18] sm:$0xff] %v517_v5   ;;  %545 = vst [vmem:[%s724_s3 + $0x38] sm:$0xff] %v537_v6  }
 0x107   :  { %540 = vst [vmem:[%s724_s3 + $0x10] sm:$0xff] %v512_v7   ;;  %544 = vst [vmem:[%s724_s3 + $0x30] sm:$0xff] %v532_v8  }

// kernel: global_generator_forward.10
= control target key start
LH: loop header
LB: loop body
LE: loop exit
PB: predicated region body
PF: predicated region fallthrough
CT: control target
= control target key end

     0   :  { %v2147_v0 = vmov 0   ;;  %s2605_s1 = inlined_call_operand.vmem [shape: bf16[256,128], index: 1, kind: input, shape index: {}]   ;;  %s2606_s0 = inlined_call_operand.vmem [shape: bf16[512,256], index: 0, kind: input, shape index: {}]   ;;  %s2607_s2 = inlined_call_operand.vmem [shape: f32[1,128], index: 2, kind: input, shape index: {}]   ;;  %s2608_s3 = inlined_call_operand.vmem [shape: bf16[512,128], index: 3, kind: output, shape index: {}]  }
   0x1   :  { %659 = vmatprep.subr.bf16.mxu0 %v2147_v0  ;;  %2002 = vmatprep.subr.bf16.mxu1 %v2147_v0  ;;  %v2035_v1 = vld [vmem:[%s2605_s1] sm:$0xff]   ;;  %v2036_v2 = vld [vmem:[%s2605_s1 + $0x8] sm:$0xff]   ;;  %v2037_v3 = vld [vmem:[%s2605_s1 + $0x10] sm:$0xff]  }
   0x2   :  { %660 = vmatpush1.bf16.msra.mxu0 %v2035_v1  ;;  %2018 = vmatpush1.bf16.msra.mxu1 %v2035_v1  ;;  %v2038_v4 = vld [vmem:[%s2605_s1 + $0x18] sm:$0xff]   ;;  %v2039_v5 = vld [vmem:[%s2605_s1 + $0x20] sm:$0xff]   ;;  %v2040_v7 = vld [vmem:[%s2605_s1 + $0x28] sm:$0xff]  }
   0x3   :  { %661 = vmatprep.subr.bf16.mxu0 %v2147_v0  ;;  %2003 = vmatprep.subr.bf16.mxu1 %v2147_v0  ;;  %v2053_v6 = vld [vmem:[%s2606_s0 + $0x4] ss:$8 sps:$4 sm:$0xff]   ;;  %v2041_v9 = vld [vmem:[%s2605_s1 + $0x30] sm:$0xff]   ;;  %v2042_v10 = vld [vmem:[%s2605_s1 + $0x38] sm:$0xff]  }
   0x4   :  { %v2056_v8 = vld [vmem:[%s2606_s0 + $0x104] ss:$8 sps:$4 sm:$0xff]   ;;  %691 = vmatprep.mubr.bf16.mxu0 %v2053_v6  ;;  %v2045_v13 = vld [vmem:[%s2605_s1 + $0x50] sm:$0xff]   ;;  %v2046_v14 = vld [vmem:[%s2605_s1 + $0x58] sm:$0xff]  }
   0x5   :  { %819 = vmatprep.mubr.bf16.mxu1 %v2056_v8  ;;  %v2043_v11 = vld [vmem:[%s2605_s1 + $0x40] sm:$0xff]   ;;  %v2044_v12 = vld [vmem:[%s2605_s1 + $0x48] sm:$0xff]   ;;  %v2049_v17 = vld [vmem:[%s2605_s1 + $0x70] sm:$0xff]  }
   0x6   :  { %662 = vmatpush1.bf16.msra.mxu0 %v2036_v2  ;;  %2019 = vmatpush1.bf16.msra.mxu1 %v2036_v2  ;;  %v2047_v15 = vld [vmem:[%s2605_s1 + $0x60] sm:$0xff]   ;;  %v2048_v16 = vld [vmem:[%s2605_s1 + $0x68] sm:$0xff]   ;;  %v2050_v18 = vld [vmem:[%s2605_s1 + $0x78] sm:$0xff]  }
   0x7   :  { %663 = vmatprep.subr.bf16.mxu0 %v2147_v0  ;;  %2004 = vmatprep.subr.bf16.mxu1 %v2147_v0  ;;  %v2051_v19 = vld [vmem:[%s2606_s0] ss:$8 sps:$4 sm:$0xff]   ;;  %v2057_v21 = vld [vmem:[%s2606_s0 + $0x14] ss:$8 sps:$4 sm:$0xff]   ;;  %v2061_v23 = vld [vmem:[%s2606_s0 + $0x10] ss:$8 sps:$4 sm:$0xff]  }
   0x8   :  { %v2054_v20 = vld [vmem:[%s2606_s0 + $0x100] ss:$8 sps:$4 sm:$0xff]   ;;  %v2059_v22 = vld [vmem:[%s2606_s0 + $0x114] ss:$8 sps:$4 sm:$0xff]   ;;  %v2062_v24 = vld [vmem:[%s2606_s0 + $0x110] ss:$8 sps:$4 sm:$0xff]  }
   0x9   :  { %v2063_v25 = vld [vmem:[%s2606_s0 + $0x24] ss:$8 sps:$4 sm:$0xff]   ;;  %v2067_v27 = vld [vmem:[%s2606_s0 + $0x20] ss:$8 sps:$4 sm:$0xff]   ;;  %v2069_v29 = vld [vmem:[%s2606_s0 + $0x34] ss:$8 sps:$4 sm:$0xff]  }
   0xa   :  { %664 = vmatpush1.bf16.msra.mxu0 %v2037_v3  ;;  %2020 = vmatpush1.bf16.msra.mxu1 %v2037_v3  ;;  %v2065_v26 = vld [vmem:[%s2606_s0 + $0x124] ss:$8 sps:$4 sm:$0xff]   ;;  %v2068_v28 = vld [vmem:[%s2606_s0 + $0x120] ss:$8 sps:$4 sm:$0xff]   ;;  %v2071_v30 = vld [vmem:[%s2606_s0 + $0x134] ss:$8 sps:$4 sm:$0xff]  }
   0xb   :  { %665 = vmatprep.subr.bf16.mxu0 %v2147_v0  ;;  %2005 = vmatprep.subr.bf16.mxu1 %v2147_v0  ;;  %v2073_v31 = vld [vmem:[%s2606_s0 + $0x30] ss:$8 sps:$4 sm:$0xff]   ;;  %v2075_v33 = vld [vmem:[%s2606_s0 + $0x44] ss:$8 sps:$4 sm:$0xff]   ;;  %v2079_v35 = vld [vmem:[%s2606_s0 + $0x40] ss:$8 sps:$4 sm:$0xff]  }
   0xc   :  { %v2074_v32 = vld [vmem:[%s2606_s0 + $0x130] ss:$8 sps:$4 sm:$0xff]   ;;  %v2077_v34 = vld [vmem:[%s2606_s0 + $0x144] ss:$8 sps:$4 sm:$0xff]   ;;  %v2080_v36 = vld [vmem:[%s2606_s0 + $0x140] ss:$8 sps:$4 sm:$0xff]  }
   0xd   :  { %v2081_v37 = vld [vmem:[%s2606_s0 + $0x54] ss:$8 sps:$4 sm:$0xff]   ;;  %v2085_v39 = vld [vmem:[%s2606_s0 + $0x50] ss:$8 sps:$4 sm:$0xff]   ;;  %v2087_v41 = vld [vmem:[%s2606_s0 + $0x64] ss:$8 sps:$4 sm:$0xff]  }
   0xe   :  { %666 = vmatpush1.bf16.msra.mxu0 %v2038_v4  ;;  %2021 = vmatpush1.bf16.msra.mxu1 %v2038_v4  ;;  %v2083_v38 = vld [vmem:[%s2606_s0 + $0x154] ss:$8 sps:$4 sm:$0xff]   ;;  %v2086_v40 = vld [vmem:[%s2606_s0 + $0x150] ss:$8 sps:$4 sm:$0xff]   ;;  %v2089_v42 = vld [vmem:[%s2606_s0 + $0x164] ss:$8 sps:$4 sm:$0xff]  }
   0xf   :  { %667 = vmatprep.subr.bf16.mxu0 %v2147_v0  ;;  %2006 = vmatprep.subr.bf16.mxu1 %v2147_v0  ;;  %v2091_v43 = vld [vmem:[%s2606_s0 + $0x60] ss:$8 sps:$4 sm:$0xff]   ;;  %v2093_v45 = vld [vmem:[%s2606_s0 + $0x74] ss:$8 sps:$4 sm:$0xff]   ;;  %v2097_v47 = vld [vmem:[%s2606_s0 + $0x70] ss:$8 sps:$4 sm:$0xff]  }
  0x10   :  { %v2092_v44 = vld [vmem:[%s2606_s0 + $0x160] ss:$8 sps:$4 sm:$0xff]   ;;  %v2095_v46 = vld [vmem:[%s2606_s0 + $0x174] ss:$8 sps:$4 sm:$0xff]   ;;  %v2098_v48 = vld [vmem:[%s2606_s0 + $0x170] ss:$8 sps:$4 sm:$0xff]  }
  0x11   :  { %v2099_v49 = vld [vmem:[%s2606_s0 + $0x84] ss:$8 sps:$4 sm:$0xff]   ;;  %v2103_v51 = vld [vmem:[%s2606_s0 + $0x80] ss:$8 sps:$4 sm:$0xff]   ;;  %v2105_v53 = vld [vmem:[%s2606_s0 + $0x94] ss:$8 sps:$4 sm:$0xff]  }
  0x12   :  { %668 = vmatpush1.bf16.msra.mxu0 %v2039_v5  ;;  %2022 = vmatpush1.bf16.msra.mxu1 %v2039_v5  ;;  %v2101_v50 = vld [vmem:[%s2606_s0 + $0x184] ss:$8 sps:$4 sm:$0xff]   ;;  %v2104_v52 = vld [vmem:[%s2606_s0 + $0x180] ss:$8 sps:$4 sm:$0xff]   ;;  %v2107_v54 = vld [vmem:[%s2606_s0 + $0x194] ss:$8 sps:$4 sm:$0xff]  }
  0x13   :  { %669 = vmatprep.subr.bf16.mxu0 %v2147_v0  ;;  %2007 = vmatprep.subr.bf16.mxu1 %v2147_v0  ;;  %v2109_v55 = vld [vmem:[%s2606_s0 + $0x90] ss:$8 sps:$4 sm:$0xff]   ;;  %v2111_v57 = vld [vmem:[%s2606_s0 + $0xa4] ss:$8 sps:$4 sm:$0xff]   ;;  %v2115_v59 = vld [vmem:[%s2606_s0 + $0xa0] ss:$8 sps:$4 sm:$0xff]  }
  0x14   :  { %v2110_v56 = vld [vmem:[%s2606_s0 + $0x190] ss:$8 sps:$4 sm:$0xff]   ;;  %v2113_v58 = vld [vmem:[%s2606_s0 + $0x1a4] ss:$8 sps:$4 sm:$0xff]   ;;  %v2116_v60 = vld [vmem:[%s2606_s0 + $0x1a0] ss:$8 sps:$4 sm:$0xff]  }
  0x15   :  { %v2117_v61 = vld [vmem:[%s2606_s0 + $0xb4] ss:$8 sps:$4 sm:$0xff]   ;;  %v2121_v63 = vld [vmem:[%s2606_s0 + $0xb0] ss:$8 sps:$4 sm:$0xff]   ;;  %v2123_v1 = vld [vmem:[%s2606_s0 + $0xc4] ss:$8 sps:$4 sm:$0xff]  }
  0x16   :  { %670 = vmatpush1.bf16.msra.mxu0 %v2040_v7  ;;  %2023 = vmatpush1.bf16.msra.mxu1 %v2040_v7  ;;  %v2119_v62 = vld [vmem:[%s2606_s0 + $0x1b4] ss:$8 sps:$4 sm:$0xff]   ;;  %v2125_v2 = vld [vmem:[%s2606_s0 + $0x1c4] ss:$8 sps:$4 sm:$0xff]   ;;  %v2127_v3 = vld [vmem:[%s2606_s0 + $0xc0] ss:$8 sps:$4 sm:$0xff]  }
  0x17   :  { %671 = vmatprep.subr.bf16.mxu0 %v2147_v0  ;;  %2008 = vmatprep.subr.bf16.mxu1 %v2147_v0  ;;  %v2128_v4 = vld [vmem:[%s2606_s0 + $0x1c0] ss:$8 sps:$4 sm:$0xff]   ;;  %v2129_v5 = vld [vmem:[%s2606_s0 + $0xd4] ss:$8 sps:$4 sm:$0xff]   ;;  %v2133_v7 = vld [vmem:[%s2606_s0 + $0xd0] ss:$8 sps:$4 sm:$0xff]  }
  0x18   :  { %v2131_v6 = vld [vmem:[%s2606_s0 + $0x1d4] ss:$8 sps:$4 sm:$0xff]   ;;  %v2134_v8 = vld [vmem:[%s2606_s0 + $0x1d0] ss:$8 sps:$4 sm:$0xff]  }
  0x1a   :  { %672 = vmatpush1.bf16.msra.mxu0 %v2041_v9  ;;  %2024 = vmatpush1.bf16.msra.mxu1 %v2041_v9  ;;  %v2135_v9 = vld [vmem:[%s2606_s0 + $0xe4] ss:$8 sps:$4 sm:$0xff]  }
  0x1b   :  { %673 = vmatprep.subr.bf16.mxu0 %v2147_v0  ;;  %2009 = vmatprep.subr.bf16.mxu1 %v2147_v0 }
  0x1e   :  { %674 = vmatpush1.bf16.msra.mxu0 %v2042_v10  ;;  %2025 = vmatpush1.bf16.msra.mxu1 %v2042_v10  ;;  %v2137_v10 = vld [vmem:[%s2606_s0 + $0x1e4] ss:$8 sps:$4 sm:$0xff]  }
  0x1f   :  { %675 = vmatprep.subr.bf16.mxu0 %v2147_v0  ;;  %2010 = vmatprep.subr.bf16.mxu1 %v2147_v0 }
  0x22   :  { %676 = vmatpush1.bf16.msra.mxu0 %v2043_v11  ;;  %2026 = vmatpush1.bf16.msra.mxu1 %v2043_v11  ;;  %v2139_v11 = vld [vmem:[%s2606_s0 + $0xe0] ss:$8 sps:$4 sm:$0xff]  }
  0x23   :  { %677 = vmatprep.subr.bf16.mxu0 %v2147_v0  ;;  %2011 = vmatprep.subr.bf16.mxu1 %v2147_v0 }
  0x26   :  { %678 = vmatpush1.bf16.msra.mxu0 %v2044_v12  ;;  %2027 = vmatpush1.bf16.msra.mxu1 %v2044_v12  ;;  %v2140_v12 = vld [vmem:[%s2606_s0 + $0x1e0] ss:$8 sps:$4 sm:$0xff]  }
  0x27   :  { %679 = vmatprep.subr.bf16.mxu0 %v2147_v0  ;;  %2012 = vmatprep.subr.bf16.mxu1 %v2147_v0 }
  0x2a   :  { %680 = vmatpush1.bf16.msra.mxu0 %v2045_v13  ;;  %2028 = vmatpush1.bf16.msra.mxu1 %v2045_v13  ;;  %v2141_v13 = vld [vmem:[%s2606_s0 + $0xf4] ss:$8 sps:$4 sm:$0xff]  }
  0x2b   :  { %681 = vmatprep.subr.bf16.mxu0 %v2147_v0  ;;  %2013 = vmatprep.subr.bf16.mxu1 %v2147_v0 }
  0x2e   :  { %682 = vmatpush1.bf16.msra.mxu0 %v2046_v14  ;;  %2029 = vmatpush1.bf16.msra.mxu1 %v2046_v14  ;;  %v2143_v14 = vld [vmem:[%s2606_s0 + $0x1f4] ss:$8 sps:$4 sm:$0xff]  }
  0x2f   :  { %683 = vmatprep.subr.bf16.mxu0 %v2147_v0  ;;  %2014 = vmatprep.subr.bf16.mxu1 %v2147_v0 }
  0x32   :  { %684 = vmatpush1.bf16.msra.mxu0 %v2047_v15  ;;  %2030 = vmatpush1.bf16.msra.mxu1 %v2047_v15  ;;  %v2145_v15 = vld [vmem:[%s2606_s0 + $0xf0] ss:$8 sps:$4 sm:$0xff]  }
  0x33   :  { %685 = vmatprep.subr.bf16.mxu0 %v2147_v0  ;;  %2015 = vmatprep.subr.bf16.mxu1 %v2147_v0 }
  0x36   :  { %686 = vmatpush1.bf16.msra.mxu0 %v2048_v16  ;;  %2031 = vmatpush1.bf16.msra.mxu1 %v2048_v16  ;;  %v2146_v16 = vld [vmem:[%s2606_s0 + $0x1f0] ss:$8 sps:$4 sm:$0xff]  }
  0x37   :  { %687 = vmatprep.subr.bf16.mxu0 %v2147_v0  ;;  %2016 = vmatprep.subr.bf16.mxu1 %v2147_v0 }
  0x3a   :  { %688 = vmatpush1.bf16.msra.mxu0 %v2049_v17  ;;  %2032 = vmatpush1.bf16.msra.mxu1 %v2049_v17  ;;  %v2443_v17 = vld [vmem:[%s2607_s2] ss:$0 sm:$0xff] }
  0x3b   :  { %689 = vmatprep.subr.bf16.mxu0 %v2147_v0  ;;  %2017 = vmatprep.subr.bf16.mxu1 %v2147_v0  ;;  %v2122_v0 = vld [vmem:[%s2606_s0 + $0x1b0] ss:$8 sps:$4 sm:$0xff]  }
  0x3e   :  { %690 = vmatpush1.bf16.msra.mxu0 %v2050_v18  ;;  %2033 = vmatpush1.bf16.msra.mxu1 %v2050_v18 }
  0x41   :  { %692 = vmatmul.mubr.bf16.vlgmr.msra.gmra.mrb[0].mxu0 %v2051_v19  ;;  %820 = vmatmul.mubr.bf16.vlgmr.msra.gmra.mrb[0].mxu1 %v2054_v20 }
  0x42   :  { %699 = vmatprep.mubr.bf16.mxu0 %v2057_v21  ;;  %827 = vmatprep.mubr.bf16.mxu1 %v2059_v22 }
  0x49   :  { %700 = vmatmul.mubr.bf16.gmra.mrb[4].mxu0 %v2061_v23  ;;  %828 = vmatmul.mubr.bf16.gmra.mrb[4].mxu1 %v2062_v24 }
  0x4a   :  { %707 = vmatprep.mubr.bf16.mxu0 %v2063_v25  ;;  %835 = vmatprep.mubr.bf16.mxu1 %v2065_v26 }
  0x51   :  { %708 = vmatmul.mubr.bf16.gmra.mrb[8].mxu0 %v2067_v27  ;;  %836 = vmatmul.mubr.bf16.gmra.mrb[8].mxu1 %v2068_v28 }
  0x52   :  { %715 = vmatprep.mubr.bf16.mxu0 %v2069_v29  ;;  %843 = vmatprep.mubr.bf16.mxu1 %v2071_v30 }
  0x59   :  { %716 = vmatmul.mubr.bf16.gmra.mrb[12].mxu0 %v2073_v31  ;;  %844 = vmatmul.mubr.bf16.gmra.mrb[12].mxu1 %v2074_v32 }
  0x5a   :  { %723 = vmatprep.mubr.bf16.mxu0 %v2075_v33  ;;  %851 = vmatprep.mubr.bf16.mxu1 %v2077_v34 }
  0x61   :  { %724 = vmatmul.mubr.bf16.gmra.mrb[16].mxu0 %v2079_v35  ;;  %852 = vmatmul.mubr.bf16.gmra.mrb[16].mxu1 %v2080_v36 }
  0x62   :  { %731 = vmatprep.mubr.bf16.mxu0 %v2081_v37  ;;  %859 = vmatprep.mubr.bf16.mxu1 %v2083_v38 }
  0x69   :  { %732 = vmatmul.mubr.bf16.gmra.mrb[20].mxu0 %v2085_v39  ;;  %860 = vmatmul.mubr.bf16.gmra.mrb[20].mxu1 %v2086_v40 }
  0x6a   :  { %739 = vmatprep.mubr.bf16.mxu0 %v2087_v41  ;;  %867 = vmatprep.mubr.bf16.mxu1 %v2089_v42 }
  0x71   :  { %740 = vmatmul.mubr.bf16.gmra.mrb[24].mxu0 %v2091_v43  ;;  %868 = vmatmul.mubr.bf16.gmra.mrb[24].mxu1 %v2092_v44 }
  0x72   :  { %747 = vmatprep.mubr.bf16.mxu0 %v2093_v45  ;;  %875 = vmatprep.mubr.bf16.mxu1 %v2095_v46 }
  0x79   :  { %748 = vmatmul.mubr.bf16.gmra.mrb[28].mxu0 %v2097_v47  ;;  %876 = vmatmul.mubr.bf16.gmra.mrb[28].mxu1 %v2098_v48 }
  0x7a   :  { %755 = vmatprep.mubr.bf16.mxu0 %v2099_v49  ;;  %883 = vmatprep.mubr.bf16.mxu1 %v2101_v50 }
  0x81   :  { %756 = vmatmul.mubr.bf16.gmra.mrb[32].mxu0 %v2103_v51  ;;  %884 = vmatmul.mubr.bf16.gmra.mrb[32].mxu1 %v2104_v52 }
  0x82   :  { %763 = vmatprep.mubr.bf16.mxu0 %v2105_v53  ;;  %891 = vmatprep.mubr.bf16.mxu1 %v2107_v54 }
  0x89   :  { %764 = vmatmul.mubr.bf16.gmra.mrb[36].mxu0 %v2109_v55  ;;  %892 = vmatmul.mubr.bf16.gmra.mrb[36].mxu1 %v2110_v56 }
  0x8a   :  { %771 = vmatprep.mubr.bf16.mxu0 %v2111_v57  ;;  %899 = vmatprep.mubr.bf16.mxu1 %v2113_v58 }
  0x91   :  { %772 = vmatmul.mubr.bf16.gmra.mrb[40].mxu0 %v2115_v59  ;;  %900 = vmatmul.mubr.bf16.gmra.mrb[40].mxu1 %v2116_v60 }
  0x92   :  { %779 = vmatprep.mubr.bf16.mxu0 %v2117_v61  ;;  %907 = vmatprep.mubr.bf16.mxu1 %v2119_v62 }
  0x99   :  { %780 = vmatmul.mubr.bf16.gmra.mrb[44].mxu0 %v2121_v63  ;;  %908 = vmatmul.mubr.bf16.gmra.mrb[44].mxu1 %v2122_v0 }
  0x9a   :  { %787 = vmatprep.mubr.bf16.mxu0 %v2123_v1  ;;  %915 = vmatprep.mubr.bf16.mxu1 %v2125_v2 }
  0xa1   :  { %788 = vmatmul.mubr.bf16.gmra.mrb[48].mxu0 %v2127_v3  ;;  %916 = vmatmul.mubr.bf16.gmra.mrb[48].mxu1 %v2128_v4 }
  0xa2   :  { %795 = vmatprep.mubr.bf16.mxu0 %v2129_v5  ;;  %923 = vmatprep.mubr.bf16.mxu1 %v2131_v6 }
  0xa9   :  { %796 = vmatmul.mubr.bf16.gmra.mrb[52].mxu0 %v2133_v7  ;;  %924 = vmatmul.mubr.bf16.gmra.mrb[52].mxu1 %v2134_v8 }
  0xaa   :  { %803 = vmatprep.mubr.bf16.mxu0 %v2135_v9  ;;  %931 = vmatprep.mubr.bf16.mxu1 %v2137_v10 }
  0xb1   :  { %804 = vmatmul.mubr.bf16.gmra.mrb[56].mxu0 %v2139_v11  ;;  %932 = vmatmul.mubr.bf16.gmra.mrb[56].mxu1 %v2140_v12 }
  0xb2   :  { %811 = vmatprep.mubr.bf16.mxu0 %v2141_v13  ;;  %939 = vmatprep.mubr.bf16.mxu1 %v2143_v14 }
  0xb9   :  { %812 = vmatmul.mubr.bf16.gmra.mrb[60].mxu0 %v2145_v15  ;;  %940 = vmatmul.mubr.bf16.gmra.mrb[60].mxu1 %v2146_v16 }
 0x114   :  { %v693_v18 = vpop.f32.mrb[0].mxu0  ;;  %v821_v19 = vpop.f32.mrb[0].mxu1 }
 0x115   :  { %v1150_v20 = vadd.f32 %v2443_v17, %v693_v18  ;;  %v1182_v21 = vadd.f32 %v2443_v17, %v821_v19  ;;  %v695_v22 = vpop.f32.mrb[1].mxu0  ;;  %v823_v23 = vpop.f32.mrb[1].mxu1 }
 0x116   :  { %v696_v24 = vpop.f32.mrb[2].mxu0  ;;  %v824_v25 = vpop.f32.mrb[2].mxu1 }
 0x117   :  { %v1151_v26 = vadd.f32 %v2443_v17, %v696_v24  ;;  %v1183_v27 = vadd.f32 %v2443_v17, %v824_v25  ;;  %v698_v28 = vpop.f32.mrb[3].mxu0  ;;  %v826_v29 = vpop.f32.mrb[3].mxu1  ;;  %v1214_v30 = vmax.f32 %v1150_v20, 0.0  ;;  %v1246_v31 = vmax.f32 %v1182_v21, 0.0 }
 0x119   :  { %v1215_v32 = vmax.f32 %v1151_v26, 0.0  ;;  %v1247_v33 = vmax.f32 %v1183_v27, 0.0 }
 0x11b   :  { %v1814_v34 = vpack.c.bf16 %v1215_v32, %v1214_v30  ;;  %v1894_v35 = vpack.c.bf16 %v1247_v33, %v1246_v31 }
 0x11c   :  { %v701_v36 = vpop.f32.mrb[4].mxu0  ;;  %v829_v37 = vpop.f32.mrb[4].mxu1 }
 0x11d   :  { %1815 = vst [vmem:[%s2608_s3] sm:$0xff] %v1814_v34   ;;  %1986 = vst [vmem:[%s2608_s3 + $0x80] sm:$0xff] %v1894_v35   ;;  %v1152_v38 = vadd.f32 %v2443_v17, %v701_v36  ;;  %v1184_v39 = vadd.f32 %v2443_v17, %v829_v37  ;;  %v703_v40 = vpop.f32.mrb[5].mxu0  ;;  %v831_v41 = vpop.f32.mrb[5].mxu1 }
 0x11e   :  { %v704_v42 = vpop.f32.mrb[6].mxu0  ;;  %v832_v43 = vpop.f32.mrb[6].mxu1 }
 0x11f   :  { %v1153_v44 = vadd.f32 %v2443_v17, %v704_v42  ;;  %v1185_v45 = vadd.f32 %v2443_v17, %v832_v43  ;;  %v706_v46 = vpop.f32.mrb[7].mxu0  ;;  %v834_v47 = vpop.f32.mrb[7].mxu1  ;;  %v1216_v48 = vmax.f32 %v1152_v38, 0.0  ;;  %v1248_v49 = vmax.f32 %v1184_v39, 0.0 }
 0x121   :  { %v1217_v50 = vmax.f32 %v1153_v44, 0.0  ;;  %v1249_v51 = vmax.f32 %v1185_v45, 0.0 }
 0x123   :  { %v1819_v52 = vpack.c.bf16 %v1217_v50, %v1216_v48  ;;  %v1899_v53 = vpack.c.bf16 %v1249_v51, %v1248_v49 }
 0x124   :  { %v709_v54 = vpop.f32.mrb[8].mxu0  ;;  %v837_v55 = vpop.f32.mrb[8].mxu1 }
 0x125   :  { %1971 = vst [vmem:[%s2608_s3 + $0x8] sm:$0xff] %v1819_v52   ;;  %1987 = vst [vmem:[%s2608_s3 + $0x88] sm:$0xff] %v1899_v53   ;;  %v1154_v56 = vadd.f32 %v2443_v17, %v709_v54  ;;  %v1186_v57 = vadd.f32 %v2443_v17, %v837_v55  ;;  %v711_v58 = vpop.f32.mrb[9].mxu0  ;;  %v839_v59 = vpop.f32.mrb[9].mxu1 }
 0x126   :  { %v712_v60 = vpop.f32.mrb[10].mxu0  ;;  %v840_v61 = vpop.f32.mrb[10].mxu1 }
 0x127   :  { %v1155_v62 = vadd.f32 %v2443_v17, %v712_v60  ;;  %v1187_v63 = vadd.f32 %v2443_v17, %v840_v61  ;;  %v714_v0 = vpop.f32.mrb[11].mxu0  ;;  %v842_v1 = vpop.f32.mrb[11].mxu1  ;;  %v1218_v2 = vmax.f32 %v1154_v56, 0.0  ;;  %v1250_v3 = vmax.f32 %v1186_v57, 0.0 }
 0x129   :  { %v1219_v4 = vmax.f32 %v1155_v62, 0.0  ;;  %v1251_v5 = vmax.f32 %v1187_v63, 0.0 }
 0x12b   :  { %v1824_v6 = vpack.c.bf16 %v1219_v4, %v1218_v2  ;;  %v1904_v7 = vpack.c.bf16 %v1251_v5, %v1250_v3 }
 0x12c   :  { %v717_v8 = vpop.f32.mrb[12].mxu0  ;;  %v845_v9 = vpop.f32.mrb[12].mxu1 }
 0x12d   :  { %1972 = vst [vmem:[%s2608_s3 + $0x10] sm:$0xff] %v1824_v6   ;;  %1988 = vst [vmem:[%s2608_s3 + $0x90] sm:$0xff] %v1904_v7   ;;  %v1156_v10 = vadd.f32 %v2443_v17, %v717_v8  ;;  %v1188_v11 = vadd.f32 %v2443_v17, %v845_v9  ;;  %v719_v12 = vpop.f32.mrb[13].mxu0  ;;  %v847_v13 = vpop.f32.mrb[13].mxu1 }
 0x12e   :  { %v720_v14 = vpop.f32.mrb[14].mxu0  ;;  %v848_v15 = vpop.f32.mrb[14].mxu1 }
 0x12f   :  { %v1157_v16 = vadd.f32 %v2443_v17, %v720_v14  ;;  %v1189_v18 = vadd.f32 %v2443_v17, %v848_v15  ;;  %v722_v19 = vpop.f32.mrb[15].mxu0  ;;  %v850_v20 = vpop.f32.mrb[15].mxu1  ;;  %v1220_v21 = vmax.f32 %v1156_v10, 0.0  ;;  %v1252_v22 = vmax.f32 %v1188_v11, 0.0 }
 0x131   :  { %v1221_v23 = vmax.f32 %v1157_v16, 0.0  ;;  %v1253_v24 = vmax.f32 %v1189_v18, 0.0 }
 0x133   :  { %v1829_v25 = vpack.c.bf16 %v1221_v23, %v1220_v21  ;;  %v1909_v26 = vpack.c.bf16 %v1253_v24, %v1252_v22 }
 0x134   :  { %v725_v27 = vpop.f32.mrb[16].mxu0  ;;  %v853_v28 = vpop.f32.mrb[16].mxu1 }
 0x135   :  { %1973 = vst [vmem:[%s2608_s3 + $0x18] sm:$0xff] %v1829_v25   ;;  %1989 = vst [vmem:[%s2608_s3 + $0x98] sm:$0xff] %v1909_v26   ;;  %v1158_v29 = vadd.f32 %v2443_v17, %v725_v27  ;;  %v1190_v30 = vadd.f32 %v2443_v17, %v853_v28  ;;  %v727_v31 = vpop.f32.mrb[17].mxu0  ;;  %v855_v32 = vpop.f32.mrb[17].mxu1 }
 0x136   :  { %v728_v33 = vpop.f32.mrb[18].mxu0  ;;  %v856_v34 = vpop.f32.mrb[18].mxu1 }
 0x137   :  { %v1159_v35 = vadd.f32 %v2443_v17, %v728_v33  ;;  %v1191_v36 = vadd.f32 %v2443_v17, %v856_v34  ;;  %v730_v37 = vpop.f32.mrb[19].mxu0  ;;  %v858_v38 = vpop.f32.mrb[19].mxu1  ;;  %v1222_v39 = vmax.f32 %v1158_v29, 0.0  ;;  %v1254_v40 = vmax.f32 %v1190_v30, 0.0 }
 0x139   :  { %v1223_v41 = vmax.f32 %v1159_v35, 0.0  ;;  %v1255_v42 = vmax.f32 %v1191_v36, 0.0 }
 0x13b   :  { %v1834_v43 = vpack.c.bf16 %v1223_v41, %v1222_v39  ;;  %v1914_v44 = vpack.c.bf16 %v1255_v42, %v1254_v40 }
 0x13c   :  { %v733_v45 = vpop.f32.mrb[20].mxu0  ;;  %v861_v46 = vpop.f32.mrb[20].mxu1 }
 0x13d   :  { %1974 = vst [vmem:[%s2608_s3 + $0x20] sm:$0xff] %v1834_v43   ;;  %1990 = vst [vmem:[%s2608_s3 + $0xa0] sm:$0xff] %v1914_v44   ;;  %v1160_v47 = vadd.f32 %v2443_v17, %v733_v45  ;;  %v1192_v48 = vadd.f32 %v2443_v17, %v861_v46  ;;  %v735_v49 = vpop.f32.mrb[21].mxu0  ;;  %v863_v50 = vpop.f32.mrb[21].mxu1 }
 0x13e   :  { %v736_v51 = vpop.f32.mrb[22].mxu0  ;;  %v864_v52 = vpop.f32.mrb[22].mxu1 }
 0x13f   :  { %v1161_v53 = vadd.f32 %v2443_v17, %v736_v51  ;;  %v1193_v54 = vadd.f32 %v2443_v17, %v864_v52  ;;  %v738_v55 = vpop.f32.mrb[23].mxu0  ;;  %v866_v56 = vpop.f32.mrb[23].mxu1  ;;  %v1224_v57 = vmax.f32 %v1160_v47, 0.0  ;;  %v1256_v58 = vmax.f32 %v1192_v48, 0.0 }
 0x141   :  { %v1225_v59 = vmax.f32 %v1161_v53, 0.0  ;;  %v1257_v60 = vmax.f32 %v1193_v54, 0.0 }
 0x143   :  { %v1839_v61 = vpack.c.bf16 %v1225_v59, %v1224_v57  ;;  %v1919_v62 = vpack.c.bf16 %v1257_v60, %v1256_v58 }
 0x144   :  { %v741_v63 = vpop.f32.mrb[24].mxu0  ;;  %v869_v0 = vpop.f32.mrb[24].mxu1 }
 0x145   :  { %1975 = vst [vmem:[%s2608_s3 + $0x28] sm:$0xff] %v1839_v61   ;;  %1991 = vst [vmem:[%s2608_s3 + $0xa8] sm:$0xff] %v1919_v62   ;;  %v1162_v1 = vadd.f32 %v2443_v17, %v741_v63  ;;  %v1194_v2 = vadd.f32 %v2443_v17, %v869_v0  ;;  %v743_v3 = vpop.f32.mrb[25].mxu0  ;;  %v871_v4 = vpop.f32.mrb[25].mxu1 }
 0x146   :  { %v744_v5 = vpop.f32.mrb[26].mxu0  ;;  %v872_v6 = vpop.f32.mrb[26].mxu1 }
 0x147   :  { %v1163_v7 = vadd.f32 %v2443_v17, %v744_v5  ;;  %v1195_v8 = vadd.f32 %v2443_v17, %v872_v6  ;;  %v746_v9 = vpop.f32.mrb[27].mxu0  ;;  %v874_v10 = vpop.f32.mrb[27].mxu1  ;;  %v1226_v11 = vmax.f32 %v1162_v1, 0.0  ;;  %v1258_v12 = vmax.f32 %v1194_v2, 0.0 }
 0x149   :  { %v1227_v13 = vmax.f32 %v1163_v7, 0.0  ;;  %v1259_v14 = vmax.f32 %v1195_v8, 0.0 }
 0x14b   :  { %v1844_v15 = vpack.c.bf16 %v1227_v13, %v1226_v11  ;;  %v1924_v16 = vpack.c.bf16 %v1259_v14, %v1258_v12 }
 0x14c   :  { %v749_v18 = vpop.f32.mrb[28].mxu0  ;;  %v877_v19 = vpop.f32.mrb[28].mxu1 }
 0x14d   :  { %1976 = vst [vmem:[%s2608_s3 + $0x30] sm:$0xff] %v1844_v15   ;;  %1992 = vst [vmem:[%s2608_s3 + $0xb0] sm:$0xff] %v1924_v16   ;;  %v1164_v20 = vadd.f32 %v2443_v17, %v749_v18  ;;  %v1196_v21 = vadd.f32 %v2443_v17, %v877_v19  ;;  %v751_v22 = vpop.f32.mrb[29].mxu0  ;;  %v879_v23 = vpop.f32.mrb[29].mxu1 }
 0x14e   :  { %v752_v24 = vpop.f32.mrb[30].mxu0  ;;  %v880_v25 = vpop.f32.mrb[30].mxu1 }
 0x14f   :  { %v1165_v26 = vadd.f32 %v2443_v17, %v752_v24  ;;  %v1197_v27 = vadd.f32 %v2443_v17, %v880_v25  ;;  %v754_v28 = vpop.f32.mrb[31].mxu0  ;;  %v882_v29 = vpop.f32.mrb[31].mxu1  ;;  %v1228_v30 = vmax.f32 %v1164_v20, 0.0  ;;  %v1260_v31 = vmax.f32 %v1196_v21, 0.0 }
 0x151   :  { %v1229_v32 = vmax.f32 %v1165_v26, 0.0  ;;  %v1261_v33 = vmax.f32 %v1197_v27, 0.0 }
 0x153   :  { %v1849_v34 = vpack.c.bf16 %v1229_v32, %v1228_v30  ;;  %v1929_v35 = vpack.c.bf16 %v1261_v33, %v1260_v31 }
 0x154   :  { %v757_v36 = vpop.f32.mrb[32].mxu0  ;;  %v885_v37 = vpop.f32.mrb[32].mxu1 }
 0x155   :  { %1977 = vst [vmem:[%s2608_s3 + $0x38] sm:$0xff] %v1849_v34   ;;  %1993 = vst [vmem:[%s2608_s3 + $0xb8] sm:$0xff] %v1929_v35   ;;  %v1166_v38 = vadd.f32 %v2443_v17, %v757_v36  ;;  %v1198_v39 = vadd.f32 %v2443_v17, %v885_v37  ;;  %v759_v40 = vpop.f32.mrb[33].mxu0  ;;  %v887_v41 = vpop.f32.mrb[33].mxu1 }
 0x156   :  { %v760_v42 = vpop.f32.mrb[34].mxu0  ;;  %v888_v43 = vpop.f32.mrb[34].mxu1 }
 0x157   :  { %v1167_v44 = vadd.f32 %v2443_v17, %v760_v42  ;;  %v1199_v45 = vadd.f32 %v2443_v17, %v888_v43  ;;  %v762_v46 = vpop.f32.mrb[35].mxu0  ;;  %v890_v47 = vpop.f32.mrb[35].mxu1  ;;  %v1230_v48 = vmax.f32 %v1166_v38, 0.0  ;;  %v1262_v49 = vmax.f32 %v1198_v39, 0.0 }
 0x159   :  { %v1231_v50 = vmax.f32 %v1167_v44, 0.0  ;;  %v1263_v51 = vmax.f32 %v1199_v45, 0.0 }
 0x15b   :  { %v1854_v52 = vpack.c.bf16 %v1231_v50, %v1230_v48  ;;  %v1934_v53 = vpack.c.bf16 %v1263_v51, %v1262_v49 }
 0x15c   :  { %v765_v54 = vpop.f32.mrb[36].mxu0  ;;  %v893_v55 = vpop.f32.mrb[36].mxu1 }
 0x15d   :  { %1978 = vst [vmem:[%s2608_s3 + $0x40] sm:$0xff] %v1854_v52   ;;  %1994 = vst [vmem:[%s2608_s3 + $0xc0] sm:$0xff] %v1934_v53   ;;  %v1168_v56 = vadd.f32 %v2443_v17, %v765_v54  ;;  %v1200_v57 = vadd.f32 %v2443_v17, %v893_v55  ;;  %v767_v58 = vpop.f32.mrb[37].mxu0  ;;  %v895_v59 = vpop.f32.mrb[37].mxu1 }
 0x15e   :  { %v768_v60 = vpop.f32.mrb[38].mxu0  ;;  %v896_v61 = vpop.f32.mrb[38].mxu1 }
 0x15f   :  { %v1169_v62 = vadd.f32 %v2443_v17, %v768_v60  ;;  %v1201_v63 = vadd.f32 %v2443_v17, %v896_v61  ;;  %v770_v0 = vpop.f32.mrb[39].mxu0  ;;  %v898_v1 = vpop.f32.mrb[39].mxu1  ;;  %v1232_v2 = vmax.f32 %v1168_v56, 0.0  ;;  %v1264_v3 = vmax.f32 %v1200_v57, 0.0 }
 0x161   :  { %v1233_v4 = vmax.f32 %v1169_v62, 0.0  ;;  %v1265_v5 = vmax.f32 %v1201_v63, 0.0 }
 0x163   :  { %v1859_v6 = vpack.c.bf16 %v1233_v4, %v1232_v2  ;;  %v1939_v7 = vpack.c.bf16 %v1265_v5, %v1264_v3 }
 0x164   :  { %v773_v8 = vpop.f32.mrb[40].mxu0  ;;  %v901_v9 = vpop.f32.mrb[40].mxu1 }
 0x165   :  { %1979 = vst [vmem:[%s2608_s3 + $0x48] sm:$0xff] %v1859_v6   ;;  %1995 = vst [vmem:[%s2608_s3 + $0xc8] sm:$0xff] %v1939_v7   ;;  %v1170_v10 = vadd.f32 %v2443_v17, %v773_v8  ;;  %v1202_v11 = vadd.f32 %v2443_v17, %v901_v9  ;;  %v775_v12 = vpop.f32.mrb[41].mxu0  ;;  %v903_v13 = vpop.f32.mrb[41].mxu1 }
 0x166   :  { %v776_v14 = vpop.f32.mrb[42].mxu0  ;;  %v904_v15 = vpop.f32.mrb[42].mxu1 }
 0x167   :  { %v1171_v16 = vadd.f32 %v2443_v17, %v776_v14  ;;  %v1203_v18 = vadd.f32 %v2443_v17, %v904_v15  ;;  %v778_v19 = vpop.f32.mrb[43].mxu0  ;;  %v906_v20 = vpop.f32.mrb[43].mxu1  ;;  %v1234_v21 = vmax.f32 %v1170_v10, 0.0  ;;  %v1266_v22 = vmax.f32 %v1202_v11, 0.0 }
 0x169   :  { %v1235_v23 = vmax.f32 %v1171_v16, 0.0  ;;  %v1267_v24 = vmax.f32 %v1203_v18, 0.0 }
 0x16b   :  { %v1864_v25 = vpack.c.bf16 %v1235_v23, %v1234_v21  ;;  %v1944_v26 = vpack.c.bf16 %v1267_v24, %v1266_v22 }
 0x16c   :  { %v781_v27 = vpop.f32.mrb[44].mxu0  ;;  %v909_v28 = vpop.f32.mrb[44].mxu1 }
 0x16d   :  { %1980 = vst [vmem:[%s2608_s3 + $0x50] sm:$0xff] %v1864_v25   ;;  %1996 = vst [vmem:[%s2608_s3 + $0xd0] sm:$0xff] %v1944_v26   ;;  %v1172_v29 = vadd.f32 %v2443_v17, %v781_v27  ;;  %v1204_v30 = vadd.f32 %v2443_v17, %v909_v28  ;;  %v783_v31 = vpop.f32.mrb[45].mxu0  ;;  %v911_v32 = vpop.f32.mrb[45].mxu1 }
 0x16e   :  { %v784_v33 = vpop.f32.mrb[46].mxu0  ;;  %v912_v34 = vpop.f32.mrb[46].mxu1 }
 0x16f   :  { %v1173_v35 = vadd.f32 %v2443_v17, %v784_v33  ;;  %v1205_v36 = vadd.f32 %v2443_v17, %v912_v34  ;;  %v786_v37 = vpop.f32.mrb[47].mxu0  ;;  %v914_v38 = vpop.f32.mrb[47].mxu1  ;;  %v1236_v39 = vmax.f32 %v1172_v29, 0.0  ;;  %v1268_v40 = vmax.f32 %v1204_v30, 0.0 }
 0x171   :  { %v1237_v41 = vmax.f32 %v1173_v35, 0.0  ;;  %v1269_v42 = vmax.f32 %v1205_v36, 0.0 }
 0x173   :  { %v1869_v43 = vpack.c.bf16 %v1237_v41, %v1236_v39  ;;  %v1949_v44 = vpack.c.bf16 %v1269_v42, %v1268_v40 }
 0x174   :  { %v789_v45 = vpop.f32.mrb[48].mxu0  ;;  %v917_v46 = vpop.f32.mrb[48].mxu1 }
 0x175   :  { %1981 = vst [vmem:[%s2608_s3 + $0x58] sm:$0xff] %v1869_v43   ;;  %1997 = vst [vmem:[%s2608_s3 + $0xd8] sm:$0xff] %v1949_v44   ;;  %v1174_v47 = vadd.f32 %v2443_v17, %v789_v45  ;;  %v1206_v48 = vadd.f32 %v2443_v17, %v917_v46  ;;  %v791_v49 = vpop.f32.mrb[49].mxu0  ;;  %v919_v50 = vpop.f32.mrb[49].mxu1 }
 0x176   :  { %v792_v51 = vpop.f32.mrb[50].mxu0  ;;  %v920_v52 = vpop.f32.mrb[50].mxu1 }
 0x177   :  { %v1175_v53 = vadd.f32 %v2443_v17, %v792_v51  ;;  %v1207_v54 = vadd.f32 %v2443_v17, %v920_v52  ;;  %v794_v55 = vpop.f32.mrb[51].mxu0  ;;  %v922_v56 = vpop.f32.mrb[51].mxu1  ;;  %v1238_v57 = vmax.f32 %v1174_v47, 0.0  ;;  %v1270_v58 = vmax.f32 %v1206_v48, 0.0 }
 0x179   :  { %v1239_v59 = vmax.f32 %v1175_v53, 0.0  ;;  %v1271_v60 = vmax.f32 %v1207_v54, 0.0 }
 0x17b   :  { %v1874_v61 = vpack.c.bf16 %v1239_v59, %v1238_v57  ;;  %v1954_v62 = vpack.c.bf16 %v1271_v60, %v1270_v58 }
 0x17c   :  { %v797_v63 = vpop.f32.mrb[52].mxu0  ;;  %v925_v0 = vpop.f32.mrb[52].mxu1 }
 0x17d   :  { %1982 = vst [vmem:[%s2608_s3 + $0x60] sm:$0xff] %v1874_v61   ;;  %1998 = vst [vmem:[%s2608_s3 + $0xe0] sm:$0xff] %v1954_v62   ;;  %v1176_v1 = vadd.f32 %v2443_v17, %v797_v63  ;;  %v1208_v2 = vadd.f32 %v2443_v17, %v925_v0  ;;  %v799_v3 = vpop.f32.mrb[53].mxu0  ;;  %v927_v4 = vpop.f32.mrb[53].mxu1 }
 0x17e   :  { %v800_v5 = vpop.f32.mrb[54].mxu0  ;;  %v928_v6 = vpop.f32.mrb[54].mxu1 }
 0x17f   :  { %v1177_v7 = vadd.f32 %v2443_v17, %v800_v5  ;;  %v1209_v8 = vadd.f32 %v2443_v17, %v928_v6  ;;  %v802_v9 = vpop.f32.mrb[55].mxu0  ;;  %v930_v10 = vpop.f32.mrb[55].mxu1  ;;  %v1240_v11 = vmax.f32 %v1176_v1, 0.0  ;;  %v1272_v12 = vmax.f32 %v1208_v2, 0.0 }
 0x181   :  { %v1241_v13 = vmax.f32 %v1177_v7, 0.0  ;;  %v1273_v14 = vmax.f32 %v1209_v8, 0.0 }
 0x183   :  { %v1879_v15 = vpack.c.bf16 %v1241_v13, %v1240_v11  ;;  %v1959_v16 = vpack.c.bf16 %v1273_v14, %v1272_v12 }
 0x184   :  { %v805_v18 = vpop.f32.mrb[56].mxu0  ;;  %v933_v19 = vpop.f32.mrb[56].mxu1 }
 0x185   :  { %1983 = vst [vmem:[%s2608_s3 + $0x68] sm:$0xff] %v1879_v15   ;;  %1999 = vst [vmem:[%s2608_s3 + $0xe8] sm:$0xff] %v1959_v16   ;;  %v1178_v20 = vadd.f32 %v2443_v17, %v805_v18  ;;  %v1210_v21 = vadd.f32 %v2443_v17, %v933_v19  ;;  %v807_v22 = vpop.f32.mrb[57].mxu0  ;;  %v935_v23 = vpop.f32.mrb[57].mxu1 }
 0x186   :  { %v808_v24 = vpop.f32.mrb[58].mxu0  ;;  %v936_v25 = vpop.f32.mrb[58].mxu1 }
 0x187   :  { %v1179_v26 = vadd.f32 %v2443_v17, %v808_v24  ;;  %v1211_v27 = vadd.f32 %v2443_v17, %v936_v25  ;;  %v810_v28 = vpop.f32.mrb[59].mxu0  ;;  %v938_v29 = vpop.f32.mrb[59].mxu1  ;;  %v1242_v30 = vmax.f32 %v1178_v20, 0.0  ;;  %v1274_v31 = vmax.f32 %v1210_v21, 0.0 }
 0x189   :  { %v1243_v32 = vmax.f32 %v1179_v26, 0.0  ;;  %v1275_v33 = vmax.f32 %v1211_v27, 0.0 }
 0x18b   :  { %v1884_v34 = vpack.c.bf16 %v1243_v32, %v1242_v30  ;;  %v1964_v35 = vpack.c.bf16 %v1275_v33, %v1274_v31 }
 0x18c   :  { %v813_v36 = vpop.f32.mrb[60].mxu0  ;;  %v941_v37 = vpop.f32.mrb[60].mxu1 }
 0x18d   :  { %1984 = vst [vmem:[%s2608_s3 + $0x70] sm:$0xff] %v1884_v34   ;;  %2000 = vst [vmem:[%s2608_s3 + $0xf0] sm:$0xff] %v1964_v35   ;;  %v1180_v38 = vadd.f32 %v2443_v17, %v813_v36  ;;  %v1212_v39 = vadd.f32 %v2443_v17, %v941_v37  ;;  %v815_v40 = vpop.f32.mrb[61].mxu0  ;;  %v943_v41 = vpop.f32.mrb[61].mxu1 }
 0x18e   :  { %v816_v42 = vpop.f32.mrb[62].mxu0  ;;  %v944_v43 = vpop.f32.mrb[62].mxu1 }
 0x18f   :  { %v1181_v44 = vadd.f32 %v2443_v17, %v816_v42  ;;  %v1213_v45 = vadd.f32 %v2443_v17, %v944_v43  ;;  %v818_v46 = vpop.f32.mrb[63].mxu0  ;;  %v946_v47 = vpop.f32.mrb[63].mxu1  ;;  %v1244_v48 = vmax.f32 %v1180_v38, 0.0  ;;  %v1276_v49 = vmax.f32 %v1212_v39, 0.0 }
 0x191   :  { %v1245_v50 = vmax.f32 %v1181_v44, 0.0  ;;  %v1277_v51 = vmax.f32 %v1213_v45, 0.0 }
 0x193   :  { %v1889_v52 = vpack.c.bf16 %v1245_v50, %v1244_v48  ;;  %v1969_v53 = vpack.c.bf16 %v1277_v51, %v1276_v49 }
 0x195   :  { %1985 = vst [vmem:[%s2608_s3 + $0x78] sm:$0xff] %v1889_v52   ;;  %2001 = vst [vmem:[%s2608_s3 + $0xf8] sm:$0xff] %v1969_v53  }

// kernel: global_generator_forward.12
= control target key start
LH: loop header
LB: loop body
LE: loop exit
PB: predicated region body
PF: predicated region fallthrough
CT: control target
= control target key end

     0   :  { %s939_s1 = inlined_call_operand.vmem [shape: bf16[256,128], index: 1, kind: input, shape index: {}]   ;;  %s940_s0 = inlined_call_operand.vmem [shape: bf16[128,256], index: 0, kind: input, shape index: {}]   ;;  %s941_s2 = inlined_call_operand.vmem [shape: f32[1,128], index: 2, kind: input, shape index: {}]   ;;  %s942_s3 = inlined_call_operand.vmem [shape: bf16[128,128], index: 3, kind: output, shape index: {}]  }
   0x1   :  { %v738_v0 = vld [vmem:[%s939_s1 + $0x40] sm:$0xff]   ;;  %v740_v2 = vld [vmem:[%s939_s1 + $0x48] sm:$0xff]   ;;  %v742_v4 = vld [vmem:[%s939_s1 + $0x50] sm:$0xff]  }
   0x2   :  { %v739_v1 = vld [vmem:[%s939_s1] sm:$0xff]   ;;  %658 = vmatprep.subr.bf16.mxu0 %v738_v0  ;;  %722 = vmatprep.subr.bf16.mxu1 %v738_v0  ;;  %v741_v3 = vld [vmem:[%s939_s1 + $0x8] sm:$0xff]   ;;  %v743_v5 = vld [vmem:[%s939_s1 + $0x10] sm:$0xff]  }
   0x3   :  { %659 = vmatpush3.bf16.msra.mxu0 %v739_v1  ;;  %730 = vmatpush3.bf16.msra.mxu1 %v739_v1  ;;  %v744_v6 = vld [vmem:[%s939_s1 + $0x58] sm:$0xff]   ;;  %v746_v8 = vld [vmem:[%s939_s1 + $0x60] sm:$0xff]   ;;  %v748_v10 = vld [vmem:[%s939_s1 + $0x68] sm:$0xff]  }
   0x4   :  { %660 = vmatprep.subr.bf16.mxu0 %v740_v2  ;;  %723 = vmatprep.subr.bf16.mxu1 %v740_v2  ;;  %v745_v7 = vld [vmem:[%s939_s1 + $0x18] sm:$0xff]   ;;  %v747_v9 = vld [vmem:[%s939_s1 + $0x20] sm:$0xff]   ;;  %v749_v13 = vld [vmem:[%s939_s1 + $0x28] sm:$0xff]  }
   0x5   :  { %v756_v11 = vld [vmem:[%s940_s0 + $0x4] ss:$8 sps:$4 sm:$0xff]   ;;  %v750_v14 = vld [vmem:[%s939_s1 + $0x70] sm:$0xff]   ;;  %v752_v16 = vld [vmem:[%s939_s1 + $0x78] sm:$0xff]  }
   0x6   :  { %v759_v12 = vld [vmem:[%s940_s0 + $0x44] ss:$8 sps:$4 sm:$0xff]   ;;  %307 = vmatprep.mubr.bf16.mxu0 %v756_v11  ;;  %v751_v15 = vld [vmem:[%s939_s1 + $0x30] sm:$0xff]   ;;  %v753_v17 = vld [vmem:[%s939_s1 + $0x38] sm:$0xff]  }
   0x7   :  { %661 = vmatpush3.bf16.msra.mxu0 %v741_v3  ;;  %731 = vmatpush3.bf16.msra.mxu1 %v741_v3  ;;  %v754_v18 = vld [vmem:[%s940_s0] ss:$8 sps:$4 sm:$0xff]   ;;  %v760_v20 = vld [vmem:[%s940_s0 + $0x14] ss:$8 sps:$4 sm:$0xff]   ;;  %v764_v22 = vld [vmem:[%s940_s0 + $0x10] ss:$8 sps:$4 sm:$0xff]  }
   0x8   :  { %662 = vmatprep.subr.bf16.mxu0 %v742_v4  ;;  %724 = vmatprep.subr.bf16.mxu1 %v742_v4  ;;  %v757_v19 = vld [vmem:[%s940_s0 + $0x40] ss:$8 sps:$4 sm:$0xff]   ;;  %v762_v21 = vld [vmem:[%s940_s0 + $0x54] ss:$8 sps:$4 sm:$0xff]   ;;  %v765_v23 = vld [vmem:[%s940_s0 + $0x50] ss:$8 sps:$4 sm:$0xff]  }
   0x9   :  { %339 = vmatprep.mubr.bf16.mxu1 %v759_v12  ;;  %v766_v24 = vld [vmem:[%s940_s0 + $0x24] ss:$8 sps:$4 sm:$0xff]   ;;  %v770_v26 = vld [vmem:[%s940_s0 + $0x20] ss:$8 sps:$4 sm:$0xff]   ;;  %v772_v28 = vld [vmem:[%s940_s0 + $0x34] ss:$8 sps:$4 sm:$0xff]  }
   0xa   :  { %v768_v25 = vld [vmem:[%s940_s0 + $0x64] ss:$8 sps:$4 sm:$0xff]   ;;  %v771_v27 = vld [vmem:[%s940_s0 + $0x60] ss:$8 sps:$4 sm:$0xff]   ;;  %v774_v29 = vld [vmem:[%s940_s0 + $0x74] ss:$8 sps:$4 sm:$0xff]  }
   0xb   :  { %663 = vmatpush3.bf16.msra.mxu0 %v743_v5  ;;  %732 = vmatpush3.bf16.msra.mxu1 %v743_v5  ;;  %v776_v30 = vld [vmem:[%s940_s0 + $0x30] ss:$8 sps:$4 sm:$0xff]   ;;  %v897_v35 = vld [vmem:[%s941_s2] ss:$0 sm:$0xff] }
   0xc   :  { %664 = vmatprep.subr.bf16.mxu0 %v744_v6  ;;  %725 = vmatprep.subr.bf16.mxu1 %v744_v6  ;;  %v777_v31 = vld [vmem:[%s940_s0 + $0x70] ss:$8 sps:$4 sm:$0xff]  }
   0xf   :  { %665 = vmatpush3.bf16.msra.mxu0 %v745_v7  ;;  %733 = vmatpush3.bf16.msra.mxu1 %v745_v7 }
  0x10   :  { %666 = vmatprep.subr.bf16.mxu0 %v746_v8  ;;  %726 = vmatprep.subr.bf16.mxu1 %v746_v8 }
  0x13   :  { %667 = vmatpush3.bf16.msra.mxu0 %v747_v9  ;;  %734 = vmatpush3.bf16.msra.mxu1 %v747_v9 }
  0x14   :  { %668 = vmatprep.subr.bf16.mxu0 %v748_v10  ;;  %727 = vmatprep.subr.bf16.mxu1 %v748_v10 }
  0x17   :  { %669 = vmatpush3.bf16.msra.mxu0 %v749_v13  ;;  %735 = vmatpush3.bf16.msra.mxu1 %v749_v13 }
  0x18   :  { %670 = vmatprep.subr.bf16.mxu0 %v750_v14  ;;  %728 = vmatprep.subr.bf16.mxu1 %v750_v14 }
  0x1b   :  { %671 = vmatpush3.bf16.msra.mxu0 %v751_v15  ;;  %736 = vmatpush3.bf16.msra.mxu1 %v751_v15 }
  0x1c   :  { %672 = vmatprep.subr.bf16.mxu0 %v752_v16  ;;  %729 = vmatprep.subr.bf16.mxu1 %v752_v16 }
  0x1f   :  { %673 = vmatpush3.bf16.msra.mxu0 %v753_v17  ;;  %737 = vmatpush3.bf16.msra.mxu1 %v753_v17 }
  0x22   :  { %308 = vmatmul.mubr.bf16.vlgmr.msra.gmra.mrb[0].mxu0 %v754_v18  ;;  %340 = vmatmul.mubr.bf16.vlgmr.msra.gmra.mrb[0].mxu1 %v757_v19 }
  0x23   :  { %315 = vmatprep.mubr.bf16.mxu0 %v760_v20  ;;  %347 = vmatprep.mubr.bf16.mxu1 %v762_v21 }
  0x2a   :  { %316 = vmatmul.mubr.bf16.gmra.mrb[4].mxu0 %v764_v22  ;;  %348 = vmatmul.mubr.bf16.gmra.mrb[4].mxu1 %v765_v23 }
  0x2b   :  { %323 = vmatprep.mubr.bf16.mxu0 %v766_v24  ;;  %355 = vmatprep.mubr.bf16.mxu1 %v768_v25 }
  0x32   :  { %324 = vmatmul.mubr.bf16.gmra.mrb[8].mxu0 %v770_v26  ;;  %356 = vmatmul.mubr.bf16.gmra.mrb[8].mxu1 %v771_v27 }
  0x33   :  { %331 = vmatprep.mubr.bf16.mxu0 %v772_v28  ;;  %363 = vmatprep.mubr.bf16.mxu1 %v774_v29 }
  0x3a   :  { %332 = vmatmul.mubr.bf16.gmra.mrb[12].mxu0 %v776_v30  ;;  %364 = vmatmul.mubr.bf16.gmra.mrb[12].mxu1 %v777_v31 }
  0xf5   :  { %v674_v32 = vpop.f32.mrb[0].mxu0  ;;  %v698_v33 = vpop.f32.mrb[0].mxu1 }
  0xf6   :  { %v675_v34 = vpop.f32.mrb[1].mxu0  ;;  %v699_v36 = vpop.f32.mrb[1].mxu1 }
  0xf7   :  { %v676_v37 = vadd.f32 %v675_v34, %v674_v32  ;;  %v700_v38 = vadd.f32 %v699_v36, %v698_v33  ;;  %v677_v39 = vpop.f32.mrb[2].mxu0  ;;  %v701_v40 = vpop.f32.mrb[2].mxu1 }
  0xf8   :  { %v678_v41 = vpop.f32.mrb[3].mxu0  ;;  %v702_v42 = vpop.f32.mrb[3].mxu1 }
  0xf9   :  { %v430_v43 = vadd.f32 %v676_v37, %v897_v35  ;;  %v438_v44 = vadd.f32 %v700_v38, %v897_v35  ;;  %v679_v45 = vadd.f32 %v678_v41, %v677_v39  ;;  %v703_v46 = vadd.f32 %v702_v42, %v701_v40 }
  0xfb   :  { %v431_v47 = vadd.f32 %v679_v45, %v897_v35  ;;  %v439_v48 = vadd.f32 %v703_v46, %v897_v35  ;;  %v446_v49 = vmax.f32 %v430_v43, 0.0  ;;  %v454_v50 = vmax.f32 %v438_v44, 0.0 }
  0xfd   :  { %v447_v51 = vmax.f32 %v431_v47, 0.0  ;;  %v455_v52 = vmax.f32 %v439_v48, 0.0  ;;  %v680_v53 = vpop.f32.mrb[4].mxu0  ;;  %v704_v54 = vpop.f32.mrb[4].mxu1 }
  0xfe   :  { %v681_v55 = vpop.f32.mrb[5].mxu0  ;;  %v705_v56 = vpop.f32.mrb[5].mxu1 }
  0xff   :  { %v614_v57 = vpack.c.bf16 %v447_v51, %v446_v49  ;;  %v634_v58 = vpack.c.bf16 %v455_v52, %v454_v50  ;;  %v682_v59 = vadd.f32 %v681_v55, %v680_v53  ;;  %v706_v60 = vadd.f32 %v705_v56, %v704_v54  ;;  %v683_v61 = vpop.f32.mrb[6].mxu0  ;;  %v707_v62 = vpop.f32.mrb[6].mxu1 }
 0x100   :  { %v684_v63 = vpop.f32.mrb[7].mxu0  ;;  %v708_v0 = vpop.f32.mrb[7].mxu1 }
 0x101   :  { %615 = vst [vmem:[%s942_s3] sm:$0xff] %v614_v57   ;;  %654 = vst [vmem:[%s942_s3 + $0x20] sm:$0xff] %v634_v58   ;;  %v432_v1 = vadd.f32 %v682_v59, %v897_v35  ;;  %v440_v2 = vadd.f32 %v706_v60, %v897_v35  ;;  %v685_v3 = vadd.f32 %v684_v63, %v683_v61 }
 0x102   :  { %v709_v4 = vadd.f32 %v708_v0, %v707_v62 }
 0x103   :  { %v433_v5 = vadd.f32 %v685_v3, %v897_v35  ;;  %v448_v7 = vmax.f32 %v432_v1, 0.0  ;;  %v456_v8 = vmax.f32 %v440_v2, 0.0 }
 0x104   :  { %v441_v6 = vadd.f32 %v709_v4, %v897_v35 }
 0x105   :  { %v449_v9 = vmax.f32 %v433_v5, 0.0  ;;  %v686_v11 = vpop.f32.mrb[8].mxu0  ;;  %v710_v12 = vpop.f32.mrb[8].mxu1 }
 0x106   :  { %v457_v10 = vmax.f32 %v441_v6, 0.0  ;;  %v687_v13 = vpop.f32.mrb[9].mxu0  ;;  %v711_v14 = vpop.f32.mrb[9].mxu1 }
 0x107   :  { %v619_v15 = vpack.c.bf16 %v449_v9, %v448_v7  ;;  %v688_v17 = vadd.f32 %v687_v13, %v686_v11  ;;  %v712_v18 = vadd.f32 %v711_v14, %v710_v12  ;;  %v689_v19 = vpop.f32.mrb[10].mxu0  ;;  %v713_v20 = vpop.f32.mrb[10].mxu1 }
 0x108   :  { %v639_v16 = vpack.c.bf16 %v457_v10, %v456_v8  ;;  %v690_v21 = vpop.f32.mrb[11].mxu0  ;;  %v714_v22 = vpop.f32.mrb[11].mxu1 }
 0x109   :  { %651 = vst [vmem:[%s942_s3 + $0x8] sm:$0xff] %v619_v15   ;;  %v434_v23 = vadd.f32 %v688_v17, %v897_v35  ;;  %v442_v24 = vadd.f32 %v712_v18, %v897_v35  ;;  %v691_v25 = vadd.f32 %v690_v21, %v689_v19  ;;  %v715_v26 = vadd.f32 %v714_v22, %v713_v20 }
 0x10a   :  { %655 = vst [vmem:[%s942_s3 + $0x28] sm:$0xff] %v639_v16  }
 0x10b   :  { %v435_v27 = vadd.f32 %v691_v25, %v897_v35  ;;  %v443_v28 = vadd.f32 %v715_v26, %v897_v35  ;;  %v450_v29 = vmax.f32 %v434_v23, 0.0  ;;  %v458_v30 = vmax.f32 %v442_v24, 0.0 }
 0x10d   :  { %v451_v31 = vmax.f32 %v435_v27, 0.0  ;;  %v459_v32 = vmax.f32 %v443_v28, 0.0  ;;  %v692_v33 = vpop.f32.mrb[12].mxu0  ;;  %v716_v34 = vpop.f32.mrb[12].mxu1 }
 0x10e   :  { %v693_v36 = vpop.f32.mrb[13].mxu0  ;;  %v717_v37 = vpop.f32.mrb[13].mxu1 }
 0x10f   :  { %v624_v38 = vpack.c.bf16 %v451_v31, %v450_v29  ;;  %v644_v39 = vpack.c.bf16 %v459_v32, %v458_v30  ;;  %v694_v40 = vadd.f32 %v693_v36, %v692_v33  ;;  %v718_v41 = vadd.f32 %v717_v37, %v716_v34  ;;  %v695_v42 = vpop.f32.mrb[14].mxu0  ;;  %v719_v43 = vpop.f32.mrb[14].mxu1 }
 0x110   :  { %v696_v44 = vpop.f32.mrb[15].mxu0  ;;  %v720_v45 = vpop.f32.mrb[15].mxu1 }
 0x111   :  { %652 = vst [vmem:[%s942_s3 + $0x10] sm:$0xff] %v624_v38   ;;  %656 = vst [vmem:[%s942_s3 + $0x30] sm:$0xff] %v644_v39   ;;  %v436_v46 = vadd.f32 %v694_v40, %v897_v35  ;;  %v444_v47 = vadd.f32 %v718_v41, %v897_v35  ;;  %v697_v48 = vadd.f32 %v696_v44, %v695_v42 }
 0x112   :  { %v721_v49 = vadd.f32 %v720_v45, %v719_v43 }
 0x113   :  { %v437_v50 = vadd.f32 %v697_v48, %v897_v35  ;;  %v452_v52 = vmax.f32 %v436_v46, 0.0  ;;  %v460_v53 = vmax.f32 %v444_v47, 0.0 }
 0x114   :  { %v445_v51 = vadd.f32 %v721_v49, %v897_v35 }
 0x115   :  { %v453_v54 = vmax.f32 %v437_v50, 0.0 }
 0x116   :  { %v461_v55 = vmax.f32 %v445_v51, 0.0 }
 0x117   :  { %v629_v56 = vpack.c.bf16 %v453_v54, %v452_v52 }
 0x118   :  { %v649_v57 = vpack.c.bf16 %v461_v55, %v460_v53 }
 0x119   :  { %653 = vst [vmem:[%s942_s3 + $0x18] sm:$0xff] %v629_v56  }
 0x11a   :  { %657 = vst [vmem:[%s942_s3 + $0x38] sm:$0xff] %v649_v57  }

// kernel: tile.23
= control target key start
LH: loop header
LB: loop body
LE: loop exit
PB: predicated region body
PF: predicated region fallthrough
CT: control target
= control target key end

     0   :  { %s22_s0 = inlined_call_operand.vmem [shape: f32[16], index: 0, kind: input, shape index: {}]   ;;  %s23_s1 = inlined_call_operand.vmem [shape: f32[4,16], index: 1, kind: output, shape index: {}]  }
   0x1   :  { %v4_v0 = vld [vmem:[%s22_s0] ss:$0 sm:$0xff] }
   0x2   :  { %5 = vst [vmem:[%s23_s1] sm:$0xf] %v4_v0 }

// kernel: mul.82
= control target key start
LH: loop header
LB: loop body
LE: loop exit
PB: predicated region body
PF: predicated region fallthrough
CT: control target
= control target key end

     0   :  { %vm7_vm0 = vcmask 130048   ;;  %s37_s8 = smov 16   ;;  %s38_s9 = smov 32   ;;  %vm13_vm1 = vcmask 523648   ;;  %vm19_vm2 = vcmask 392448   ;;  %vm25_vm3 = vcmask 261248   ;;  %s55_s0 = inlined_call_operand.vmem [shape: f32[4,16], index: 0, kind: input, shape index: {}]   ;;  %s56_s1 = inlined_call_operand.vmem [shape: f32[64], index: 1, kind: output, shape index: {}]  }
   0x1   :  { %v4_v0 = vld [vmem:[%s55_s0] sm:$0xf]  ;;  %s36_s0 = smov 48  }
   0x2   :  { %5 = vst [vmem:[#allocation1] sm:$0xf] %v4_v0 }
   0x9   :  { %v10_v1 = vld [vmem:[#allocation1 + $0x3] sm:$0x1]   ;;  %v22_v2 = vld [vmem:[#allocation1 + $0x1] sm:$0x1]   ;;  %v6_v3 = vld [vmem:[#allocation1] sm:$0x1]  }
   0xa   :  { %11 = vrot.lane.b32.xlu0 %v10_v1, %s36_s0  ;;  %23 = vrot.lane.b32.xlu1 %v22_v2, %s37_s8  ;;  %v16_v4 = vld [vmem:[#allocation1 + $0x2] sm:$0x1]   ;;  %8 = vst.msk [vmem:[#allocation0] sm:$0x1] %vm7_vm0, %v6_v3  }
   0xe   :  { %17 = vrot.lane.b32.xlu0 %v16_v4, %s38_s9 }
  0x7c   :  { %v12_v5 = vpop.permute.xlu0 %11   ;;  %v24_v6 = vpop.permute.xlu1 %23  }
  0x7d   :  { %14 = vst.msk [vmem:[#allocation0] sm:$0x1] %vm13_vm1, %v12_v5  }
  0x80   :  { %v18_v7 = vpop.permute.xlu0 %17  }
  0x81   :  { %20 = vst.msk [vmem:[#allocation0] sm:$0x1] %vm19_vm2, %v18_v7  }
  0x82   :  { %26 = vst.msk [vmem:[#allocation0] sm:$0x1] %vm25_vm3, %v24_v6  }
  0x89   :  { %v30_v8 = vld [vmem:[#allocation0] sm:$0x1] }
  0x8a   :  { %32 = vst [vmem:[%s56_s1] sm:$0x1] %v30_v8 }

// kernel: global_generator_forward.13
= control target key start
LH: loop header
LB: loop body
LE: loop exit
PB: predicated region body
PF: predicated region fallthrough
CT: control target
= control target key end

     0   :  { %s1276_s1 = inlined_call_operand.vmem [shape: bf16[384,128], index: 1, kind: input, shape index: {}]   ;;  %s1277_s0 = inlined_call_operand.vmem [shape: bf16[128,384], index: 0, kind: input, shape index: {}]   ;;  %s1278_s2 = inlined_call_operand.vmem [shape: f32[1,128], index: 2, kind: input, shape index: {}]   ;;  %s1279_s3 = inlined_call_operand.vmem [shape: bf16[128,128], index: 3, kind: output, shape index: {}]  }
   0x1   :  { %v1011_v0 = vld [vmem:[%s1276_s1 + $0x40] sm:$0xff]   ;;  %v1014_v3 = vld [vmem:[%s1276_s1 + $0x48] sm:$0xff]   ;;  %v1017_v6 = vld [vmem:[%s1276_s1 + $0x50] sm:$0xff]  }
   0x2   :  { %v1012_v1 = vld [vmem:[%s1276_s1] sm:$0xff]   ;;  %899 = vmatprep.subr.bf16.mxu0 %v1011_v0  ;;  %v1015_v4 = vld [vmem:[%s1276_s1 + $0x8] sm:$0xff]   ;;  %v1018_v7 = vld [vmem:[%s1276_s1 + $0x10] sm:$0xff]  }
   0x3   :  { %v1013_v2 = vld [vmem:[%s1276_s1 + $0x80] sm:$0xff]   ;;  %900 = vmatpush3.bf16.msra.mxu0 %v1012_v1  ;;  %v1016_v5 = vld [vmem:[%s1276_s1 + $0x88] sm:$0xff]   ;;  %v1019_v8 = vld [vmem:[%s1276_s1 + $0x90] sm:$0xff]  }
   0x4   :  { %979 = vmatprep.subr.bf16.mxu1 %v1013_v2  ;;  %901 = vmatprep.subr.bf16.mxu0 %v1014_v3  ;;  %v1020_v9 = vld [vmem:[%s1276_s1 + $0x58] sm:$0xff]   ;;  %v1023_v12 = vld [vmem:[%s1276_s1 + $0x60] sm:$0xff]   ;;  %v1026_v15 = vld [vmem:[%s1276_s1 + $0x68] sm:$0xff]  }
   0x5   :  { %980 = vmatpush3.bf16.msra.mxu1 %v1013_v2  ;;  %v1021_v10 = vld [vmem:[%s1276_s1 + $0x18] sm:$0xff]   ;;  %v1025_v13 = vld [vmem:[%s1276_s1 + $0xa0] sm:$0xff]   ;;  %v1028_v16 = vld [vmem:[%s1276_s1 + $0xa8] sm:$0xff]  }
   0x6   :  { %981 = vmatprep.subr.bf16.mxu1 %v1016_v5  ;;  %v1022_v11 = vld [vmem:[%s1276_s1 + $0x98] sm:$0xff]   ;;  %v1024_v14 = vld [vmem:[%s1276_s1 + $0x20] sm:$0xff]   ;;  %v1027_v17 = vld [vmem:[%s1276_s1 + $0x28] sm:$0xff]  }
   0x7   :  { %902 = vmatpush3.bf16.msra.mxu0 %v1015_v4  ;;  %v1029_v18 = vld [vmem:[%s1276_s1 + $0x70] sm:$0xff]   ;;  %v1032_v21 = vld [vmem:[%s1276_s1 + $0x78] sm:$0xff]   ;;  %v1035_v26 = vld [vmem:[%s1277_s0] ss:$12 sps:$4 sm:$0xff]  }
   0x8   :  { %903 = vmatprep.subr.bf16.mxu0 %v1017_v6  ;;  %v1030_v19 = vld [vmem:[%s1276_s1 + $0x30] sm:$0xff]   ;;  %v1034_v22 = vld [vmem:[%s1276_s1 + $0xb8] sm:$0xff]   ;;  %v1039_v28 = vld [vmem:[%s1277_s0 + $0x20] ss:$12 sps:$4 sm:$0xff]  }
   0x9   :  { %982 = vmatpush3.bf16.msra.mxu1 %v1016_v5  ;;  %v1031_v20 = vld [vmem:[%s1276_s1 + $0xb0] sm:$0xff]   ;;  %v1033_v25 = vld [vmem:[%s1276_s1 + $0x38] sm:$0xff]   ;;  %v1055_v36 = vld [vmem:[%s1277_s0 + $0x80] ss:$12 sps:$4 sm:$0xff]  }
   0xa   :  { %983 = vmatprep.subr.bf16.mxu1 %v1019_v8  ;;  %v1037_v23 = vld [vmem:[%s1277_s0 + $0x4] ss:$12 sps:$4 sm:$0xff]   ;;  %v1038_v24 = vld [vmem:[%s1277_s0 + $0x8] ss:$12 sps:$4 sm:$0xff]   ;;  %v1048_v35 = vld [vmem:[%s1277_s0 + $0x4c] ss:$12 sps:$4 sm:$0xff]  }
   0xb   :  { %904 = vmatpush3.bf16.msra.mxu0 %v1018_v7  ;;  %435 = vmatprep.mubr.bf16.mxu0 %v1037_v23  ;;  %v1040_v27 = vld [vmem:[%s1277_s0 + $0x1c] ss:$12 sps:$4 sm:$0xff]   ;;  %v1046_v29 = vld [vmem:[%s1277_s0 + $0x38] ss:$12 sps:$4 sm:$0xff]   ;;  %v1043_v31 = vld [vmem:[%s1277_s0 + $0x34] ss:$12 sps:$4 sm:$0xff]  }
   0xc   :  { %905 = vmatprep.subr.bf16.mxu0 %v1020_v9  ;;  %995 = vmatprep.mubr.bf16.mxu1 %v1038_v24  ;;  %v1042_v30 = vld [vmem:[%s1277_s0 + $0x18] ss:$12 sps:$4 sm:$0xff]   ;;  %v1047_v32 = vld [vmem:[%s1277_s0 + $0x50] ss:$12 sps:$4 sm:$0xff]   ;;  %v1054_v33 = vld [vmem:[%s1277_s0 + $0x68] ss:$12 sps:$4 sm:$0xff]  }
   0xd   :  { %984 = vmatpush3.bf16.msra.mxu1 %v1019_v8  ;;  %v1045_v34 = vld [vmem:[%s1277_s0 + $0x30] ss:$12 sps:$4 sm:$0xff]   ;;  %v1062_v37 = vld [vmem:[%s1277_s0 + $0x98] ss:$12 sps:$4 sm:$0xff]   ;;  %v1050_v38 = vld [vmem:[%s1277_s0 + $0x48] ss:$12 sps:$4 sm:$0xff]  }
   0xe   :  { %985 = vmatprep.subr.bf16.mxu1 %v1022_v11  ;;  %v1051_v39 = vld [vmem:[%s1277_s0 + $0x64] ss:$12 sps:$4 sm:$0xff]   ;;  %v1053_v41 = vld [vmem:[%s1277_s0 + $0x60] ss:$12 sps:$4 sm:$0xff]   ;;  %v1056_v42 = vld [vmem:[%s1277_s0 + $0x7c] ss:$12 sps:$4 sm:$0xff]  }
   0xf   :  { %906 = vmatpush3.bf16.msra.mxu0 %v1021_v10  ;;  %v1063_v40 = vld [vmem:[%s1277_s0 + $0xb0] ss:$12 sps:$4 sm:$0xff]   ;;  %v1058_v43 = vld [vmem:[%s1277_s0 + $0x78] ss:$12 sps:$4 sm:$0xff]   ;;  %v1059_v44 = vld [vmem:[%s1277_s0 + $0x94] ss:$12 sps:$4 sm:$0xff]  }
  0x10   :  { %907 = vmatprep.subr.bf16.mxu0 %v1023_v12  ;;  %v1061_v45 = vld [vmem:[%s1277_s0 + $0x90] ss:$12 sps:$4 sm:$0xff]   ;;  %v1064_v46 = vld [vmem:[%s1277_s0 + $0xac] ss:$12 sps:$4 sm:$0xff]   ;;  %v1066_v47 = vld [vmem:[%s1277_s0 + $0xa8] ss:$12 sps:$4 sm:$0xff]  }
  0x11   :  { %986 = vmatpush3.bf16.msra.mxu1 %v1022_v11  ;;  %v1234_v55 = vld [vmem:[%s1278_s2] ss:$0 sm:$0xff] }
  0x12   :  { %987 = vmatprep.subr.bf16.mxu1 %v1025_v13 }
  0x13   :  { %908 = vmatpush3.bf16.msra.mxu0 %v1024_v14 }
  0x14   :  { %909 = vmatprep.subr.bf16.mxu0 %v1026_v15 }
  0x15   :  { %988 = vmatpush3.bf16.msra.mxu1 %v1025_v13 }
  0x16   :  { %989 = vmatprep.subr.bf16.mxu1 %v1028_v16 }
  0x17   :  { %910 = vmatpush3.bf16.msra.mxu0 %v1027_v17 }
  0x18   :  { %911 = vmatprep.subr.bf16.mxu0 %v1029_v18 }
  0x19   :  { %990 = vmatpush3.bf16.msra.mxu1 %v1028_v16 }
  0x1a   :  { %991 = vmatprep.subr.bf16.mxu1 %v1031_v20 }
  0x1b   :  { %912 = vmatpush3.bf16.msra.mxu0 %v1030_v19 }
  0x1c   :  { %913 = vmatprep.subr.bf16.mxu0 %v1032_v21 }
  0x1d   :  { %992 = vmatpush3.bf16.msra.mxu1 %v1031_v20 }
  0x1e   :  { %993 = vmatprep.subr.bf16.mxu1 %v1034_v22 }
  0x1f   :  { %914 = vmatpush3.bf16.msra.mxu0 %v1033_v25 }
  0x21   :  { %994 = vmatpush3.bf16.msra.mxu1 %v1034_v22 }
  0x22   :  { %436 = vmatmul.mubr.bf16.vlgmr.msra.gmra.mrb[0].mxu0 %v1035_v26 }
  0x23   :  { %443 = vmatprep.mubr.bf16.mxu0 %v1040_v27 }
  0x24   :  { %996 = vmatmul.mubr.bf16.vlgmr.msra.gmra.mrb[0].mxu1 %v1039_v28 }
  0x25   :  { %999 = vmatprep.mubr.bf16.mxu1 %v1046_v29 }
  0x2a   :  { %444 = vmatmul.mubr.bf16.gmra.mrb[4].mxu0 %v1042_v30 }
  0x2b   :  { %451 = vmatprep.mubr.bf16.mxu0 %v1043_v31 }
  0x2c   :  { %1000 = vmatmul.mubr.bf16.gmra.mrb[4].mxu1 %v1047_v32 }
  0x2d   :  { %1003 = vmatprep.mubr.bf16.mxu1 %v1054_v33 }
  0x32   :  { %452 = vmatmul.mubr.bf16.gmra.mrb[8].mxu0 %v1045_v34 }
  0x33   :  { %459 = vmatprep.mubr.bf16.mxu0 %v1048_v35 }
  0x34   :  { %1004 = vmatmul.mubr.bf16.gmra.mrb[8].mxu1 %v1055_v36 }
  0x35   :  { %1007 = vmatprep.mubr.bf16.mxu1 %v1062_v37 }
  0x3a   :  { %460 = vmatmul.mubr.bf16.gmra.mrb[12].mxu0 %v1050_v38 }
  0x3b   :  { %467 = vmatprep.mubr.bf16.mxu0 %v1051_v39 }
  0x3c   :  { %1008 = vmatmul.mubr.bf16.gmra.mrb[12].mxu1 %v1063_v40 }
  0x42   :  { %468 = vmatmul.mubr.bf16.gmra.mrb[16].mxu0 %v1053_v41 }
  0x43   :  { %475 = vmatprep.mubr.bf16.mxu0 %v1056_v42 }
  0x4a   :  { %476 = vmatmul.mubr.bf16.gmra.mrb[20].mxu0 %v1058_v43 }
  0x4b   :  { %483 = vmatprep.mubr.bf16.mxu0 %v1059_v44 }
  0x52   :  { %484 = vmatmul.mubr.bf16.gmra.mrb[24].mxu0 %v1061_v45 }
  0x53   :  { %491 = vmatprep.mubr.bf16.mxu0 %v1064_v46 }
  0x5a   :  { %492 = vmatmul.mubr.bf16.gmra.mrb[28].mxu0 %v1066_v47 }
  0xf5   :  { %v915_v48 = vpop.f32.mrb[0].mxu0 }
  0xf6   :  { %v916_v49 = vpop.f32.mrb[1].mxu0 }
  0xf7   :  { %v917_v50 = vadd.f32 %v916_v49, %v915_v48  ;;  %v918_v51 = vpop.f32.mrb[2].mxu0  ;;  %v997_v52 = vpop.f32.mrb[0].mxu1 }
  0xf8   :  { %v919_v53 = vpop.f32.mrb[3].mxu0  ;;  %v534_v54 = vpop.f32.mrb[1].mxu1 }
  0xf9   :  { %v920_v56 = vadd.f32 %v919_v53, %v918_v51  ;;  %v535_v57 = vadd.f32 %v917_v50, %v534_v54  ;;  %v998_v58 = vpop.f32.mrb[2].mxu1 }
  0xfa   :  { %v537_v59 = vpop.f32.mrb[3].mxu1 }
  0xfb   :  { %v655_v60 = vadd.f32 %v1234_v55, %v535_v57  ;;  %v538_v61 = vadd.f32 %v920_v56, %v537_v59 }
  0xfd   :  { %v656_v62 = vadd.f32 %v1234_v55, %v538_v61  ;;  %v921_v63 = vpop.f32.mrb[4].mxu0  ;;  %v671_v1 = vmax.f32 %v655_v60, 0.0 }
  0xfe   :  { %v922_v0 = vpop.f32.mrb[5].mxu0 }
  0xff   :  { %v672_v2 = vmax.f32 %v656_v62, 0.0  ;;  %v923_v3 = vadd.f32 %v922_v0, %v921_v63  ;;  %v924_v4 = vpop.f32.mrb[6].mxu0  ;;  %v1001_v5 = vpop.f32.mrb[4].mxu1 }
 0x100   :  { %v925_v6 = vpop.f32.mrb[7].mxu0  ;;  %v550_v7 = vpop.f32.mrb[5].mxu1 }
 0x101   :  { %v855_v8 = vpack.c.bf16 %v672_v2, %v671_v1  ;;  %v543_v9 = vadd.f32 %v997_v52, %v923_v3  ;;  %v926_v10 = vadd.f32 %v925_v6, %v924_v4  ;;  %v1002_v11 = vpop.f32.mrb[6].mxu1 }
 0x102   :  { %v553_v12 = vpop.f32.mrb[7].mxu1 }
 0x103   :  { %856 = vst [vmem:[%s1279_s3] sm:$0xff] %v855_v8   ;;  %v657_v13 = vadd.f32 %v1234_v55, %v543_v9  ;;  %v546_v14 = vadd.f32 %v998_v58, %v926_v10 }
 0x105   :  { %v658_v15 = vadd.f32 %v1234_v55, %v546_v14  ;;  %v927_v16 = vpop.f32.mrb[8].mxu0  ;;  %v673_v18 = vmax.f32 %v657_v13, 0.0 }
 0x106   :  { %v928_v17 = vpop.f32.mrb[9].mxu0 }
 0x107   :  { %v674_v19 = vmax.f32 %v658_v15, 0.0  ;;  %v929_v20 = vadd.f32 %v928_v17, %v927_v16  ;;  %v930_v21 = vpop.f32.mrb[10].mxu0  ;;  %v1005_v22 = vpop.f32.mrb[8].mxu1 }
 0x108   :  { %v931_v23 = vpop.f32.mrb[11].mxu0  ;;  %v566_v24 = vpop.f32.mrb[9].mxu1 }
 0x109   :  { %v860_v25 = vpack.c.bf16 %v674_v19, %v673_v18  ;;  %v932_v26 = vadd.f32 %v931_v23, %v930_v21  ;;  %v551_v27 = vadd.f32 %v929_v20, %v550_v7  ;;  %v1006_v28 = vpop.f32.mrb[10].mxu1 }
 0x10a   :  { %v569_v29 = vpop.f32.mrb[11].mxu1 }
 0x10b   :  { %892 = vst [vmem:[%s1279_s3 + $0x8] sm:$0xff] %v860_v25   ;;  %v659_v30 = vadd.f32 %v1234_v55, %v551_v27  ;;  %v554_v31 = vadd.f32 %v932_v26, %v553_v12 }
 0x10d   :  { %v660_v32 = vadd.f32 %v1234_v55, %v554_v31  ;;  %v933_v33 = vpop.f32.mrb[12].mxu0  ;;  %v675_v35 = vmax.f32 %v659_v30, 0.0 }
 0x10e   :  { %v934_v34 = vpop.f32.mrb[13].mxu0 }
 0x10f   :  { %v676_v36 = vmax.f32 %v660_v32, 0.0  ;;  %v935_v37 = vadd.f32 %v934_v34, %v933_v33  ;;  %v936_v38 = vpop.f32.mrb[14].mxu0  ;;  %v1009_v39 = vpop.f32.mrb[12].mxu1 }
 0x110   :  { %v937_v40 = vpop.f32.mrb[15].mxu0  ;;  %v582_v41 = vpop.f32.mrb[13].mxu1 }
 0x111   :  { %v865_v42 = vpack.c.bf16 %v676_v36, %v675_v35  ;;  %v559_v43 = vadd.f32 %v1001_v5, %v935_v37  ;;  %v938_v44 = vadd.f32 %v937_v40, %v936_v38  ;;  %v1010_v45 = vpop.f32.mrb[14].mxu1 }
 0x112   :  { %v585_v46 = vpop.f32.mrb[15].mxu1 }
 0x113   :  { %893 = vst [vmem:[%s1279_s3 + $0x10] sm:$0xff] %v865_v42   ;;  %v661_v47 = vadd.f32 %v1234_v55, %v559_v43  ;;  %v562_v48 = vadd.f32 %v1002_v11, %v938_v44 }
 0x115   :  { %v662_v49 = vadd.f32 %v1234_v55, %v562_v48  ;;  %v939_v50 = vpop.f32.mrb[16].mxu0  ;;  %v677_v52 = vmax.f32 %v661_v47, 0.0 }
 0x116   :  { %v940_v51 = vpop.f32.mrb[17].mxu0 }
 0x117   :  { %v678_v53 = vmax.f32 %v662_v49, 0.0  ;;  %v941_v54 = vadd.f32 %v940_v51, %v939_v50  ;;  %v942_v56 = vpop.f32.mrb[18].mxu0 }
 0x118   :  { %v943_v57 = vpop.f32.mrb[19].mxu0 }
 0x119   :  { %v870_v58 = vpack.c.bf16 %v678_v53, %v677_v52  ;;  %v944_v59 = vadd.f32 %v943_v57, %v942_v56  ;;  %v567_v60 = vadd.f32 %v941_v54, %v566_v24 }
 0x11b   :  { %894 = vst [vmem:[%s1279_s3 + $0x18] sm:$0xff] %v870_v58   ;;  %v663_v61 = vadd.f32 %v1234_v55, %v567_v60  ;;  %v570_v62 = vadd.f32 %v944_v59, %v569_v29 }
 0x11d   :  { %v664_v63 = vadd.f32 %v1234_v55, %v570_v62  ;;  %v945_v0 = vpop.f32.mrb[20].mxu0  ;;  %v679_v2 = vmax.f32 %v663_v61, 0.0 }
 0x11e   :  { %v946_v1 = vpop.f32.mrb[21].mxu0 }
 0x11f   :  { %v680_v3 = vmax.f32 %v664_v63, 0.0  ;;  %v947_v4 = vadd.f32 %v946_v1, %v945_v0  ;;  %v948_v5 = vpop.f32.mrb[22].mxu0 }
 0x120   :  { %v949_v6 = vpop.f32.mrb[23].mxu0 }
 0x121   :  { %v875_v7 = vpack.c.bf16 %v680_v3, %v679_v2  ;;  %v575_v8 = vadd.f32 %v1005_v22, %v947_v4  ;;  %v950_v9 = vadd.f32 %v949_v6, %v948_v5 }
 0x123   :  { %895 = vst [vmem:[%s1279_s3 + $0x20] sm:$0xff] %v875_v7   ;;  %v665_v10 = vadd.f32 %v1234_v55, %v575_v8  ;;  %v578_v11 = vadd.f32 %v1006_v28, %v950_v9 }
 0x125   :  { %v666_v12 = vadd.f32 %v1234_v55, %v578_v11  ;;  %v951_v13 = vpop.f32.mrb[24].mxu0  ;;  %v681_v15 = vmax.f32 %v665_v10, 0.0 }
 0x126   :  { %v952_v14 = vpop.f32.mrb[25].mxu0 }
 0x127   :  { %v682_v16 = vmax.f32 %v666_v12, 0.0  ;;  %v953_v17 = vadd.f32 %v952_v14, %v951_v13  ;;  %v954_v18 = vpop.f32.mrb[26].mxu0 }
 0x128   :  { %v955_v19 = vpop.f32.mrb[27].mxu0 }
 0x129   :  { %v880_v20 = vpack.c.bf16 %v682_v16, %v681_v15  ;;  %v956_v21 = vadd.f32 %v955_v19, %v954_v18  ;;  %v583_v22 = vadd.f32 %v953_v17, %v582_v41 }
 0x12b   :  { %896 = vst [vmem:[%s1279_s3 + $0x28] sm:$0xff] %v880_v20   ;;  %v667_v23 = vadd.f32 %v1234_v55, %v583_v22  ;;  %v586_v24 = vadd.f32 %v956_v21, %v585_v46 }
 0x12d   :  { %v668_v25 = vadd.f32 %v1234_v55, %v586_v24  ;;  %v957_v26 = vpop.f32.mrb[28].mxu0  ;;  %v683_v28 = vmax.f32 %v667_v23, 0.0 }
 0x12e   :  { %v958_v27 = vpop.f32.mrb[29].mxu0 }
 0x12f   :  { %v684_v29 = vmax.f32 %v668_v25, 0.0  ;;  %v959_v30 = vadd.f32 %v958_v27, %v957_v26  ;;  %v960_v31 = vpop.f32.mrb[30].mxu0 }
 0x130   :  { %v961_v32 = vpop.f32.mrb[31].mxu0 }
 0x131   :  { %v885_v33 = vpack.c.bf16 %v684_v29, %v683_v28  ;;  %v591_v34 = vadd.f32 %v1009_v39, %v959_v30  ;;  %v962_v35 = vadd.f32 %v961_v32, %v960_v31 }
 0x133   :  { %897 = vst [vmem:[%s1279_s3 + $0x30] sm:$0xff] %v885_v33   ;;  %v669_v36 = vadd.f32 %v1234_v55, %v591_v34  ;;  %v594_v37 = vadd.f32 %v1010_v45, %v962_v35 }
 0x135   :  { %v670_v38 = vadd.f32 %v1234_v55, %v594_v37  ;;  %v685_v40 = vmax.f32 %v669_v36, 0.0 }
 0x137   :  { %v686_v41 = vmax.f32 %v670_v38, 0.0 }
 0x139   :  { %v890_v42 = vpack.c.bf16 %v686_v41, %v685_v40 }
 0x13b   :  { %898 = vst [vmem:[%s1279_s3 + $0x38] sm:$0xff] %v890_v42  }

// kernel: global_generator_forward.14
= control target key start
LH: loop header
LB: loop body
LE: loop exit
PB: predicated region body
PF: predicated region fallthrough
CT: control target
= control target key end

     0   :  { %s1385_s1 = inlined_call_operand.vmem [shape: bf16[384,128], index: 1, kind: input, shape index: {}]   ;;  %s1386_s0 = inlined_call_operand.vmem [shape: bf16[128,384], index: 0, kind: input, shape index: {}]   ;;  %s1387_s2 = inlined_call_operand.vmem [shape: f32[1,128], index: 2, kind: input, shape index: {}]   ;;  %s1388_s3 = inlined_call_operand.vmem [shape: bf16[128,128], index: 3, kind: input, shape index: {}]   ;;  %s1389_s4 = inlined_call_operand.vmem [shape: bf16[128,128], index: 4, kind: output, shape index: {}]  }
   0x1   :  { %v1085_v0 = vld [vmem:[%s1385_s1 + $0x40] sm:$0xff]   ;;  %v1088_v3 = vld [vmem:[%s1385_s1 + $0x48] sm:$0xff]   ;;  %v1091_v6 = vld [vmem:[%s1385_s1 + $0x50] sm:$0xff]  }
   0x2   :  { %v1086_v1 = vld [vmem:[%s1385_s1] sm:$0xff]   ;;  %973 = vmatprep.subr.bf16.mxu0 %v1085_v0  ;;  %v1089_v4 = vld [vmem:[%s1385_s1 + $0x8] sm:$0xff]   ;;  %v1092_v7 = vld [vmem:[%s1385_s1 + $0x10] sm:$0xff]  }
   0x3   :  { %v1087_v2 = vld [vmem:[%s1385_s1 + $0x80] sm:$0xff]   ;;  %974 = vmatpush3.bf16.msra.mxu0 %v1086_v1  ;;  %v1090_v5 = vld [vmem:[%s1385_s1 + $0x88] sm:$0xff]   ;;  %v1093_v8 = vld [vmem:[%s1385_s1 + $0x90] sm:$0xff]  }
   0x4   :  { %1053 = vmatprep.subr.bf16.mxu1 %v1087_v2  ;;  %975 = vmatprep.subr.bf16.mxu0 %v1088_v3  ;;  %v1094_v9 = vld [vmem:[%s1385_s1 + $0x58] sm:$0xff]   ;;  %v1097_v12 = vld [vmem:[%s1385_s1 + $0x60] sm:$0xff]   ;;  %v1100_v15 = vld [vmem:[%s1385_s1 + $0x68] sm:$0xff]  }
   0x5   :  { %1054 = vmatpush3.bf16.msra.mxu1 %v1087_v2  ;;  %v1095_v10 = vld [vmem:[%s1385_s1 + $0x18] sm:$0xff]   ;;  %v1099_v13 = vld [vmem:[%s1385_s1 + $0xa0] sm:$0xff]   ;;  %v1102_v16 = vld [vmem:[%s1385_s1 + $0xa8] sm:$0xff]  }
   0x6   :  { %1055 = vmatprep.subr.bf16.mxu1 %v1090_v5  ;;  %v1096_v11 = vld [vmem:[%s1385_s1 + $0x98] sm:$0xff]   ;;  %v1098_v14 = vld [vmem:[%s1385_s1 + $0x20] sm:$0xff]   ;;  %v1101_v17 = vld [vmem:[%s1385_s1 + $0x28] sm:$0xff]  }
   0x7   :  { %976 = vmatpush3.bf16.msra.mxu0 %v1089_v4  ;;  %v1103_v18 = vld [vmem:[%s1385_s1 + $0x70] sm:$0xff]   ;;  %v1106_v21 = vld [vmem:[%s1385_s1 + $0x78] sm:$0xff]   ;;  %v1109_v26 = vld [vmem:[%s1386_s0] ss:$12 sps:$4 sm:$0xff]  }
   0x8   :  { %977 = vmatprep.subr.bf16.mxu0 %v1091_v6  ;;  %v1104_v19 = vld [vmem:[%s1385_s1 + $0x30] sm:$0xff]   ;;  %v1108_v22 = vld [vmem:[%s1385_s1 + $0xb8] sm:$0xff]   ;;  %v1113_v28 = vld [vmem:[%s1386_s0 + $0x20] ss:$12 sps:$4 sm:$0xff]  }
   0x9   :  { %1056 = vmatpush3.bf16.msra.mxu1 %v1090_v5  ;;  %v1105_v20 = vld [vmem:[%s1385_s1 + $0xb0] sm:$0xff]   ;;  %v1107_v25 = vld [vmem:[%s1385_s1 + $0x38] sm:$0xff]   ;;  %v1129_v36 = vld [vmem:[%s1386_s0 + $0x80] ss:$12 sps:$4 sm:$0xff]  }
   0xa   :  { %1057 = vmatprep.subr.bf16.mxu1 %v1093_v8  ;;  %v1111_v23 = vld [vmem:[%s1386_s0 + $0x4] ss:$12 sps:$4 sm:$0xff]   ;;  %v1112_v24 = vld [vmem:[%s1386_s0 + $0x8] ss:$12 sps:$4 sm:$0xff]   ;;  %v1122_v35 = vld [vmem:[%s1386_s0 + $0x4c] ss:$12 sps:$4 sm:$0xff]  }
   0xb   :  { %978 = vmatpush3.bf16.msra.mxu0 %v1092_v7  ;;  %438 = vmatprep.mubr.bf16.mxu0 %v1111_v23  ;;  %v1114_v27 = vld [vmem:[%s1386_s0 + $0x1c] ss:$12 sps:$4 sm:$0xff]   ;;  %v1120_v29 = vld [vmem:[%s1386_s0 + $0x38] ss:$12 sps:$4 sm:$0xff]   ;;  %v1117_v31 = vld [vmem:[%s1386_s0 + $0x34] ss:$12 sps:$4 sm:$0xff]  }
   0xc   :  { %979 = vmatprep.subr.bf16.mxu0 %v1094_v9  ;;  %1069 = vmatprep.mubr.bf16.mxu1 %v1112_v24  ;;  %v1116_v30 = vld [vmem:[%s1386_s0 + $0x18] ss:$12 sps:$4 sm:$0xff]   ;;  %v1121_v32 = vld [vmem:[%s1386_s0 + $0x50] ss:$12 sps:$4 sm:$0xff]   ;;  %v1128_v33 = vld [vmem:[%s1386_s0 + $0x68] ss:$12 sps:$4 sm:$0xff]  }
   0xd   :  { %1058 = vmatpush3.bf16.msra.mxu1 %v1093_v8  ;;  %v1119_v34 = vld [vmem:[%s1386_s0 + $0x30] ss:$12 sps:$4 sm:$0xff]   ;;  %v1136_v37 = vld [vmem:[%s1386_s0 + $0x98] ss:$12 sps:$4 sm:$0xff]   ;;  %v1124_v38 = vld [vmem:[%s1386_s0 + $0x48] ss:$12 sps:$4 sm:$0xff]  }
   0xe   :  { %1059 = vmatprep.subr.bf16.mxu1 %v1096_v11  ;;  %v1125_v39 = vld [vmem:[%s1386_s0 + $0x64] ss:$12 sps:$4 sm:$0xff]   ;;  %v1127_v41 = vld [vmem:[%s1386_s0 + $0x60] ss:$12 sps:$4 sm:$0xff]   ;;  %v1130_v42 = vld [vmem:[%s1386_s0 + $0x7c] ss:$12 sps:$4 sm:$0xff]  }
   0xf   :  { %980 = vmatpush3.bf16.msra.mxu0 %v1095_v10  ;;  %v1137_v40 = vld [vmem:[%s1386_s0 + $0xb0] ss:$12 sps:$4 sm:$0xff]   ;;  %v1132_v43 = vld [vmem:[%s1386_s0 + $0x78] ss:$12 sps:$4 sm:$0xff]   ;;  %v1133_v44 = vld [vmem:[%s1386_s0 + $0x94] ss:$12 sps:$4 sm:$0xff]  }
  0x10   :  { %981 = vmatprep.subr.bf16.mxu0 %v1097_v12  ;;  %v1135_v45 = vld [vmem:[%s1386_s0 + $0x90] ss:$12 sps:$4 sm:$0xff]   ;;  %v1138_v46 = vld [vmem:[%s1386_s0 + $0xac] ss:$12 sps:$4 sm:$0xff]   ;;  %v1140_v47 = vld [vmem:[%s1386_s0 + $0xa8] ss:$12 sps:$4 sm:$0xff]  }
  0x11   :  { %1060 = vmatpush3.bf16.msra.mxu1 %v1096_v11  ;;  %v1313_v55 = vld [vmem:[%s1387_s2] ss:$0 sm:$0xff]  ;;  %v959_v9 = vld [vmem:[%s1388_s3 + $0x8] sm:$0xff]  }
  0x12   :  { %1061 = vmatprep.subr.bf16.mxu1 %v1099_v13  ;;  %v888_v56 = vld [vmem:[%s1388_s3] sm:$0xff]  }
  0x13   :  { %982 = vmatpush3.bf16.msra.mxu0 %v1098_v14  ;;  %v889_v62 = vunpack.c.l.bf16 %v888_v56  ;;  %v890_v0 = vunpack.c.h.bf16 %v888_v56 }
  0x14   :  { %983 = vmatprep.subr.bf16.mxu0 %v1100_v15 }
  0x15   :  { %1062 = vmatpush3.bf16.msra.mxu1 %v1099_v13 }
  0x16   :  { %1063 = vmatprep.subr.bf16.mxu1 %v1102_v16 }
  0x17   :  { %984 = vmatpush3.bf16.msra.mxu0 %v1101_v17 }
  0x18   :  { %985 = vmatprep.subr.bf16.mxu0 %v1103_v18  ;;  %v893_v18 = vunpack.c.l.bf16 %v959_v9 }
  0x19   :  { %1064 = vmatpush3.bf16.msra.mxu1 %v1102_v16 }
  0x1a   :  { %1065 = vmatprep.subr.bf16.mxu1 %v1105_v20 }
  0x1b   :  { %986 = vmatpush3.bf16.msra.mxu0 %v1104_v19 }
  0x1c   :  { %987 = vmatprep.subr.bf16.mxu0 %v1106_v21 }
  0x1d   :  { %1066 = vmatpush3.bf16.msra.mxu1 %v1105_v20  ;;  %v894_v20 = vunpack.c.h.bf16 %v959_v9 }
  0x1e   :  { %1067 = vmatprep.subr.bf16.mxu1 %v1108_v22 }
  0x1f   :  { %988 = vmatpush3.bf16.msra.mxu0 %v1107_v25 }
  0x21   :  { %1068 = vmatpush3.bf16.msra.mxu1 %v1108_v22 }
  0x22   :  { %439 = vmatmul.mubr.bf16.vlgmr.msra.gmra.mrb[0].mxu0 %v1109_v26 }
  0x23   :  { %446 = vmatprep.mubr.bf16.mxu0 %v1114_v27 }
  0x24   :  { %1070 = vmatmul.mubr.bf16.vlgmr.msra.gmra.mrb[0].mxu1 %v1113_v28 }
  0x25   :  { %1073 = vmatprep.mubr.bf16.mxu1 %v1120_v29 }
  0x2a   :  { %447 = vmatmul.mubr.bf16.gmra.mrb[4].mxu0 %v1116_v30  ;;  %v960_v30 = vld [vmem:[%s1388_s3 + $0x10] sm:$0xff]  }
  0x2b   :  { %454 = vmatprep.mubr.bf16.mxu0 %v1117_v31 }
  0x2c   :  { %1074 = vmatmul.mubr.bf16.gmra.mrb[4].mxu1 %v1121_v32 }
  0x2d   :  { %1077 = vmatprep.mubr.bf16.mxu1 %v1128_v33 }
  0x32   :  { %455 = vmatmul.mubr.bf16.gmra.mrb[8].mxu0 %v1119_v34 }
  0x33   :  { %462 = vmatprep.mubr.bf16.mxu0 %v1122_v35 }
  0x34   :  { %1078 = vmatmul.mubr.bf16.gmra.mrb[8].mxu1 %v1129_v36 }
  0x35   :  { %1081 = vmatprep.mubr.bf16.mxu1 %v1136_v37 }
  0x3a   :  { %463 = vmatmul.mubr.bf16.gmra.mrb[12].mxu0 %v1124_v38  ;;  %v897_v38 = vunpack.c.l.bf16 %v960_v30 }
  0x3b   :  { %470 = vmatprep.mubr.bf16.mxu0 %v1125_v39 }
  0x3c   :  { %1082 = vmatmul.mubr.bf16.gmra.mrb[12].mxu1 %v1137_v40  ;;  %v898_v40 = vunpack.c.h.bf16 %v960_v30 }
  0x42   :  { %471 = vmatmul.mubr.bf16.gmra.mrb[16].mxu0 %v1127_v41 }
  0x43   :  { %478 = vmatprep.mubr.bf16.mxu0 %v1130_v42 }
  0x4a   :  { %479 = vmatmul.mubr.bf16.gmra.mrb[20].mxu0 %v1132_v43 }
  0x4b   :  { %486 = vmatprep.mubr.bf16.mxu0 %v1133_v44 }
  0x52   :  { %487 = vmatmul.mubr.bf16.gmra.mrb[24].mxu0 %v1135_v45 }
  0x53   :  { %494 = vmatprep.mubr.bf16.mxu0 %v1138_v46 }
  0x5a   :  { %495 = vmatmul.mubr.bf16.gmra.mrb[28].mxu0 %v1140_v47 }
  0xf5   :  { %v989_v48 = vpop.f32.mrb[0].mxu0 }
  0xf6   :  { %v990_v49 = vpop.f32.mrb[1].mxu0 }
  0xf7   :  { %v991_v50 = vadd.f32 %v990_v49, %v989_v48  ;;  %v992_v51 = vpop.f32.mrb[2].mxu0  ;;  %v1071_v52 = vpop.f32.mrb[0].mxu1  ;;  %v961_v49 = vld [vmem:[%s1388_s3 + $0x18] sm:$0xff]  }
  0xf8   :  { %v993_v53 = vpop.f32.mrb[3].mxu0  ;;  %v537_v54 = vpop.f32.mrb[1].mxu1 }
  0xf9   :  { %v994_v57 = vadd.f32 %v993_v53, %v992_v51  ;;  %v538_v58 = vadd.f32 %v991_v50, %v537_v54  ;;  %v1072_v59 = vpop.f32.mrb[2].mxu1 }
  0xfa   :  { %v540_v60 = vpop.f32.mrb[3].mxu1 }
  0xfb   :  { %v658_v61 = vadd.f32 %v1313_v55, %v538_v58  ;;  %v541_v63 = vadd.f32 %v994_v57, %v540_v60 }
  0xfd   :  { %v659_v1 = vadd.f32 %v1313_v55, %v541_v63  ;;  %v995_v2 = vpop.f32.mrb[4].mxu0  ;;  %v706_v4 = vadd.f32 %v889_v62, %v658_v61  ;;  %v902_v61 = vunpack.c.h.bf16 %v961_v49 }
  0xfe   :  { %v996_v3 = vpop.f32.mrb[5].mxu0 }
  0xff   :  { %v707_v5 = vadd.f32 %v890_v0, %v659_v1  ;;  %v997_v6 = vadd.f32 %v996_v3, %v995_v2  ;;  %v998_v7 = vpop.f32.mrb[6].mxu0  ;;  %v1075_v8 = vpop.f32.mrb[4].mxu1 }
 0x100   :  { %v999_v10 = vpop.f32.mrb[7].mxu0  ;;  %v553_v11 = vpop.f32.mrb[5].mxu1 }
 0x101   :  { %v922_v12 = vpack.c.bf16 %v707_v5, %v706_v4  ;;  %v546_v13 = vadd.f32 %v1071_v52, %v997_v6  ;;  %v1000_v14 = vadd.f32 %v999_v10, %v998_v7  ;;  %v1076_v15 = vpop.f32.mrb[6].mxu1  ;;  %v962_v6 = vld [vmem:[%s1388_s3 + $0x20] sm:$0xff]  }
 0x102   :  { %v556_v16 = vpop.f32.mrb[7].mxu1 }
 0x103   :  { %923 = vst [vmem:[%s1389_s4] sm:$0xff] %v922_v12   ;;  %v660_v17 = vadd.f32 %v1313_v55, %v546_v13  ;;  %v549_v19 = vadd.f32 %v1072_v59, %v1000_v14  ;;  %v901_v59 = vunpack.c.l.bf16 %v961_v49  ;;  %v906_v13 = vunpack.c.h.bf16 %v962_v6 }
 0x105   :  { %v661_v21 = vadd.f32 %v1313_v55, %v549_v19  ;;  %v1001_v22 = vpop.f32.mrb[8].mxu0  ;;  %v708_v24 = vadd.f32 %v893_v18, %v660_v17 }
 0x106   :  { %v1002_v23 = vpop.f32.mrb[9].mxu0 }
 0x107   :  { %v709_v25 = vadd.f32 %v894_v20, %v661_v21  ;;  %v1003_v26 = vadd.f32 %v1002_v23, %v1001_v22  ;;  %v1004_v27 = vpop.f32.mrb[10].mxu0  ;;  %v1079_v28 = vpop.f32.mrb[8].mxu1  ;;  %v963_v21 = vld [vmem:[%s1388_s3 + $0x28] sm:$0xff]  }
 0x108   :  { %v1005_v29 = vpop.f32.mrb[11].mxu0  ;;  %v569_v31 = vpop.f32.mrb[9].mxu1  ;;  %v910_v30 = vunpack.c.h.bf16 %v963_v21 }
 0x109   :  { %v927_v32 = vpack.c.bf16 %v709_v25, %v708_v24  ;;  %v1006_v33 = vadd.f32 %v1005_v29, %v1004_v27  ;;  %v554_v34 = vadd.f32 %v1003_v26, %v553_v11  ;;  %v1080_v35 = vpop.f32.mrb[10].mxu1  ;;  %v905_v11 = vunpack.c.l.bf16 %v962_v6 }
 0x10a   :  { %v572_v36 = vpop.f32.mrb[11].mxu1  ;;  %v909_v27 = vunpack.c.l.bf16 %v963_v21 }
 0x10b   :  { %966 = vst [vmem:[%s1389_s4 + $0x8] sm:$0xff] %v927_v32   ;;  %v662_v37 = vadd.f32 %v1313_v55, %v554_v34  ;;  %v557_v39 = vadd.f32 %v1006_v33, %v556_v16 }
 0x10d   :  { %v663_v41 = vadd.f32 %v1313_v55, %v557_v39  ;;  %v1007_v42 = vpop.f32.mrb[12].mxu0  ;;  %v710_v44 = vadd.f32 %v897_v38, %v662_v37 }
 0x10e   :  { %v1008_v43 = vpop.f32.mrb[13].mxu0 }
 0x10f   :  { %v711_v45 = vadd.f32 %v898_v40, %v663_v41  ;;  %v1009_v46 = vadd.f32 %v1008_v43, %v1007_v42  ;;  %v1010_v47 = vpop.f32.mrb[14].mxu0  ;;  %v1336_v48 = vpop.f32.mrb[12].mxu1 }
 0x110   :  { %v1011_v50 = vpop.f32.mrb[15].mxu0  ;;  %v585_v51 = vpop.f32.mrb[13].mxu1 }
 0x111   :  { %v932_v52 = vpack.c.bf16 %v711_v45, %v710_v44  ;;  %v562_v53 = vadd.f32 %v1075_v8, %v1009_v46  ;;  %v1012_v54 = vadd.f32 %v1011_v50, %v1010_v47  ;;  %v1341_v56 = vpop.f32.mrb[14].mxu1 }
 0x112   :  { %v588_v57 = vpop.f32.mrb[15].mxu1 }
 0x113   :  { %967 = vst [vmem:[%s1389_s4 + $0x10] sm:$0xff] %v932_v52   ;;  %v664_v58 = vadd.f32 %v1313_v55, %v562_v53  ;;  %v565_v60 = vadd.f32 %v1076_v15, %v1012_v54 }
 0x115   :  { %v665_v62 = vadd.f32 %v1313_v55, %v565_v60  ;;  %v1013_v63 = vpop.f32.mrb[16].mxu0  ;;  %v712_v1 = vadd.f32 %v901_v59, %v664_v58 }
 0x116   :  { %v1014_v0 = vpop.f32.mrb[17].mxu0 }
 0x117   :  { %v713_v2 = vadd.f32 %v902_v61, %v665_v62  ;;  %v1015_v3 = vadd.f32 %v1014_v0, %v1013_v63  ;;  %v1016_v4 = vpop.f32.mrb[18].mxu0 }
 0x118   :  { %v1017_v5 = vpop.f32.mrb[19].mxu0 }
 0x119   :  { %v937_v7 = vpack.c.bf16 %v713_v2, %v712_v1  ;;  %v1018_v8 = vadd.f32 %v1017_v5, %v1016_v4  ;;  %v570_v9 = vadd.f32 %v1015_v3, %v569_v31 }
 0x11b   :  { %968 = vst [vmem:[%s1389_s4 + $0x18] sm:$0xff] %v937_v7   ;;  %v666_v10 = vadd.f32 %v1313_v55, %v570_v9  ;;  %v573_v12 = vadd.f32 %v1018_v8, %v572_v36 }
 0x11d   :  { %v667_v14 = vadd.f32 %v1313_v55, %v573_v12  ;;  %v1019_v15 = vpop.f32.mrb[20].mxu0  ;;  %v714_v17 = vadd.f32 %v905_v11, %v666_v10 }
 0x11e   :  { %v1020_v16 = vpop.f32.mrb[21].mxu0 }
 0x11f   :  { %v715_v18 = vadd.f32 %v906_v13, %v667_v14  ;;  %v1021_v19 = vadd.f32 %v1020_v16, %v1019_v15  ;;  %v1022_v20 = vpop.f32.mrb[22].mxu0 }
 0x120   :  { %v1023_v22 = vpop.f32.mrb[23].mxu0 }
 0x121   :  { %v942_v23 = vpack.c.bf16 %v715_v18, %v714_v17  ;;  %v578_v24 = vadd.f32 %v1079_v28, %v1021_v19  ;;  %v1024_v25 = vadd.f32 %v1023_v22, %v1022_v20  ;;  %v964_v28 = vld [vmem:[%s1388_s3 + $0x30] sm:$0xff]  }
 0x122   :  { %v913_v43 = vunpack.c.l.bf16 %v964_v28  ;;  %v914_v45 = vunpack.c.h.bf16 %v964_v28 }
 0x123   :  { %969 = vst [vmem:[%s1389_s4 + $0x20] sm:$0xff] %v942_v23   ;;  %v668_v26 = vadd.f32 %v1313_v55, %v578_v24  ;;  %v581_v29 = vadd.f32 %v1080_v35, %v1024_v25 }
 0x125   :  { %v669_v31 = vadd.f32 %v1313_v55, %v581_v29  ;;  %v1025_v32 = vpop.f32.mrb[24].mxu0  ;;  %v716_v34 = vadd.f32 %v909_v27, %v668_v26 }
 0x126   :  { %v1026_v33 = vpop.f32.mrb[25].mxu0 }
 0x127   :  { %v717_v36 = vadd.f32 %v910_v30, %v669_v31  ;;  %v1027_v37 = vadd.f32 %v1026_v33, %v1025_v32  ;;  %v1028_v38 = vpop.f32.mrb[26].mxu0 }
 0x128   :  { %v1029_v39 = vpop.f32.mrb[27].mxu0 }
 0x129   :  { %v947_v40 = vpack.c.bf16 %v717_v36, %v716_v34  ;;  %v1030_v41 = vadd.f32 %v1029_v39, %v1028_v38  ;;  %v586_v42 = vadd.f32 %v1027_v37, %v585_v51  ;;  %v965_v51 = vld [vmem:[%s1388_s3 + $0x38] sm:$0xff]  }
 0x12a   :  { %v917_v62 = vunpack.c.l.bf16 %v965_v51  ;;  %v918_v0 = vunpack.c.h.bf16 %v965_v51 }
 0x12b   :  { %970 = vst [vmem:[%s1389_s4 + $0x28] sm:$0xff] %v947_v40   ;;  %v670_v35 = vadd.f32 %v1313_v55, %v586_v42  ;;  %v589_v44 = vadd.f32 %v1030_v41, %v588_v57 }
 0x12d   :  { %v671_v46 = vadd.f32 %v1313_v55, %v589_v44  ;;  %v1031_v47 = vpop.f32.mrb[28].mxu0  ;;  %v718_v50 = vadd.f32 %v913_v43, %v670_v35 }
 0x12e   :  { %v1032_v49 = vpop.f32.mrb[29].mxu0 }
 0x12f   :  { %v719_v52 = vadd.f32 %v914_v45, %v671_v46  ;;  %v1033_v53 = vadd.f32 %v1032_v49, %v1031_v47  ;;  %v1034_v54 = vpop.f32.mrb[30].mxu0 }
 0x130   :  { %v1035_v58 = vpop.f32.mrb[31].mxu0 }
 0x131   :  { %v952_v59 = vpack.c.bf16 %v719_v52, %v718_v50  ;;  %v594_v60 = vadd.f32 %v1336_v48, %v1033_v53  ;;  %v1036_v61 = vadd.f32 %v1035_v58, %v1034_v54 }
 0x133   :  { %971 = vst [vmem:[%s1389_s4 + $0x30] sm:$0xff] %v952_v59   ;;  %v672_v57 = vadd.f32 %v1313_v55, %v594_v60  ;;  %v597_v63 = vadd.f32 %v1341_v56, %v1036_v61 }
 0x135   :  { %v673_v1 = vadd.f32 %v1313_v55, %v597_v63  ;;  %v720_v2 = vadd.f32 %v917_v62, %v672_v57 }
 0x137   :  { %v721_v3 = vadd.f32 %v918_v0, %v673_v1 }
 0x139   :  { %v957_v4 = vpack.c.bf16 %v721_v3, %v720_v2 }
 0x13b   :  { %972 = vst [vmem:[%s1389_s4 + $0x38] sm:$0xff] %v957_v4  }

// kernel: tile.33
= control target key start
LH: loop header
LB: loop body
LE: loop exit
PB: predicated region body
PF: predicated region fallthrough
CT: control target
= control target key end

     0   :  { %s22_s0 = inlined_call_operand.vmem [shape: f32[8], index: 0, kind: input, shape index: {}]   ;;  %s23_s1 = inlined_call_operand.vmem [shape: f32[4,8], index: 1, kind: output, shape index: {}]  }
   0x1   :  { %v4_v0 = vld [vmem:[%s22_s0] ss:$0 sm:$0xff] }
   0x2   :  { %5 = vst [vmem:[%s23_s1] sm:$0xf] %v4_v0 }

// kernel: mul.87
= control target key start
LH: loop header
LB: loop body
LE: loop exit
PB: predicated region body
PF: predicated region fallthrough
CT: control target
= control target key end

     0   :  { %vm7_vm0 = vcmask 64512   ;;  %s37_s8 = smov 8   ;;  %s38_s9 = smov 16   ;;  %vm13_vm1 = vcmask 261312   ;;  %vm19_vm2 = vcmask 195712   ;;  %vm25_vm3 = vcmask 130112   ;;  %s55_s0 = inlined_call_operand.vmem [shape: f32[4,8], index: 0, kind: input, shape index: {}]   ;;  %s56_s1 = inlined_call_operand.vmem [shape: f32[32], index: 1, kind: output, shape index: {}]  }
   0x1   :  { %v4_v0 = vld [vmem:[%s55_s0] sm:$0xf]  ;;  %s36_s0 = smov 24  }
   0x2   :  { %5 = vst [vmem:[#allocation1] sm:$0xf] %v4_v0 }
   0x9   :  { %v10_v1 = vld [vmem:[#allocation1 + $0x3] sm:$0x1]   ;;  %v22_v2 = vld [vmem:[#allocation1 + $0x1] sm:$0x1]   ;;  %v6_v3 = vld [vmem:[#allocation1] sm:$0x1]  }
   0xa   :  { %11 = vrot.lane.b32.xlu0 %v10_v1, %s36_s0  ;;  %23 = vrot.lane.b32.xlu1 %v22_v2, %s37_s8  ;;  %v16_v4 = vld [vmem:[#allocation1 + $0x2] sm:$0x1]   ;;  %8 = vst.msk [vmem:[#allocation0] sm:$0x1] %vm7_vm0, %v6_v3  }
   0xe   :  { %17 = vrot.lane.b32.xlu0 %v16_v4, %s38_s9 }
  0x7c   :  { %v12_v5 = vpop.permute.xlu0 %11   ;;  %v24_v6 = vpop.permute.xlu1 %23  }
  0x7d   :  { %14 = vst.msk [vmem:[#allocation0] sm:$0x1] %vm13_vm1, %v12_v5  }
  0x80   :  { %v18_v7 = vpop.permute.xlu0 %17  }
  0x81   :  { %20 = vst.msk [vmem:[#allocation0] sm:$0x1] %vm19_vm2, %v18_v7  }
  0x82   :  { %26 = vst.msk [vmem:[#allocation0] sm:$0x1] %vm25_vm3, %v24_v6  }
  0x89   :  { %v30_v8 = vld [vmem:[#allocation0] sm:$0x1] }
  0x8a   :  { %32 = vst [vmem:[%s56_s1] sm:$0x1] %v30_v8 }

// kernel: global_generator_forward.19
= control target key start
LH: loop header
LB: loop body
LE: loop exit
PB: predicated region body
PF: predicated region fallthrough
CT: control target
= control target key end

     0   :  { %v2662_v0 = vmov 0   ;;  %s3461_s1 = inlined_call_operand.vmem [shape: bf16[512,128], index: 1, kind: input, shape index: {}]   ;;  %s3462_s0 = inlined_call_operand.vmem [shape: bf16[512,512], index: 0, kind: input, shape index: {}]   ;;  %s3463_s2 = inlined_call_operand.vmem [shape: f32[1,128], index: 2, kind: input, shape index: {}]   ;;  %s3464_s3 = inlined_call_operand.vmem [shape: f32[512,128], index: 3, kind: output, shape index: {}]  }
   0x1   :  { %1171 = vmatprep.subr.bf16.mxu0 %v2662_v0  ;;  %1460 = vmatprep.subr.bf16.mxu1 %v2662_v0  ;;  %v2309_v1 = vld [vmem:[%s3461_s1] sm:$0xff]   ;;  %v2311_v3 = vld [vmem:[%s3461_s1 + $0x8] sm:$0xff]   ;;  %v2313_v5 = vld [vmem:[%s3461_s1 + $0x10] sm:$0xff]  }
   0x2   :  { %v2310_v2 = vld [vmem:[%s3461_s1 + $0x80] sm:$0xff]   ;;  %1172 = vmatpush1.bf16.msra.mxu0 %v2309_v1  ;;  %v2312_v4 = vld [vmem:[%s3461_s1 + $0x88] sm:$0xff]   ;;  %v2314_v6 = vld [vmem:[%s3461_s1 + $0x90] sm:$0xff]  }
   0x3   :  { %1461 = vmatpush1.bf16.msra.mxu1 %v2310_v2  ;;  %1173 = vmatprep.subr.bf16.mxu0 %v2662_v0  ;;  %v2315_v7 = vld [vmem:[%s3461_s1 + $0x18] sm:$0xff]   ;;  %v2317_v9 = vld [vmem:[%s3461_s1 + $0x20] sm:$0xff]   ;;  %v2319_v11 = vld [vmem:[%s3461_s1 + $0x28] sm:$0xff]  }
   0x4   :  { %1462 = vmatprep.subr.bf16.mxu1 %v2662_v0  ;;  %v2316_v8 = vld [vmem:[%s3461_s1 + $0x98] sm:$0xff]   ;;  %v2318_v10 = vld [vmem:[%s3461_s1 + $0xa0] sm:$0xff]   ;;  %v2320_v12 = vld [vmem:[%s3461_s1 + $0xa8] sm:$0xff]  }
   0x5   :  { %v2321_v13 = vld [vmem:[%s3461_s1 + $0x30] sm:$0xff]   ;;  %v2323_v15 = vld [vmem:[%s3461_s1 + $0x38] sm:$0xff]   ;;  %v2325_v17 = vld [vmem:[%s3461_s1 + $0x40] sm:$0xff]  }
   0x6   :  { %1174 = vmatpush1.bf16.msra.mxu0 %v2311_v3  ;;  %v2322_v14 = vld [vmem:[%s3461_s1 + $0xb0] sm:$0xff]   ;;  %v2324_v16 = vld [vmem:[%s3461_s1 + $0xb8] sm:$0xff]   ;;  %v2326_v18 = vld [vmem:[%s3461_s1 + $0xc0] sm:$0xff]  }
   0x7   :  { %1463 = vmatpush1.bf16.msra.mxu1 %v2312_v4  ;;  %1175 = vmatprep.subr.bf16.mxu0 %v2662_v0  ;;  %v2343_v19 = vld [vmem:[%s3462_s0 + $0x4] ss:$16 sps:$4 sm:$0xff]   ;;  %v2327_v20 = vld [vmem:[%s3461_s1 + $0x48] sm:$0xff]   ;;  %v2331_v25 = vld [vmem:[%s3461_s1 + $0x58] sm:$0xff]  }
   0x8   :  { %1464 = vmatprep.subr.bf16.mxu1 %v2662_v0  ;;  %v2346_v21 = vld [vmem:[%s3462_s0 + $0xc] ss:$16 sps:$4 sm:$0xff]   ;;  %1203 = vmatprep.mubr.bf16.mxu0 %v2343_v19  ;;  %v2329_v23 = vld [vmem:[%s3461_s1 + $0x50] sm:$0xff]   ;;  %v2333_v27 = vld [vmem:[%s3461_s1 + $0x60] sm:$0xff]  }
   0x9   :  { %v2328_v22 = vld [vmem:[%s3461_s1 + $0xc8] sm:$0xff]   ;;  %1492 = vmatprep.mubr.bf16.mxu1 %v2346_v21  ;;  %v2330_v24 = vld [vmem:[%s3461_s1 + $0xd0] sm:$0xff]   ;;  %v2332_v26 = vld [vmem:[%s3461_s1 + $0xd8] sm:$0xff]  }
   0xa   :  { %1176 = vmatpush1.bf16.msra.mxu0 %v2313_v5  ;;  %v2334_v28 = vld [vmem:[%s3461_s1 + $0xe0] sm:$0xff]   ;;  %v2335_v29 = vld [vmem:[%s3461_s1 + $0x68] sm:$0xff]   ;;  %v2337_v31 = vld [vmem:[%s3461_s1 + $0x70] sm:$0xff]  }
   0xb   :  { %1465 = vmatpush1.bf16.msra.mxu1 %v2314_v6  ;;  %1177 = vmatprep.subr.bf16.mxu0 %v2662_v0  ;;  %v2336_v30 = vld [vmem:[%s3461_s1 + $0xe8] sm:$0xff]   ;;  %v2338_v32 = vld [vmem:[%s3461_s1 + $0xf0] sm:$0xff]   ;;  %v2339_v33 = vld [vmem:[%s3461_s1 + $0x78] sm:$0xff]  }
   0xc   :  { %1466 = vmatprep.subr.bf16.mxu1 %v2662_v0  ;;  %v2340_v34 = vld [vmem:[%s3461_s1 + $0xf8] sm:$0xff]   ;;  %v2341_v35 = vld [vmem:[%s3462_s0] ss:$16 sps:$4 sm:$0xff]   ;;  %v2347_v37 = vld [vmem:[%s3462_s0 + $0x24] ss:$16 sps:$4 sm:$0xff]  }
   0xd   :  { %v2344_v36 = vld [vmem:[%s3462_s0 + $0x8] ss:$16 sps:$4 sm:$0xff]   ;;  %v2349_v38 = vld [vmem:[%s3462_s0 + $0x2c] ss:$16 sps:$4 sm:$0xff]   ;;  %v2351_v39 = vld [vmem:[%s3462_s0 + $0x20] ss:$16 sps:$4 sm:$0xff]  }
   0xe   :  { %1178 = vmatpush1.bf16.msra.mxu0 %v2315_v7  ;;  %v2352_v40 = vld [vmem:[%s3462_s0 + $0x28] ss:$16 sps:$4 sm:$0xff]   ;;  %v2353_v41 = vld [vmem:[%s3462_s0 + $0x44] ss:$16 sps:$4 sm:$0xff]   ;;  %v2355_v42 = vld [vmem:[%s3462_s0 + $0x4c] ss:$16 sps:$4 sm:$0xff]  }
   0xf   :  { %1467 = vmatpush1.bf16.msra.mxu1 %v2316_v8  ;;  %1179 = vmatprep.subr.bf16.mxu0 %v2662_v0  ;;  %v2357_v43 = vld [vmem:[%s3462_s0 + $0x40] ss:$16 sps:$4 sm:$0xff]   ;;  %v2358_v44 = vld [vmem:[%s3462_s0 + $0x48] ss:$16 sps:$4 sm:$0xff]   ;;  %v2359_v45 = vld [vmem:[%s3462_s0 + $0x64] ss:$16 sps:$4 sm:$0xff]  }
  0x10   :  { %1468 = vmatprep.subr.bf16.mxu1 %v2662_v0  ;;  %v2361_v46 = vld [vmem:[%s3462_s0 + $0x6c] ss:$16 sps:$4 sm:$0xff]   ;;  %v2363_v47 = vld [vmem:[%s3462_s0 + $0x60] ss:$16 sps:$4 sm:$0xff]   ;;  %v2364_v48 = vld [vmem:[%s3462_s0 + $0x68] ss:$16 sps:$4 sm:$0xff]  }
  0x11   :  { %v2365_v49 = vld [vmem:[%s3462_s0 + $0x84] ss:$16 sps:$4 sm:$0xff]   ;;  %v2367_v50 = vld [vmem:[%s3462_s0 + $0x8c] ss:$16 sps:$4 sm:$0xff]   ;;  %v2369_v51 = vld [vmem:[%s3462_s0 + $0x80] ss:$16 sps:$4 sm:$0xff]  }
  0x12   :  { %1180 = vmatpush1.bf16.msra.mxu0 %v2317_v9  ;;  %v2370_v52 = vld [vmem:[%s3462_s0 + $0x88] ss:$16 sps:$4 sm:$0xff]   ;;  %v2371_v53 = vld [vmem:[%s3462_s0 + $0xa4] ss:$16 sps:$4 sm:$0xff]   ;;  %v2373_v54 = vld [vmem:[%s3462_s0 + $0xac] ss:$16 sps:$4 sm:$0xff]  }
  0x13   :  { %1469 = vmatpush1.bf16.msra.mxu1 %v2318_v10  ;;  %1181 = vmatprep.subr.bf16.mxu0 %v2662_v0  ;;  %v2375_v55 = vld [vmem:[%s3462_s0 + $0xa0] ss:$16 sps:$4 sm:$0xff]   ;;  %v2376_v56 = vld [vmem:[%s3462_s0 + $0xa8] ss:$16 sps:$4 sm:$0xff]   ;;  %v2377_v57 = vld [vmem:[%s3462_s0 + $0xc4] ss:$16 sps:$4 sm:$0xff]  }
  0x14   :  { %1470 = vmatprep.subr.bf16.mxu1 %v2662_v0  ;;  %v2379_v58 = vld [vmem:[%s3462_s0 + $0xcc] ss:$16 sps:$4 sm:$0xff]   ;;  %v2381_v59 = vld [vmem:[%s3462_s0 + $0xc0] ss:$16 sps:$4 sm:$0xff]   ;;  %v2382_v60 = vld [vmem:[%s3462_s0 + $0xc8] ss:$16 sps:$4 sm:$0xff]  }
  0x15   :  { %v2383_v61 = vld [vmem:[%s3462_s0 + $0xe4] ss:$16 sps:$4 sm:$0xff]   ;;  %v2385_v62 = vld [vmem:[%s3462_s0 + $0xec] ss:$16 sps:$4 sm:$0xff]   ;;  %v2387_v63 = vld [vmem:[%s3462_s0 + $0xe0] ss:$16 sps:$4 sm:$0xff]  }
  0x16   :  { %1182 = vmatpush1.bf16.msra.mxu0 %v2319_v11  ;;  %v2389_v1 = vld [vmem:[%s3462_s0 + $0x104] ss:$16 sps:$4 sm:$0xff]   ;;  %v2391_v2 = vld [vmem:[%s3462_s0 + $0x10c] ss:$16 sps:$4 sm:$0xff]   ;;  %v2393_v3 = vld [vmem:[%s3462_s0 + $0x100] ss:$16 sps:$4 sm:$0xff]  }
  0x17   :  { %1471 = vmatpush1.bf16.msra.mxu1 %v2320_v12  ;;  %1183 = vmatprep.subr.bf16.mxu0 %v2662_v0  ;;  %v2394_v4 = vld [vmem:[%s3462_s0 + $0x108] ss:$16 sps:$4 sm:$0xff]   ;;  %v2395_v5 = vld [vmem:[%s3462_s0 + $0x124] ss:$16 sps:$4 sm:$0xff]   ;;  %v2397_v6 = vld [vmem:[%s3462_s0 + $0x12c] ss:$16 sps:$4 sm:$0xff]  }
  0x18   :  { %1472 = vmatprep.subr.bf16.mxu1 %v2662_v0  ;;  %v2399_v7 = vld [vmem:[%s3462_s0 + $0x120] ss:$16 sps:$4 sm:$0xff]   ;;  %v2400_v8 = vld [vmem:[%s3462_s0 + $0x128] ss:$16 sps:$4 sm:$0xff]   ;;  %v2401_v9 = vld [vmem:[%s3462_s0 + $0x144] ss:$16 sps:$4 sm:$0xff]  }
  0x19   :  { %v2403_v10 = vld [vmem:[%s3462_s0 + $0x14c] ss:$16 sps:$4 sm:$0xff]   ;;  %v2405_v11 = vld [vmem:[%s3462_s0 + $0x140] ss:$16 sps:$4 sm:$0xff]   ;;  %v2406_v12 = vld [vmem:[%s3462_s0 + $0x148] ss:$16 sps:$4 sm:$0xff]  }
  0x1a   :  { %1184 = vmatpush1.bf16.msra.mxu0 %v2321_v13  ;;  %v2407_v13 = vld [vmem:[%s3462_s0 + $0x164] ss:$16 sps:$4 sm:$0xff]   ;;  %v2417_v19 = vld [vmem:[%s3462_s0 + $0x180] ss:$16 sps:$4 sm:$0xff]  }
  0x1b   :  { %1473 = vmatpush1.bf16.msra.mxu1 %v2322_v14  ;;  %1185 = vmatprep.subr.bf16.mxu0 %v2662_v0  ;;  %v2409_v14 = vld [vmem:[%s3462_s0 + $0x16c] ss:$16 sps:$4 sm:$0xff]   ;;  %v2419_v21 = vld [vmem:[%s3462_s0 + $0x1a4] ss:$16 sps:$4 sm:$0xff]  }
  0x1c   :  { %1474 = vmatprep.subr.bf16.mxu1 %v2662_v0 }
  0x1e   :  { %1186 = vmatpush1.bf16.msra.mxu0 %v2323_v15  ;;  %v2411_v15 = vld [vmem:[%s3462_s0 + $0x160] ss:$16 sps:$4 sm:$0xff]  }
  0x1f   :  { %1475 = vmatpush1.bf16.msra.mxu1 %v2324_v16  ;;  %1187 = vmatprep.subr.bf16.mxu0 %v2662_v0  ;;  %v2412_v16 = vld [vmem:[%s3462_s0 + $0x168] ss:$16 sps:$4 sm:$0xff]  }
  0x20   :  { %1476 = vmatprep.subr.bf16.mxu1 %v2662_v0 }
  0x22   :  { %1188 = vmatpush1.bf16.msra.mxu0 %v2325_v17  ;;  %v2413_v17 = vld [vmem:[%s3462_s0 + $0x184] ss:$16 sps:$4 sm:$0xff]  }
  0x23   :  { %1477 = vmatpush1.bf16.msra.mxu1 %v2326_v18  ;;  %1189 = vmatprep.subr.bf16.mxu0 %v2662_v0  ;;  %v2415_v18 = vld [vmem:[%s3462_s0 + $0x18c] ss:$16 sps:$4 sm:$0xff]  }
  0x24   :  { %1478 = vmatprep.subr.bf16.mxu1 %v2662_v0 }
  0x26   :  { %1190 = vmatpush1.bf16.msra.mxu0 %v2327_v20  ;;  %v2418_v20 = vld [vmem:[%s3462_s0 + $0x188] ss:$16 sps:$4 sm:$0xff]  }
  0x27   :  { %1479 = vmatpush1.bf16.msra.mxu1 %v2328_v22  ;;  %1191 = vmatprep.subr.bf16.mxu0 %v2662_v0  ;;  %v2421_v22 = vld [vmem:[%s3462_s0 + $0x1ac] ss:$16 sps:$4 sm:$0xff]  }
  0x28   :  { %1480 = vmatprep.subr.bf16.mxu1 %v2662_v0 }
  0x2a   :  { %1192 = vmatpush1.bf16.msra.mxu0 %v2329_v23  ;;  %v2423_v23 = vld [vmem:[%s3462_s0 + $0x1a0] ss:$16 sps:$4 sm:$0xff]  }
  0x2b   :  { %1481 = vmatpush1.bf16.msra.mxu1 %v2330_v24  ;;  %1193 = vmatprep.subr.bf16.mxu0 %v2662_v0  ;;  %v2424_v24 = vld [vmem:[%s3462_s0 + $0x1a8] ss:$16 sps:$4 sm:$0xff]  }
  0x2c   :  { %1482 = vmatprep.subr.bf16.mxu1 %v2662_v0 }
  0x2e   :  { %1194 = vmatpush1.bf16.msra.mxu0 %v2331_v25  ;;  %v2425_v25 = vld [vmem:[%s3462_s0 + $0x1c4] ss:$16 sps:$4 sm:$0xff]  }
  0x2f   :  { %1483 = vmatpush1.bf16.msra.mxu1 %v2332_v26  ;;  %1195 = vmatprep.subr.bf16.mxu0 %v2662_v0  ;;  %v2427_v26 = vld [vmem:[%s3462_s0 + $0x1cc] ss:$16 sps:$4 sm:$0xff]  }
  0x30   :  { %1484 = vmatprep.subr.bf16.mxu1 %v2662_v0 }
  0x32   :  { %1196 = vmatpush1.bf16.msra.mxu0 %v2333_v27  ;;  %v2429_v27 = vld [vmem:[%s3462_s0 + $0x1c0] ss:$16 sps:$4 sm:$0xff]  }
  0x33   :  { %1485 = vmatpush1.bf16.msra.mxu1 %v2334_v28  ;;  %1197 = vmatprep.subr.bf16.mxu0 %v2662_v0  ;;  %v2430_v28 = vld [vmem:[%s3462_s0 + $0x1c8] ss:$16 sps:$4 sm:$0xff]  }
  0x34   :  { %1486 = vmatprep.subr.bf16.mxu1 %v2662_v0 }
  0x36   :  { %1198 = vmatpush1.bf16.msra.mxu0 %v2335_v29  ;;  %v2431_v29 = vld [vmem:[%s3462_s0 + $0x1e4] ss:$16 sps:$4 sm:$0xff]  }
  0x37   :  { %1487 = vmatpush1.bf16.msra.mxu1 %v2336_v30  ;;  %1199 = vmatprep.subr.bf16.mxu0 %v2662_v0  ;;  %v2433_v30 = vld [vmem:[%s3462_s0 + $0x1ec] ss:$16 sps:$4 sm:$0xff]  }
  0x38   :  { %1488 = vmatprep.subr.bf16.mxu1 %v2662_v0 }
  0x3a   :  { %1200 = vmatpush1.bf16.msra.mxu0 %v2337_v31  ;;  %v2435_v31 = vld [vmem:[%s3462_s0 + $0x1e0] ss:$16 sps:$4 sm:$0xff]  }
  0x3b   :  { %1489 = vmatpush1.bf16.msra.mxu1 %v2338_v32  ;;  %1201 = vmatprep.subr.bf16.mxu0 %v2662_v0  ;;  %v2436_v32 = vld [vmem:[%s3462_s0 + $0x1e8] ss:$16 sps:$4 sm:$0xff]  }
  0x3c   :  { %1490 = vmatprep.subr.bf16.mxu1 %v2662_v0  ;;  %v2388_v0 = vld [vmem:[%s3462_s0 + $0xe8] ss:$16 sps:$4 sm:$0xff]  }
  0x3e   :  { %1202 = vmatpush1.bf16.msra.mxu0 %v2339_v33  ;;  %v2437_v33 = vld [vmem:[%s3462_s0 + $0x204] ss:$16 sps:$4 sm:$0xff]  }
  0x3f   :  { %1491 = vmatpush1.bf16.msra.mxu1 %v2340_v34  ;;  %v2439_v34 = vld [vmem:[%s3462_s0 + $0x20c] ss:$16 sps:$4 sm:$0xff]  }
  0x41   :  { %1204 = vmatmul.mubr.bf16.vlgmr.msra.gmra.mrb[0].mxu0 %v2341_v35  ;;  %v2441_v35 = vld [vmem:[%s3462_s0 + $0x200] ss:$16 sps:$4 sm:$0xff]  }
  0x42   :  { %1493 = vmatmul.mubr.bf16.vlgmr.msra.gmra.mrb[0].mxu1 %v2344_v36  ;;  %1211 = vmatprep.mubr.bf16.mxu0 %v2347_v37  ;;  %v2442_v36 = vld [vmem:[%s3462_s0 + $0x208] ss:$16 sps:$4 sm:$0xff]   ;;  %v2443_v37 = vld [vmem:[%s3462_s0 + $0x224] ss:$16 sps:$4 sm:$0xff]  }
  0x43   :  { %1500 = vmatprep.mubr.bf16.mxu1 %v2349_v38  ;;  %v2445_v38 = vld [vmem:[%s3462_s0 + $0x22c] ss:$16 sps:$4 sm:$0xff]  }
  0x49   :  { %1212 = vmatmul.mubr.bf16.gmra.mrb[4].mxu0 %v2351_v39  ;;  %v2447_v39 = vld [vmem:[%s3462_s0 + $0x220] ss:$16 sps:$4 sm:$0xff]  }
  0x4a   :  { %1501 = vmatmul.mubr.bf16.gmra.mrb[4].mxu1 %v2352_v40  ;;  %1219 = vmatprep.mubr.bf16.mxu0 %v2353_v41  ;;  %v2448_v40 = vld [vmem:[%s3462_s0 + $0x228] ss:$16 sps:$4 sm:$0xff]   ;;  %v2449_v41 = vld [vmem:[%s3462_s0 + $0x244] ss:$16 sps:$4 sm:$0xff]  }
  0x4b   :  { %1508 = vmatprep.mubr.bf16.mxu1 %v2355_v42  ;;  %v2451_v42 = vld [vmem:[%s3462_s0 + $0x24c] ss:$16 sps:$4 sm:$0xff]  }
  0x51   :  { %1220 = vmatmul.mubr.bf16.gmra.mrb[8].mxu0 %v2357_v43  ;;  %v2453_v43 = vld [vmem:[%s3462_s0 + $0x240] ss:$16 sps:$4 sm:$0xff]  }
  0x52   :  { %1509 = vmatmul.mubr.bf16.gmra.mrb[8].mxu1 %v2358_v44  ;;  %1227 = vmatprep.mubr.bf16.mxu0 %v2359_v45  ;;  %v2454_v44 = vld [vmem:[%s3462_s0 + $0x248] ss:$16 sps:$4 sm:$0xff]   ;;  %v2455_v45 = vld [vmem:[%s3462_s0 + $0x264] ss:$16 sps:$4 sm:$0xff]  }
  0x53   :  { %1516 = vmatprep.mubr.bf16.mxu1 %v2361_v46  ;;  %v2457_v46 = vld [vmem:[%s3462_s0 + $0x26c] ss:$16 sps:$4 sm:$0xff]  }
  0x59   :  { %1228 = vmatmul.mubr.bf16.gmra.mrb[12].mxu0 %v2363_v47  ;;  %v2459_v47 = vld [vmem:[%s3462_s0 + $0x260] ss:$16 sps:$4 sm:$0xff]  }
  0x5a   :  { %1517 = vmatmul.mubr.bf16.gmra.mrb[12].mxu1 %v2364_v48  ;;  %1235 = vmatprep.mubr.bf16.mxu0 %v2365_v49  ;;  %v2460_v48 = vld [vmem:[%s3462_s0 + $0x268] ss:$16 sps:$4 sm:$0xff]   ;;  %v2461_v49 = vld [vmem:[%s3462_s0 + $0x284] ss:$16 sps:$4 sm:$0xff]  }
  0x5b   :  { %1524 = vmatprep.mubr.bf16.mxu1 %v2367_v50  ;;  %v2463_v50 = vld [vmem:[%s3462_s0 + $0x28c] ss:$16 sps:$4 sm:$0xff]  }
  0x61   :  { %1236 = vmatmul.mubr.bf16.gmra.mrb[16].mxu0 %v2369_v51  ;;  %v2465_v51 = vld [vmem:[%s3462_s0 + $0x280] ss:$16 sps:$4 sm:$0xff]  }
  0x62   :  { %1525 = vmatmul.mubr.bf16.gmra.mrb[16].mxu1 %v2370_v52  ;;  %1243 = vmatprep.mubr.bf16.mxu0 %v2371_v53  ;;  %v2466_v52 = vld [vmem:[%s3462_s0 + $0x288] ss:$16 sps:$4 sm:$0xff]   ;;  %v2467_v53 = vld [vmem:[%s3462_s0 + $0x2a4] ss:$16 sps:$4 sm:$0xff]  }
  0x63   :  { %1532 = vmatprep.mubr.bf16.mxu1 %v2373_v54  ;;  %v2469_v54 = vld [vmem:[%s3462_s0 + $0x2ac] ss:$16 sps:$4 sm:$0xff]  }
  0x69   :  { %1244 = vmatmul.mubr.bf16.gmra.mrb[20].mxu0 %v2375_v55  ;;  %v2471_v55 = vld [vmem:[%s3462_s0 + $0x2a0] ss:$16 sps:$4 sm:$0xff]  }
  0x6a   :  { %1533 = vmatmul.mubr.bf16.gmra.mrb[20].mxu1 %v2376_v56  ;;  %1251 = vmatprep.mubr.bf16.mxu0 %v2377_v57  ;;  %v2472_v56 = vld [vmem:[%s3462_s0 + $0x2a8] ss:$16 sps:$4 sm:$0xff]   ;;  %v2473_v57 = vld [vmem:[%s3462_s0 + $0x2c4] ss:$16 sps:$4 sm:$0xff]  }
  0x6b   :  { %1540 = vmatprep.mubr.bf16.mxu1 %v2379_v58  ;;  %v2475_v58 = vld [vmem:[%s3462_s0 + $0x2cc] ss:$16 sps:$4 sm:$0xff]  }
  0x71   :  { %1252 = vmatmul.mubr.bf16.gmra.mrb[24].mxu0 %v2381_v59  ;;  %v2477_v59 = vld [vmem:[%s3462_s0 + $0x2c0] ss:$16 sps:$4 sm:$0xff]  }
  0x72   :  { %1541 = vmatmul.mubr.bf16.gmra.mrb[24].mxu1 %v2382_v60  ;;  %1259 = vmatprep.mubr.bf16.mxu0 %v2383_v61  ;;  %v2478_v60 = vld [vmem:[%s3462_s0 + $0x2c8] ss:$16 sps:$4 sm:$0xff]   ;;  %v2479_v61 = vld [vmem:[%s3462_s0 + $0x2e4] ss:$16 sps:$4 sm:$0xff]  }
  0x73   :  { %1548 = vmatprep.mubr.bf16.mxu1 %v2385_v62  ;;  %v2481_v62 = vld [vmem:[%s3462_s0 + $0x2ec] ss:$16 sps:$4 sm:$0xff]  }
  0x79   :  { %1260 = vmatmul.mubr.bf16.gmra.mrb[28].mxu0 %v2387_v63  ;;  %v2483_v63 = vld [vmem:[%s3462_s0 + $0x2e0] ss:$16 sps:$4 sm:$0xff]  }
  0x7a   :  { %1549 = vmatmul.mubr.bf16.gmra.mrb[28].mxu1 %v2388_v0  ;;  %1267 = vmatprep.mubr.bf16.mxu0 %v2389_v1  ;;  %v2484_v0 = vld [vmem:[%s3462_s0 + $0x2e8] ss:$16 sps:$4 sm:$0xff]   ;;  %v2485_v1 = vld [vmem:[%s3462_s0 + $0x304] ss:$16 sps:$4 sm:$0xff]  }
  0x7b   :  { %1556 = vmatprep.mubr.bf16.mxu1 %v2391_v2  ;;  %v2487_v2 = vld [vmem:[%s3462_s0 + $0x30c] ss:$16 sps:$4 sm:$0xff]  }
  0x81   :  { %1268 = vmatmul.mubr.bf16.gmra.mrb[32].mxu0 %v2393_v3  ;;  %v2489_v3 = vld [vmem:[%s3462_s0 + $0x300] ss:$16 sps:$4 sm:$0xff]  }
  0x82   :  { %1557 = vmatmul.mubr.bf16.gmra.mrb[32].mxu1 %v2394_v4  ;;  %1275 = vmatprep.mubr.bf16.mxu0 %v2395_v5  ;;  %v2490_v4 = vld [vmem:[%s3462_s0 + $0x308] ss:$16 sps:$4 sm:$0xff]   ;;  %v2491_v5 = vld [vmem:[%s3462_s0 + $0x324] ss:$16 sps:$4 sm:$0xff]  }
  0x83   :  { %1564 = vmatprep.mubr.bf16.mxu1 %v2397_v6  ;;  %v2493_v6 = vld [vmem:[%s3462_s0 + $0x32c] ss:$16 sps:$4 sm:$0xff]  }
  0x89   :  { %1276 = vmatmul.mubr.bf16.gmra.mrb[36].mxu0 %v2399_v7  ;;  %v2495_v7 = vld [vmem:[%s3462_s0 + $0x320] ss:$16 sps:$4 sm:$0xff]  }
  0x8a   :  { %1565 = vmatmul.mubr.bf16.gmra.mrb[36].mxu1 %v2400_v8  ;;  %1283 = vmatprep.mubr.bf16.mxu0 %v2401_v9  ;;  %v2496_v8 = vld [vmem:[%s3462_s0 + $0x328] ss:$16 sps:$4 sm:$0xff]   ;;  %v2497_v9 = vld [vmem:[%s3462_s0 + $0x344] ss:$16 sps:$4 sm:$0xff]  }
  0x8b   :  { %1572 = vmatprep.mubr.bf16.mxu1 %v2403_v10  ;;  %v2499_v10 = vld [vmem:[%s3462_s0 + $0x34c] ss:$16 sps:$4 sm:$0xff]  }
  0x91   :  { %1284 = vmatmul.mubr.bf16.gmra.mrb[40].mxu0 %v2405_v11  ;;  %v2501_v11 = vld [vmem:[%s3462_s0 + $0x340] ss:$16 sps:$4 sm:$0xff]  }
  0x92   :  { %1573 = vmatmul.mubr.bf16.gmra.mrb[40].mxu1 %v2406_v12  ;;  %1291 = vmatprep.mubr.bf16.mxu0 %v2407_v13  ;;  %v2502_v12 = vld [vmem:[%s3462_s0 + $0x348] ss:$16 sps:$4 sm:$0xff]   ;;  %v2503_v13 = vld [vmem:[%s3462_s0 + $0x364] ss:$16 sps:$4 sm:$0xff]  }
  0x93   :  { %1580 = vmatprep.mubr.bf16.mxu1 %v2409_v14  ;;  %v2505_v14 = vld [vmem:[%s3462_s0 + $0x36c] ss:$16 sps:$4 sm:$0xff]  }
  0x99   :  { %1292 = vmatmul.mubr.bf16.gmra.mrb[44].mxu0 %v2411_v15 }
  0x9a   :  { %1581 = vmatmul.mubr.bf16.gmra.mrb[44].mxu1 %v2412_v16  ;;  %1299 = vmatprep.mubr.bf16.mxu0 %v2413_v17  ;;  %v3144_v17 = vld [vmem:[%s3463_s2] ss:$0 sm:$0xff] }
  0x9b   :  { %1588 = vmatprep.mubr.bf16.mxu1 %v2415_v18 }
  0xa1   :  { %1300 = vmatmul.mubr.bf16.gmra.mrb[48].mxu0 %v2417_v19  ;;  %v2507_v19 = vld [vmem:[%s3462_s0 + $0x360] ss:$16 sps:$4 sm:$0xff]  }
  0xa2   :  { %1589 = vmatmul.mubr.bf16.gmra.mrb[48].mxu1 %v2418_v20  ;;  %1307 = vmatprep.mubr.bf16.mxu0 %v2419_v21 }
  0xa3   :  { %1596 = vmatprep.mubr.bf16.mxu1 %v2421_v22 }
  0xa9   :  { %1308 = vmatmul.mubr.bf16.gmra.mrb[52].mxu0 %v2423_v23  ;;  %v2508_v23 = vld [vmem:[%s3462_s0 + $0x368] ss:$16 sps:$4 sm:$0xff]  }
  0xaa   :  { %1597 = vmatmul.mubr.bf16.gmra.mrb[52].mxu1 %v2424_v24  ;;  %1315 = vmatprep.mubr.bf16.mxu0 %v2425_v25  ;;  %v2509_v24 = vld [vmem:[%s3462_s0 + $0x384] ss:$16 sps:$4 sm:$0xff]  }
  0xab   :  { %1604 = vmatprep.mubr.bf16.mxu1 %v2427_v26 }
  0xb1   :  { %1316 = vmatmul.mubr.bf16.gmra.mrb[56].mxu0 %v2429_v27  ;;  %v2511_v27 = vld [vmem:[%s3462_s0 + $0x38c] ss:$16 sps:$4 sm:$0xff]  }
  0xb2   :  { %1605 = vmatmul.mubr.bf16.gmra.mrb[56].mxu1 %v2430_v28  ;;  %1323 = vmatprep.mubr.bf16.mxu0 %v2431_v29 }
  0xb3   :  { %1612 = vmatprep.mubr.bf16.mxu1 %v2433_v30 }
  0xb9   :  { %1324 = vmatmul.mubr.bf16.gmra.mrb[60].mxu0 %v2435_v31 }
  0xba   :  { %1613 = vmatmul.mubr.bf16.gmra.mrb[60].mxu1 %v2436_v32  ;;  %1331 = vmatprep.mubr.bf16.mxu0 %v2437_v33 }
  0xbb   :  { %1620 = vmatprep.mubr.bf16.mxu1 %v2439_v34 }
  0xc1   :  { %1332 = vmatmul.mubr.bf16.gmra.mrb[64].mxu0 %v2441_v35  ;;  %v2513_v35 = vld [vmem:[%s3462_s0 + $0x380] ss:$16 sps:$4 sm:$0xff]  }
  0xc2   :  { %1621 = vmatmul.mubr.bf16.gmra.mrb[64].mxu1 %v2442_v36  ;;  %1339 = vmatprep.mubr.bf16.mxu0 %v2443_v37 }
  0xc3   :  { %1628 = vmatprep.mubr.bf16.mxu1 %v2445_v38 }
  0xc9   :  { %1340 = vmatmul.mubr.bf16.gmra.mrb[68].mxu0 %v2447_v39  ;;  %v2514_v39 = vld [vmem:[%s3462_s0 + $0x388] ss:$16 sps:$4 sm:$0xff]  }
  0xca   :  { %1629 = vmatmul.mubr.bf16.gmra.mrb[68].mxu1 %v2448_v40  ;;  %1347 = vmatprep.mubr.bf16.mxu0 %v2449_v41  ;;  %v2515_v40 = vld [vmem:[%s3462_s0 + $0x3a4] ss:$16 sps:$4 sm:$0xff]  }
  0xcb   :  { %1636 = vmatprep.mubr.bf16.mxu1 %v2451_v42 }
  0xd1   :  { %1348 = vmatmul.mubr.bf16.gmra.mrb[72].mxu0 %v2453_v43  ;;  %v2517_v43 = vld [vmem:[%s3462_s0 + $0x3ac] ss:$16 sps:$4 sm:$0xff]  }
  0xd2   :  { %1637 = vmatmul.mubr.bf16.gmra.mrb[72].mxu1 %v2454_v44  ;;  %1355 = vmatprep.mubr.bf16.mxu0 %v2455_v45 }
  0xd3   :  { %1644 = vmatprep.mubr.bf16.mxu1 %v2457_v46 }
  0xd9   :  { %1356 = vmatmul.mubr.bf16.gmra.mrb[76].mxu0 %v2459_v47 }
  0xda   :  { %1645 = vmatmul.mubr.bf16.gmra.mrb[76].mxu1 %v2460_v48  ;;  %1363 = vmatprep.mubr.bf16.mxu0 %v2461_v49 }
  0xdb   :  { %1652 = vmatprep.mubr.bf16.mxu1 %v2463_v50 }
  0xe1   :  { %1364 = vmatmul.mubr.bf16.gmra.mrb[80].mxu0 %v2465_v51 }
  0xe2   :  { %1653 = vmatmul.mubr.bf16.gmra.mrb[80].mxu1 %v2466_v52  ;;  %1371 = vmatprep.mubr.bf16.mxu0 %v2467_v53  ;;  %v2519_v52 = vld [vmem:[%s3462_s0 + $0x3a0] ss:$16 sps:$4 sm:$0xff]  }
  0xe3   :  { %1660 = vmatprep.mubr.bf16.mxu1 %v2469_v54 }
  0xe9   :  { %1372 = vmatmul.mubr.bf16.gmra.mrb[84].mxu0 %v2471_v55 }
  0xea   :  { %1661 = vmatmul.mubr.bf16.gmra.mrb[84].mxu1 %v2472_v56  ;;  %1379 = vmatprep.mubr.bf16.mxu0 %v2473_v57  ;;  %v2520_v57 = vld [vmem:[%s3462_s0 + $0x3a8] ss:$16 sps:$4 sm:$0xff]  }
  0xeb   :  { %1668 = vmatprep.mubr.bf16.mxu1 %v2475_v58  ;;  %v2521_v58 = vld [vmem:[%s3462_s0 + $0x3c4] ss:$16 sps:$4 sm:$0xff]  }
  0xf1   :  { %1380 = vmatmul.mubr.bf16.gmra.mrb[88].mxu0 %v2477_v59 }
  0xf2   :  { %1669 = vmatmul.mubr.bf16.gmra.mrb[88].mxu1 %v2478_v60  ;;  %1387 = vmatprep.mubr.bf16.mxu0 %v2479_v61  ;;  %v2523_v61 = vld [vmem:[%s3462_s0 + $0x3cc] ss:$16 sps:$4 sm:$0xff]  }
  0xf3   :  { %1676 = vmatprep.mubr.bf16.mxu1 %v2481_v62 }
  0xf9   :  { %1388 = vmatmul.mubr.bf16.gmra.mrb[92].mxu0 %v2483_v63 }
  0xfa   :  { %1677 = vmatmul.mubr.bf16.gmra.mrb[92].mxu1 %v2484_v0  ;;  %1395 = vmatprep.mubr.bf16.mxu0 %v2485_v1 }
  0xfb   :  { %1684 = vmatprep.mubr.bf16.mxu1 %v2487_v2 }
 0x101   :  { %1396 = vmatmul.mubr.bf16.gmra.mrb[96].mxu0 %v2489_v3 }
 0x102   :  { %1685 = vmatmul.mubr.bf16.gmra.mrb[96].mxu1 %v2490_v4  ;;  %1403 = vmatprep.mubr.bf16.mxu0 %v2491_v5 }
 0x103   :  { %1692 = vmatprep.mubr.bf16.mxu1 %v2493_v6  ;;  %v2525_v6 = vld [vmem:[%s3462_s0 + $0x3c0] ss:$16 sps:$4 sm:$0xff]  }
 0x109   :  { %1404 = vmatmul.mubr.bf16.gmra.mrb[100].mxu0 %v2495_v7 }
 0x10a   :  { %1693 = vmatmul.mubr.bf16.gmra.mrb[100].mxu1 %v2496_v8  ;;  %1411 = vmatprep.mubr.bf16.mxu0 %v2497_v9 }
 0x10b   :  { %1700 = vmatprep.mubr.bf16.mxu1 %v2499_v10 }
 0x111   :  { %1412 = vmatmul.mubr.bf16.gmra.mrb[104].mxu0 %v2501_v11  ;;  %v2526_v11 = vld [vmem:[%s3462_s0 + $0x3c8] ss:$16 sps:$4 sm:$0xff]  }
 0x112   :  { %1701 = vmatmul.mubr.bf16.gmra.mrb[104].mxu1 %v2502_v12  ;;  %1419 = vmatprep.mubr.bf16.mxu0 %v2503_v13  ;;  %v2527_v12 = vld [vmem:[%s3462_s0 + $0x3e4] ss:$16 sps:$4 sm:$0xff]  }
 0x113   :  { %1708 = vmatprep.mubr.bf16.mxu1 %v2505_v14 }
 0x114   :  { %v1205_v15 = vpop.f32.mrb[0].mxu0 }
 0x115   :  { %v1494_v16 = vpop.f32.mrb[0].mxu1  ;;  %v1207_v18 = vpop.f32.mrb[1].mxu0 }
 0x116   :  { %v1495_v20 = vadd.f32 %v1494_v16, %v1205_v15  ;;  %v1496_v21 = vpop.f32.mrb[1].mxu1  ;;  %v1208_v22 = vpop.f32.mrb[2].mxu0  ;;  %v2529_v15 = vld [vmem:[%s3462_s0 + $0x3ec] ss:$16 sps:$4 sm:$0xff]  }
 0x117   :  { %v1497_v25 = vpop.f32.mrb[2].mxu1  ;;  %v1210_v26 = vpop.f32.mrb[3].mxu0 }
 0x118   :  { %v1951_v28 = vadd.f32 %v3144_v17, %v1495_v20  ;;  %v1498_v29 = vadd.f32 %v1497_v25, %v1208_v22  ;;  %v1499_v30 = vpop.f32.mrb[3].mxu1  ;;  %v2531_v25 = vld [vmem:[%s3462_s0 + $0x3e0] ss:$16 sps:$4 sm:$0xff]  }
 0x119   :  { %1420 = vmatmul.mubr.bf16.gmra.mrb[108].mxu0 %v2507_v19  ;;  %v2532_v30 = vld [vmem:[%s3462_s0 + $0x3e8] ss:$16 sps:$4 sm:$0xff]  }
 0x11a   :  { %2533 = vtanh.f32 %v1951_v28  ;;  %v1952_v31 = vadd.f32 %v3144_v17, %v1498_v29  ;;  %1709 = vmatmul.mubr.bf16.gmra.mrb[108].mxu1 %v2508_v23  ;;  %1427 = vmatprep.mubr.bf16.mxu0 %v2509_v24 }
 0x11b   :  { %1716 = vmatprep.mubr.bf16.mxu1 %v2511_v27 }
 0x11c   :  { %2535 = vtanh.f32 %v1952_v31  ;;  %v1213_v32 = vpop.f32.mrb[4].mxu0 }
 0x11d   :  { %v1502_v33 = vpop.f32.mrb[4].mxu1  ;;  %v1215_v34 = vpop.f32.mrb[5].mxu0 }
 0x11e   :  { %v1503_v36 = vadd.f32 %v1502_v33, %v1213_v32  ;;  %v1504_v37 = vpop.f32.mrb[5].mxu1  ;;  %v1216_v38 = vpop.f32.mrb[6].mxu0 }
 0x11f   :  { %v1505_v41 = vpop.f32.mrb[6].mxu1  ;;  %v1218_v42 = vpop.f32.mrb[7].mxu0 }
 0x120   :  { %v1953_v44 = vadd.f32 %v3144_v17, %v1503_v36  ;;  %v1506_v45 = vadd.f32 %v1505_v41, %v1216_v38  ;;  %v1507_v46 = vpop.f32.mrb[7].mxu1 }
 0x121   :  { %1428 = vmatmul.mubr.bf16.gmra.mrb[112].mxu0 %v2513_v35 }
 0x122   :  { %2537 = vtanh.f32 %v1953_v44  ;;  %v1954_v47 = vadd.f32 %v3144_v17, %v1506_v45  ;;  %1717 = vmatmul.mubr.bf16.gmra.mrb[112].mxu1 %v2514_v39  ;;  %1435 = vmatprep.mubr.bf16.mxu0 %v2515_v40 }
 0x123   :  { %1724 = vmatprep.mubr.bf16.mxu1 %v2517_v43 }
 0x124   :  { %v2534_v48 = vpop.eup %2533  ;;  %2539 = vtanh.f32 %v1954_v47  ;;  %v1221_v49 = vpop.f32.mrb[8].mxu0 }
 0x125   :  { %2079 = vst [vmem:[%s3464_s3] sm:$0xff] %v2534_v48  ;;  %v1510_v50 = vpop.f32.mrb[8].mxu1  ;;  %v1223_v51 = vpop.f32.mrb[9].mxu0 }
 0x126   :  { %v2536_v53 = vpop.eup %2535  ;;  %v1511_v54 = vadd.f32 %v1510_v50, %v1221_v49  ;;  %v1512_v55 = vpop.f32.mrb[9].mxu1 }
 0x127   :  { %v1224_v56 = vpop.f32.mrb[10].mxu0  ;;  %2080 = vst [vmem:[%s3464_s3 + $0x8] sm:$0xff] %v2536_v53  ;;  %v1513_v59 = vpop.f32.mrb[10].mxu1 }
 0x128   :  { %v1226_v60 = vpop.f32.mrb[11].mxu0  ;;  %v1955_v62 = vadd.f32 %v3144_v17, %v1511_v54  ;;  %v1514_v63 = vadd.f32 %v1513_v59, %v1224_v56  ;;  %v1515_v0 = vpop.f32.mrb[11].mxu1 }
 0x129   :  { %1436 = vmatmul.mubr.bf16.gmra.mrb[116].mxu0 %v2519_v52 }
 0x12a   :  { %2541 = vtanh.f32 %v1955_v62  ;;  %v1956_v1 = vadd.f32 %v3144_v17, %v1514_v63  ;;  %1725 = vmatmul.mubr.bf16.gmra.mrb[116].mxu1 %v2520_v57  ;;  %1443 = vmatprep.mubr.bf16.mxu0 %v2521_v58 }
 0x12b   :  { %1732 = vmatprep.mubr.bf16.mxu1 %v2523_v61 }
 0x12c   :  { %v2538_v2 = vpop.eup %2537  ;;  %2543 = vtanh.f32 %v1956_v1  ;;  %v1229_v3 = vpop.f32.mrb[12].mxu0 }
 0x12d   :  { %2081 = vst [vmem:[%s3464_s3 + $0x10] sm:$0xff] %v2538_v2  ;;  %v1518_v4 = vpop.f32.mrb[12].mxu1  ;;  %v1231_v5 = vpop.f32.mrb[13].mxu0 }
 0x12e   :  { %v2540_v7 = vpop.eup %2539  ;;  %v1519_v8 = vadd.f32 %v1518_v4, %v1229_v3  ;;  %v1520_v9 = vpop.f32.mrb[13].mxu1 }
 0x12f   :  { %v1232_v10 = vpop.f32.mrb[14].mxu0  ;;  %2082 = vst [vmem:[%s3464_s3 + $0x18] sm:$0xff] %v2540_v7  ;;  %v1521_v13 = vpop.f32.mrb[14].mxu1 }
 0x130   :  { %v1234_v14 = vpop.f32.mrb[15].mxu0  ;;  %v1957_v16 = vadd.f32 %v3144_v17, %v1519_v8  ;;  %v1522_v18 = vadd.f32 %v1521_v13, %v1232_v10  ;;  %v1523_v19 = vpop.f32.mrb[15].mxu1 }
 0x131   :  { %1444 = vmatmul.mubr.bf16.gmra.mrb[120].mxu0 %v2525_v6 }
 0x132   :  { %2545 = vtanh.f32 %v1957_v16  ;;  %v1958_v20 = vadd.f32 %v3144_v17, %v1522_v18  ;;  %1733 = vmatmul.mubr.bf16.gmra.mrb[120].mxu1 %v2526_v11  ;;  %1451 = vmatprep.mubr.bf16.mxu0 %v2527_v12 }
 0x133   :  { %1740 = vmatprep.mubr.bf16.mxu1 %v2529_v15 }
 0x134   :  { %v2542_v21 = vpop.eup %2541  ;;  %2547 = vtanh.f32 %v1958_v20  ;;  %v1237_v22 = vpop.f32.mrb[16].mxu0 }
 0x135   :  { %2083 = vst [vmem:[%s3464_s3 + $0x20] sm:$0xff] %v2542_v21  ;;  %v1526_v23 = vpop.f32.mrb[16].mxu1  ;;  %v1239_v24 = vpop.f32.mrb[17].mxu0 }
 0x136   :  { %v2544_v26 = vpop.eup %2543  ;;  %v1527_v27 = vadd.f32 %v1526_v23, %v1237_v22  ;;  %v1528_v28 = vpop.f32.mrb[17].mxu1 }
 0x137   :  { %v1240_v29 = vpop.f32.mrb[18].mxu0  ;;  %2084 = vst [vmem:[%s3464_s3 + $0x28] sm:$0xff] %v2544_v26  ;;  %v1529_v31 = vpop.f32.mrb[18].mxu1 }
 0x138   :  { %v1242_v32 = vpop.f32.mrb[19].mxu0  ;;  %v1959_v33 = vadd.f32 %v3144_v17, %v1527_v27  ;;  %v1530_v34 = vadd.f32 %v1529_v31, %v1240_v29  ;;  %v1531_v35 = vpop.f32.mrb[19].mxu1 }
 0x139   :  { %1452 = vmatmul.mubr.bf16.gmra.mrb[124].mxu0 %v2531_v25 }
 0x13a   :  { %2549 = vtanh.f32 %v1959_v33  ;;  %v1960_v36 = vadd.f32 %v3144_v17, %v1530_v34  ;;  %1741 = vmatmul.mubr.bf16.gmra.mrb[124].mxu1 %v2532_v30 }
 0x13c   :  { %v2546_v37 = vpop.eup %2545  ;;  %2551 = vtanh.f32 %v1960_v36  ;;  %v1245_v38 = vpop.f32.mrb[20].mxu0 }
 0x13d   :  { %2085 = vst [vmem:[%s3464_s3 + $0x30] sm:$0xff] %v2546_v37  ;;  %v1534_v39 = vpop.f32.mrb[20].mxu1  ;;  %v1247_v40 = vpop.f32.mrb[21].mxu0 }
 0x13e   :  { %v2548_v41 = vpop.eup %2547  ;;  %v1535_v42 = vadd.f32 %v1534_v39, %v1245_v38  ;;  %v1536_v43 = vpop.f32.mrb[21].mxu1 }
 0x13f   :  { %v1248_v44 = vpop.f32.mrb[22].mxu0  ;;  %2086 = vst [vmem:[%s3464_s3 + $0x38] sm:$0xff] %v2548_v41  ;;  %v1537_v45 = vpop.f32.mrb[22].mxu1 }
 0x140   :  { %v1250_v46 = vpop.f32.mrb[23].mxu0  ;;  %v1961_v47 = vadd.f32 %v3144_v17, %v1535_v42  ;;  %v1538_v48 = vadd.f32 %v1537_v45, %v1248_v44  ;;  %v1539_v49 = vpop.f32.mrb[23].mxu1 }
 0x142   :  { %2553 = vtanh.f32 %v1961_v47  ;;  %v1962_v50 = vadd.f32 %v3144_v17, %v1538_v48 }
 0x144   :  { %v2550_v51 = vpop.eup %2549  ;;  %2555 = vtanh.f32 %v1962_v50  ;;  %v1253_v52 = vpop.f32.mrb[24].mxu0 }
 0x145   :  { %2087 = vst [vmem:[%s3464_s3 + $0x40] sm:$0xff] %v2550_v51  ;;  %v1542_v53 = vpop.f32.mrb[24].mxu1  ;;  %v1255_v54 = vpop.f32.mrb[25].mxu0 }
 0x146   :  { %v2552_v55 = vpop.eup %2551  ;;  %v1543_v56 = vadd.f32 %v1542_v53, %v1253_v52  ;;  %v1544_v57 = vpop.f32.mrb[25].mxu1 }
 0x147   :  { %v1256_v58 = vpop.f32.mrb[26].mxu0  ;;  %2088 = vst [vmem:[%s3464_s3 + $0x48] sm:$0xff] %v2552_v55  ;;  %v1545_v59 = vpop.f32.mrb[26].mxu1 }
 0x148   :  { %v1258_v60 = vpop.f32.mrb[27].mxu0  ;;  %v1963_v61 = vadd.f32 %v3144_v17, %v1543_v56  ;;  %v1546_v62 = vadd.f32 %v1545_v59, %v1256_v58  ;;  %v1547_v63 = vpop.f32.mrb[27].mxu1 }
 0x14a   :  { %2557 = vtanh.f32 %v1963_v61  ;;  %v1964_v0 = vadd.f32 %v3144_v17, %v1546_v62 }
 0x14c   :  { %v2554_v1 = vpop.eup %2553  ;;  %2559 = vtanh.f32 %v1964_v0  ;;  %v1261_v2 = vpop.f32.mrb[28].mxu0 }
 0x14d   :  { %2089 = vst [vmem:[%s3464_s3 + $0x50] sm:$0xff] %v2554_v1  ;;  %v1550_v3 = vpop.f32.mrb[28].mxu1  ;;  %v1263_v4 = vpop.f32.mrb[29].mxu0 }
 0x14e   :  { %v2556_v5 = vpop.eup %2555  ;;  %v1551_v6 = vadd.f32 %v1550_v3, %v1261_v2  ;;  %v1552_v7 = vpop.f32.mrb[29].mxu1 }
 0x14f   :  { %v1264_v8 = vpop.f32.mrb[30].mxu0  ;;  %2090 = vst [vmem:[%s3464_s3 + $0x58] sm:$0xff] %v2556_v5  ;;  %v1553_v9 = vpop.f32.mrb[30].mxu1 }
 0x150   :  { %v1266_v10 = vpop.f32.mrb[31].mxu0  ;;  %v1965_v11 = vadd.f32 %v3144_v17, %v1551_v6  ;;  %v1554_v12 = vadd.f32 %v1553_v9, %v1264_v8  ;;  %v1555_v13 = vpop.f32.mrb[31].mxu1 }
 0x152   :  { %2561 = vtanh.f32 %v1965_v11  ;;  %v1966_v14 = vadd.f32 %v3144_v17, %v1554_v12 }
 0x154   :  { %v2558_v15 = vpop.eup %2557  ;;  %2563 = vtanh.f32 %v1966_v14  ;;  %v1269_v16 = vpop.f32.mrb[32].mxu0 }
 0x155   :  { %2091 = vst [vmem:[%s3464_s3 + $0x60] sm:$0xff] %v2558_v15  ;;  %v1558_v18 = vpop.f32.mrb[32].mxu1  ;;  %v1271_v19 = vpop.f32.mrb[33].mxu0 }
 0x156   :  { %v2560_v20 = vpop.eup %2559  ;;  %v1559_v21 = vadd.f32 %v1558_v18, %v1269_v16  ;;  %v1560_v22 = vpop.f32.mrb[33].mxu1 }
 0x157   :  { %v1272_v23 = vpop.f32.mrb[34].mxu0  ;;  %2092 = vst [vmem:[%s3464_s3 + $0x68] sm:$0xff] %v2560_v20  ;;  %v1561_v24 = vpop.f32.mrb[34].mxu1 }
 0x158   :  { %v1274_v25 = vpop.f32.mrb[35].mxu0  ;;  %v1967_v26 = vadd.f32 %v3144_v17, %v1559_v21  ;;  %v1562_v27 = vadd.f32 %v1561_v24, %v1272_v23  ;;  %v1563_v28 = vpop.f32.mrb[35].mxu1 }
 0x15a   :  { %2565 = vtanh.f32 %v1967_v26  ;;  %v1968_v29 = vadd.f32 %v3144_v17, %v1562_v27 }
 0x15c   :  { %v2562_v30 = vpop.eup %2561  ;;  %2567 = vtanh.f32 %v1968_v29  ;;  %v1277_v31 = vpop.f32.mrb[36].mxu0 }
 0x15d   :  { %2093 = vst [vmem:[%s3464_s3 + $0x70] sm:$0xff] %v2562_v30  ;;  %v1566_v32 = vpop.f32.mrb[36].mxu1  ;;  %v1279_v33 = vpop.f32.mrb[37].mxu0 }
 0x15e   :  { %v2564_v34 = vpop.eup %2563  ;;  %v1567_v35 = vadd.f32 %v1566_v32, %v1277_v31  ;;  %v1568_v36 = vpop.f32.mrb[37].mxu1 }
 0x15f   :  { %v1280_v37 = vpop.f32.mrb[38].mxu0  ;;  %2094 = vst [vmem:[%s3464_s3 + $0x78] sm:$0xff] %v2564_v34  ;;  %v1569_v38 = vpop.f32.mrb[38].mxu1 }
 0x160   :  { %v1282_v39 = vpop.f32.mrb[39].mxu0  ;;  %v1969_v40 = vadd.f32 %v3144_v17, %v1567_v35  ;;  %v1570_v41 = vadd.f32 %v1569_v38, %v1280_v37  ;;  %v1571_v42 = vpop.f32.mrb[39].mxu1 }
 0x162   :  { %2569 = vtanh.f32 %v1969_v40  ;;  %v1970_v43 = vadd.f32 %v3144_v17, %v1570_v41 }
 0x164   :  { %v2566_v44 = vpop.eup %2565  ;;  %2571 = vtanh.f32 %v1970_v43  ;;  %v1285_v45 = vpop.f32.mrb[40].mxu0 }
 0x165   :  { %2095 = vst [vmem:[%s3464_s3 + $0x80] sm:$0xff] %v2566_v44  ;;  %v1574_v46 = vpop.f32.mrb[40].mxu1  ;;  %v1287_v47 = vpop.f32.mrb[41].mxu0 }
 0x166   :  { %v2568_v48 = vpop.eup %2567  ;;  %v1575_v49 = vadd.f32 %v1574_v46, %v1285_v45  ;;  %v1576_v50 = vpop.f32.mrb[41].mxu1 }
 0x167   :  { %v1288_v51 = vpop.f32.mrb[42].mxu0  ;;  %2096 = vst [vmem:[%s3464_s3 + $0x88] sm:$0xff] %v2568_v48  ;;  %v1577_v52 = vpop.f32.mrb[42].mxu1 }
 0x168   :  { %v1290_v53 = vpop.f32.mrb[43].mxu0  ;;  %v1971_v54 = vadd.f32 %v3144_v17, %v1575_v49  ;;  %v1578_v55 = vadd.f32 %v1577_v52, %v1288_v51  ;;  %v1579_v56 = vpop.f32.mrb[43].mxu1 }
 0x16a   :  { %2573 = vtanh.f32 %v1971_v54  ;;  %v1972_v57 = vadd.f32 %v3144_v17, %v1578_v55 }
 0x16c   :  { %v2570_v58 = vpop.eup %2569  ;;  %2575 = vtanh.f32 %v1972_v57  ;;  %v1293_v59 = vpop.f32.mrb[44].mxu0 }
 0x16d   :  { %2097 = vst [vmem:[%s3464_s3 + $0x90] sm:$0xff] %v2570_v58  ;;  %v1582_v60 = vpop.f32.mrb[44].mxu1  ;;  %v1295_v61 = vpop.f32.mrb[45].mxu0 }
 0x16e   :  { %v2572_v62 = vpop.eup %2571  ;;  %v1583_v63 = vadd.f32 %v1582_v60, %v1293_v59  ;;  %v1584_v0 = vpop.f32.mrb[45].mxu1 }
 0x16f   :  { %v1296_v1 = vpop.f32.mrb[46].mxu0  ;;  %2098 = vst [vmem:[%s3464_s3 + $0x98] sm:$0xff] %v2572_v62  ;;  %v1585_v2 = vpop.f32.mrb[46].mxu1 }
 0x170   :  { %v1298_v3 = vpop.f32.mrb[47].mxu0  ;;  %v1973_v4 = vadd.f32 %v3144_v17, %v1583_v63  ;;  %v1586_v5 = vadd.f32 %v1585_v2, %v1296_v1  ;;  %v1587_v6 = vpop.f32.mrb[47].mxu1 }
 0x172   :  { %2577 = vtanh.f32 %v1973_v4  ;;  %v1974_v7 = vadd.f32 %v3144_v17, %v1586_v5 }
 0x174   :  { %v2574_v8 = vpop.eup %2573  ;;  %2579 = vtanh.f32 %v1974_v7  ;;  %v1301_v9 = vpop.f32.mrb[48].mxu0 }
 0x175   :  { %2099 = vst [vmem:[%s3464_s3 + $0xa0] sm:$0xff] %v2574_v8  ;;  %v1590_v10 = vpop.f32.mrb[48].mxu1  ;;  %v1303_v11 = vpop.f32.mrb[49].mxu0 }
 0x176   :  { %v2576_v12 = vpop.eup %2575  ;;  %v1591_v13 = vadd.f32 %v1590_v10, %v1301_v9  ;;  %v1592_v14 = vpop.f32.mrb[49].mxu1 }
 0x177   :  { %v1304_v15 = vpop.f32.mrb[50].mxu0  ;;  %2100 = vst [vmem:[%s3464_s3 + $0xa8] sm:$0xff] %v2576_v12  ;;  %v1593_v16 = vpop.f32.mrb[50].mxu1 }
 0x178   :  { %v1306_v18 = vpop.f32.mrb[51].mxu0  ;;  %v1975_v19 = vadd.f32 %v3144_v17, %v1591_v13  ;;  %v1594_v20 = vadd.f32 %v1593_v16, %v1304_v15  ;;  %v1595_v21 = vpop.f32.mrb[51].mxu1 }
 0x17a   :  { %2581 = vtanh.f32 %v1975_v19  ;;  %v1976_v22 = vadd.f32 %v3144_v17, %v1594_v20 }
 0x17c   :  { %v2578_v23 = vpop.eup %2577  ;;  %2583 = vtanh.f32 %v1976_v22  ;;  %v1309_v24 = vpop.f32.mrb[52].mxu0 }
 0x17d   :  { %2101 = vst [vmem:[%s3464_s3 + $0xb0] sm:$0xff] %v2578_v23  ;;  %v1598_v25 = vpop.f32.mrb[52].mxu1  ;;  %v1311_v26 = vpop.f32.mrb[53].mxu0 }
 0x17e   :  { %v2580_v27 = vpop.eup %2579  ;;  %v1599_v28 = vadd.f32 %v1598_v25, %v1309_v24  ;;  %v1600_v29 = vpop.f32.mrb[53].mxu1 }
 0x17f   :  { %v1312_v30 = vpop.f32.mrb[54].mxu0  ;;  %2102 = vst [vmem:[%s3464_s3 + $0xb8] sm:$0xff] %v2580_v27  ;;  %v1601_v31 = vpop.f32.mrb[54].mxu1 }
 0x180   :  { %v1314_v32 = vpop.f32.mrb[55].mxu0  ;;  %v1977_v33 = vadd.f32 %v3144_v17, %v1599_v28  ;;  %v1602_v34 = vadd.f32 %v1601_v31, %v1312_v30  ;;  %v1603_v35 = vpop.f32.mrb[55].mxu1 }
 0x182   :  { %2585 = vtanh.f32 %v1977_v33  ;;  %v1978_v36 = vadd.f32 %v3144_v17, %v1602_v34 }
 0x184   :  { %v2582_v37 = vpop.eup %2581  ;;  %2587 = vtanh.f32 %v1978_v36  ;;  %v1317_v38 = vpop.f32.mrb[56].mxu0 }
 0x185   :  { %2103 = vst [vmem:[%s3464_s3 + $0xc0] sm:$0xff] %v2582_v37  ;;  %v1606_v39 = vpop.f32.mrb[56].mxu1  ;;  %v1319_v40 = vpop.f32.mrb[57].mxu0 }
 0x186   :  { %v2584_v41 = vpop.eup %2583  ;;  %v1607_v42 = vadd.f32 %v1606_v39, %v1317_v38  ;;  %v1608_v43 = vpop.f32.mrb[57].mxu1 }
 0x187   :  { %v1320_v44 = vpop.f32.mrb[58].mxu0  ;;  %2104 = vst [vmem:[%s3464_s3 + $0xc8] sm:$0xff] %v2584_v41  ;;  %v1609_v45 = vpop.f32.mrb[58].mxu1 }
 0x188   :  { %v1322_v46 = vpop.f32.mrb[59].mxu0  ;;  %v1979_v47 = vadd.f32 %v3144_v17, %v1607_v42  ;;  %v1610_v48 = vadd.f32 %v1609_v45, %v1320_v44  ;;  %v1611_v49 = vpop.f32.mrb[59].mxu1 }
 0x18a   :  { %2589 = vtanh.f32 %v1979_v47  ;;  %v1980_v50 = vadd.f32 %v3144_v17, %v1610_v48 }
 0x18c   :  { %v2586_v51 = vpop.eup %2585  ;;  %2591 = vtanh.f32 %v1980_v50  ;;  %v1325_v52 = vpop.f32.mrb[60].mxu0 }
 0x18d   :  { %2105 = vst [vmem:[%s3464_s3 + $0xd0] sm:$0xff] %v2586_v51  ;;  %v1614_v53 = vpop.f32.mrb[60].mxu1  ;;  %v1327_v54 = vpop.f32.mrb[61].mxu0 }
 0x18e   :  { %v2588_v55 = vpop.eup %2587  ;;  %v1615_v56 = vadd.f32 %v1614_v53, %v1325_v52  ;;  %v1616_v57 = vpop.f32.mrb[61].mxu1 }
 0x18f   :  { %v1328_v58 = vpop.f32.mrb[62].mxu0  ;;  %2106 = vst [vmem:[%s3464_s3 + $0xd8] sm:$0xff] %v2588_v55  ;;  %v1617_v59 = vpop.f32.mrb[62].mxu1 }
 0x190   :  { %v1330_v60 = vpop.f32.mrb[63].mxu0  ;;  %v1981_v61 = vadd.f32 %v3144_v17, %v1615_v56  ;;  %v1618_v62 = vadd.f32 %v1617_v59, %v1328_v58  ;;  %v1619_v63 = vpop.f32.mrb[63].mxu1 }
 0x192   :  { %2593 = vtanh.f32 %v1981_v61  ;;  %v1982_v0 = vadd.f32 %v3144_v17, %v1618_v62 }
 0x194   :  { %v2590_v1 = vpop.eup %2589  ;;  %2595 = vtanh.f32 %v1982_v0  ;;  %v1333_v2 = vpop.f32.mrb[64].mxu0 }
 0x195   :  { %2107 = vst [vmem:[%s3464_s3 + $0xe0] sm:$0xff] %v2590_v1  ;;  %v1622_v3 = vpop.f32.mrb[64].mxu1  ;;  %v1335_v4 = vpop.f32.mrb[65].mxu0 }
 0x196   :  { %v2592_v5 = vpop.eup %2591  ;;  %v1623_v6 = vadd.f32 %v1622_v3, %v1333_v2  ;;  %v1624_v7 = vpop.f32.mrb[65].mxu1 }
 0x197   :  { %v1336_v8 = vpop.f32.mrb[66].mxu0  ;;  %2108 = vst [vmem:[%s3464_s3 + $0xe8] sm:$0xff] %v2592_v5  ;;  %v1625_v9 = vpop.f32.mrb[66].mxu1 }
 0x198   :  { %v1338_v10 = vpop.f32.mrb[67].mxu0  ;;  %v1983_v11 = vadd.f32 %v3144_v17, %v1623_v6  ;;  %v1626_v12 = vadd.f32 %v1625_v9, %v1336_v8  ;;  %v1627_v13 = vpop.f32.mrb[67].mxu1 }
 0x19a   :  { %2597 = vtanh.f32 %v1983_v11  ;;  %v1984_v14 = vadd.f32 %v3144_v17, %v1626_v12 }
 0x19c   :  { %v2594_v15 = vpop.eup %2593  ;;  %2599 = vtanh.f32 %v1984_v14  ;;  %v1341_v16 = vpop.f32.mrb[68].mxu0 }
 0x19d   :  { %2109 = vst [vmem:[%s3464_s3 + $0xf0] sm:$0xff] %v2594_v15  ;;  %v1630_v18 = vpop.f32.mrb[68].mxu1  ;;  %v1343_v19 = vpop.f32.mrb[69].mxu0 }
 0x19e   :  { %v2596_v20 = vpop.eup %2595  ;;  %v1631_v21 = vadd.f32 %v1630_v18, %v1341_v16  ;;  %v1632_v22 = vpop.f32.mrb[69].mxu1 }
 0x19f   :  { %v1344_v23 = vpop.f32.mrb[70].mxu0  ;;  %2110 = vst [vmem:[%s3464_s3 + $0xf8] sm:$0xff] %v2596_v20  ;;  %v1633_v24 = vpop.f32.mrb[70].mxu1 }
 0x1a0   :  { %v1346_v25 = vpop.f32.mrb[71].mxu0  ;;  %v1985_v26 = vadd.f32 %v3144_v17, %v1631_v21  ;;  %v1634_v27 = vadd.f32 %v1633_v24, %v1344_v23  ;;  %v1635_v28 = vpop.f32.mrb[71].mxu1 }
 0x1a2   :  { %2601 = vtanh.f32 %v1985_v26  ;;  %v1986_v29 = vadd.f32 %v3144_v17, %v1634_v27 }
 0x1a4   :  { %v2598_v30 = vpop.eup %2597  ;;  %2603 = vtanh.f32 %v1986_v29  ;;  %v1349_v31 = vpop.f32.mrb[72].mxu0 }
 0x1a5   :  { %2111 = vst [vmem:[%s3464_s3 + $0x100] sm:$0xff] %v2598_v30  ;;  %v1638_v32 = vpop.f32.mrb[72].mxu1  ;;  %v1351_v33 = vpop.f32.mrb[73].mxu0 }
 0x1a6   :  { %v2600_v34 = vpop.eup %2599  ;;  %v1639_v35 = vadd.f32 %v1638_v32, %v1349_v31  ;;  %v1640_v36 = vpop.f32.mrb[73].mxu1 }
 0x1a7   :  { %v1352_v37 = vpop.f32.mrb[74].mxu0  ;;  %2112 = vst [vmem:[%s3464_s3 + $0x108] sm:$0xff] %v2600_v34  ;;  %v1641_v38 = vpop.f32.mrb[74].mxu1 }
 0x1a8   :  { %v1354_v39 = vpop.f32.mrb[75].mxu0  ;;  %v1987_v40 = vadd.f32 %v3144_v17, %v1639_v35  ;;  %v1642_v41 = vadd.f32 %v1641_v38, %v1352_v37  ;;  %v1643_v42 = vpop.f32.mrb[75].mxu1 }
 0x1aa   :  { %2605 = vtanh.f32 %v1987_v40  ;;  %v1988_v43 = vadd.f32 %v3144_v17, %v1642_v41 }
 0x1ac   :  { %v2602_v44 = vpop.eup %2601  ;;  %2607 = vtanh.f32 %v1988_v43  ;;  %v1357_v45 = vpop.f32.mrb[76].mxu0 }
 0x1ad   :  { %2113 = vst [vmem:[%s3464_s3 + $0x110] sm:$0xff] %v2602_v44  ;;  %v1646_v46 = vpop.f32.mrb[76].mxu1  ;;  %v1359_v47 = vpop.f32.mrb[77].mxu0 }
 0x1ae   :  { %v2604_v48 = vpop.eup %2603  ;;  %v1647_v49 = vadd.f32 %v1646_v46, %v1357_v45  ;;  %v1648_v50 = vpop.f32.mrb[77].mxu1 }
 0x1af   :  { %v1360_v51 = vpop.f32.mrb[78].mxu0  ;;  %2114 = vst [vmem:[%s3464_s3 + $0x118] sm:$0xff] %v2604_v48  ;;  %v1649_v52 = vpop.f32.mrb[78].mxu1 }
 0x1b0   :  { %v1362_v53 = vpop.f32.mrb[79].mxu0  ;;  %v1989_v54 = vadd.f32 %v3144_v17, %v1647_v49  ;;  %v1650_v55 = vadd.f32 %v1649_v52, %v1360_v51  ;;  %v1651_v56 = vpop.f32.mrb[79].mxu1 }
 0x1b2   :  { %2609 = vtanh.f32 %v1989_v54  ;;  %v1990_v57 = vadd.f32 %v3144_v17, %v1650_v55 }
 0x1b4   :  { %v2606_v58 = vpop.eup %2605  ;;  %2611 = vtanh.f32 %v1990_v57  ;;  %v1365_v59 = vpop.f32.mrb[80].mxu0 }
 0x1b5   :  { %2115 = vst [vmem:[%s3464_s3 + $0x120] sm:$0xff] %v2606_v58  ;;  %v1654_v60 = vpop.f32.mrb[80].mxu1  ;;  %v1367_v61 = vpop.f32.mrb[81].mxu0 }
 0x1b6   :  { %v2608_v62 = vpop.eup %2607  ;;  %v1655_v63 = vadd.f32 %v1654_v60, %v1365_v59  ;;  %v1656_v0 = vpop.f32.mrb[81].mxu1 }
 0x1b7   :  { %v1368_v1 = vpop.f32.mrb[82].mxu0  ;;  %2116 = vst [vmem:[%s3464_s3 + $0x128] sm:$0xff] %v2608_v62  ;;  %v1657_v2 = vpop.f32.mrb[82].mxu1 }
 0x1b8   :  { %v1370_v3 = vpop.f32.mrb[83].mxu0  ;;  %v1991_v4 = vadd.f32 %v3144_v17, %v1655_v63  ;;  %v1658_v5 = vadd.f32 %v1657_v2, %v1368_v1  ;;  %v1659_v6 = vpop.f32.mrb[83].mxu1 }
 0x1ba   :  { %2613 = vtanh.f32 %v1991_v4  ;;  %v1992_v7 = vadd.f32 %v3144_v17, %v1658_v5 }
 0x1bc   :  { %v2610_v8 = vpop.eup %2609  ;;  %2615 = vtanh.f32 %v1992_v7  ;;  %v1373_v9 = vpop.f32.mrb[84].mxu0 }
 0x1bd   :  { %2117 = vst [vmem:[%s3464_s3 + $0x130] sm:$0xff] %v2610_v8  ;;  %v1662_v10 = vpop.f32.mrb[84].mxu1  ;;  %v1375_v11 = vpop.f32.mrb[85].mxu0 }
 0x1be   :  { %v2612_v12 = vpop.eup %2611  ;;  %v1663_v13 = vadd.f32 %v1662_v10, %v1373_v9  ;;  %v1664_v14 = vpop.f32.mrb[85].mxu1 }
 0x1bf   :  { %v1376_v15 = vpop.f32.mrb[86].mxu0  ;;  %2118 = vst [vmem:[%s3464_s3 + $0x138] sm:$0xff] %v2612_v12  ;;  %v1665_v16 = vpop.f32.mrb[86].mxu1 }
 0x1c0   :  { %v1378_v18 = vpop.f32.mrb[87].mxu0  ;;  %v1993_v19 = vadd.f32 %v3144_v17, %v1663_v13  ;;  %v1666_v20 = vadd.f32 %v1665_v16, %v1376_v15  ;;  %v1667_v21 = vpop.f32.mrb[87].mxu1 }
 0x1c2   :  { %2617 = vtanh.f32 %v1993_v19  ;;  %v1994_v22 = vadd.f32 %v3144_v17, %v1666_v20 }
 0x1c4   :  { %v2614_v23 = vpop.eup %2613  ;;  %2619 = vtanh.f32 %v1994_v22  ;;  %v1381_v24 = vpop.f32.mrb[88].mxu0 }
 0x1c5   :  { %2119 = vst [vmem:[%s3464_s3 + $0x140] sm:$0xff] %v2614_v23  ;;  %v1670_v25 = vpop.f32.mrb[88].mxu1  ;;  %v1383_v26 = vpop.f32.mrb[89].mxu0 }
 0x1c6   :  { %v2616_v27 = vpop.eup %2615  ;;  %v1671_v28 = vadd.f32 %v1670_v25, %v1381_v24  ;;  %v1672_v29 = vpop.f32.mrb[89].mxu1 }
 0x1c7   :  { %v1384_v30 = vpop.f32.mrb[90].mxu0  ;;  %2120 = vst [vmem:[%s3464_s3 + $0x148] sm:$0xff] %v2616_v27  ;;  %v1673_v31 = vpop.f32.mrb[90].mxu1  ;;  %v3406_v29 = vld [vmem:[%s3463_s2] ss:$0 sm:$0xff] }
 0x1c8   :  { %v1386_v32 = vpop.f32.mrb[91].mxu0  ;;  %v1995_v33 = vadd.f32 %v3144_v17, %v1671_v28  ;;  %v1674_v34 = vadd.f32 %v1673_v31, %v1384_v30  ;;  %v1675_v35 = vpop.f32.mrb[91].mxu1 }
 0x1ca   :  { %2621 = vtanh.f32 %v1995_v33  ;;  %v1996_v36 = vadd.f32 %v3144_v17, %v1674_v34 }
 0x1cc   :  { %v2618_v37 = vpop.eup %2617  ;;  %2623 = vtanh.f32 %v1996_v36  ;;  %v1389_v38 = vpop.f32.mrb[92].mxu0 }
 0x1cd   :  { %2121 = vst [vmem:[%s3464_s3 + $0x150] sm:$0xff] %v2618_v37  ;;  %v1678_v39 = vpop.f32.mrb[92].mxu1  ;;  %v1391_v40 = vpop.f32.mrb[93].mxu0 }
 0x1ce   :  { %v2620_v41 = vpop.eup %2619  ;;  %v1679_v42 = vadd.f32 %v1678_v39, %v1389_v38  ;;  %v1680_v43 = vpop.f32.mrb[93].mxu1 }
 0x1cf   :  { %v1392_v44 = vpop.f32.mrb[94].mxu0  ;;  %2122 = vst [vmem:[%s3464_s3 + $0x158] sm:$0xff] %v2620_v41  ;;  %v1681_v45 = vpop.f32.mrb[94].mxu1 }
 0x1d0   :  { %v1394_v46 = vpop.f32.mrb[95].mxu0  ;;  %v1997_v47 = vadd.f32 %v3144_v17, %v1679_v42  ;;  %v1682_v48 = vadd.f32 %v1681_v45, %v1392_v44  ;;  %v1683_v49 = vpop.f32.mrb[95].mxu1 }
 0x1d2   :  { %2625 = vtanh.f32 %v1997_v47  ;;  %v1998_v50 = vadd.f32 %v3144_v17, %v1682_v48 }
 0x1d4   :  { %v2622_v51 = vpop.eup %2621  ;;  %2627 = vtanh.f32 %v1998_v50  ;;  %v1397_v52 = vpop.f32.mrb[96].mxu0 }
 0x1d5   :  { %2123 = vst [vmem:[%s3464_s3 + $0x160] sm:$0xff] %v2622_v51  ;;  %v1686_v53 = vpop.f32.mrb[96].mxu1  ;;  %v1399_v54 = vpop.f32.mrb[97].mxu0 }
 0x1d6   :  { %v2624_v55 = vpop.eup %2623  ;;  %v1687_v56 = vadd.f32 %v1686_v53, %v1397_v52  ;;  %v1688_v57 = vpop.f32.mrb[97].mxu1 }
 0x1d7   :  { %v1400_v58 = vpop.f32.mrb[98].mxu0  ;;  %2124 = vst [vmem:[%s3464_s3 + $0x168] sm:$0xff] %v2624_v55  ;;  %v1689_v59 = vpop.f32.mrb[98].mxu1 }
 0x1d8   :  { %v1402_v60 = vpop.f32.mrb[99].mxu0  ;;  %v1999_v61 = vadd.f32 %v3144_v17, %v1687_v56  ;;  %v1690_v62 = vadd.f32 %v1689_v59, %v1400_v58  ;;  %v1691_v63 = vpop.f32.mrb[99].mxu1 }
 0x1da   :  { %2629 = vtanh.f32 %v1999_v61  ;;  %v2000_v0 = vadd.f32 %v3144_v17, %v1690_v62 }
 0x1dc   :  { %v2626_v1 = vpop.eup %2625  ;;  %2631 = vtanh.f32 %v2000_v0  ;;  %v1405_v2 = vpop.f32.mrb[100].mxu0 }
 0x1dd   :  { %2125 = vst [vmem:[%s3464_s3 + $0x170] sm:$0xff] %v2626_v1  ;;  %v1694_v3 = vpop.f32.mrb[100].mxu1  ;;  %v1407_v4 = vpop.f32.mrb[101].mxu0 }
 0x1de   :  { %v2628_v5 = vpop.eup %2627  ;;  %v1695_v6 = vadd.f32 %v1694_v3, %v1405_v2  ;;  %v1696_v7 = vpop.f32.mrb[101].mxu1 }
 0x1df   :  { %v1408_v8 = vpop.f32.mrb[102].mxu0  ;;  %2126 = vst [vmem:[%s3464_s3 + $0x178] sm:$0xff] %v2628_v5  ;;  %v1697_v9 = vpop.f32.mrb[102].mxu1 }
 0x1e0   :  { %v1410_v10 = vpop.f32.mrb[103].mxu0  ;;  %v2001_v11 = vadd.f32 %v3144_v17, %v1695_v6  ;;  %v1698_v12 = vadd.f32 %v1697_v9, %v1408_v8  ;;  %v1699_v13 = vpop.f32.mrb[103].mxu1 }
 0x1e2   :  { %2633 = vtanh.f32 %v2001_v11  ;;  %v2002_v14 = vadd.f32 %v3144_v17, %v1698_v12 }
 0x1e4   :  { %v2630_v15 = vpop.eup %2629  ;;  %2635 = vtanh.f32 %v2002_v14  ;;  %v1413_v16 = vpop.f32.mrb[104].mxu0 }
 0x1e5   :  { %2127 = vst [vmem:[%s3464_s3 + $0x180] sm:$0xff] %v2630_v15  ;;  %v1702_v18 = vpop.f32.mrb[104].mxu1  ;;  %v1415_v19 = vpop.f32.mrb[105].mxu0 }
 0x1e6   :  { %v2632_v20 = vpop.eup %2631  ;;  %v1703_v21 = vadd.f32 %v1702_v18, %v1413_v16  ;;  %v1704_v22 = vpop.f32.mrb[105].mxu1 }
 0x1e7   :  { %v1416_v23 = vpop.f32.mrb[106].mxu0  ;;  %2128 = vst [vmem:[%s3464_s3 + $0x188] sm:$0xff] %v2632_v20  ;;  %v1705_v24 = vpop.f32.mrb[106].mxu1 }
 0x1e8   :  { %v1418_v25 = vpop.f32.mrb[107].mxu0  ;;  %v2003_v26 = vadd.f32 %v3144_v17, %v1703_v21  ;;  %v1706_v27 = vadd.f32 %v1705_v24, %v1416_v23  ;;  %v1707_v28 = vpop.f32.mrb[107].mxu1 }
 0x1ea   :  { %2637 = vtanh.f32 %v2003_v26  ;;  %v2004_v30 = vadd.f32 %v3406_v29, %v1706_v27 }
 0x1ec   :  { %v2634_v31 = vpop.eup %2633  ;;  %2639 = vtanh.f32 %v2004_v30  ;;  %v1421_v32 = vpop.f32.mrb[108].mxu0 }
 0x1ed   :  { %2129 = vst [vmem:[%s3464_s3 + $0x190] sm:$0xff] %v2634_v31  ;;  %v1710_v33 = vpop.f32.mrb[108].mxu1  ;;  %v1423_v34 = vpop.f32.mrb[109].mxu0 }
 0x1ee   :  { %v2636_v17 = vpop.eup %2635  ;;  %v1711_v35 = vadd.f32 %v1710_v33, %v1421_v32  ;;  %v1712_v36 = vpop.f32.mrb[109].mxu1 }
 0x1ef   :  { %v1424_v37 = vpop.f32.mrb[110].mxu0  ;;  %2130 = vst [vmem:[%s3464_s3 + $0x198] sm:$0xff] %v2636_v17  ;;  %v1713_v38 = vpop.f32.mrb[110].mxu1 }
 0x1f0   :  { %v1426_v39 = vpop.f32.mrb[111].mxu0  ;;  %v2005_v40 = vadd.f32 %v3406_v29, %v1711_v35  ;;  %v1714_v41 = vadd.f32 %v1713_v38, %v1424_v37  ;;  %v1715_v42 = vpop.f32.mrb[111].mxu1 }
 0x1f2   :  { %2641 = vtanh.f32 %v2005_v40  ;;  %v2006_v43 = vadd.f32 %v3406_v29, %v1714_v41 }
 0x1f4   :  { %v2638_v44 = vpop.eup %2637  ;;  %2643 = vtanh.f32 %v2006_v43  ;;  %v1429_v45 = vpop.f32.mrb[112].mxu0 }
 0x1f5   :  { %2131 = vst [vmem:[%s3464_s3 + $0x1a0] sm:$0xff] %v2638_v44  ;;  %v1718_v46 = vpop.f32.mrb[112].mxu1  ;;  %v1431_v47 = vpop.f32.mrb[113].mxu0 }
 0x1f6   :  { %v2640_v48 = vpop.eup %2639  ;;  %v1719_v49 = vadd.f32 %v1718_v46, %v1429_v45  ;;  %v1720_v50 = vpop.f32.mrb[113].mxu1 }
 0x1f7   :  { %v1432_v51 = vpop.f32.mrb[114].mxu0  ;;  %2132 = vst [vmem:[%s3464_s3 + $0x1a8] sm:$0xff] %v2640_v48  ;;  %v1721_v52 = vpop.f32.mrb[114].mxu1 }
 0x1f8   :  { %v1434_v53 = vpop.f32.mrb[115].mxu0  ;;  %v2007_v54 = vadd.f32 %v3406_v29, %v1719_v49  ;;  %v1722_v55 = vadd.f32 %v1721_v52, %v1432_v51  ;;  %v1723_v56 = vpop.f32.mrb[115].mxu1 }
 0x1fa   :  { %2645 = vtanh.f32 %v2007_v54  ;;  %v2008_v57 = vadd.f32 %v3406_v29, %v1722_v55 }
 0x1fc   :  { %v2642_v58 = vpop.eup %2641  ;;  %2647 = vtanh.f32 %v2008_v57  ;;  %v1437_v59 = vpop.f32.mrb[116].mxu0 }
 0x1fd   :  { %2133 = vst [vmem:[%s3464_s3 + $0x1b0] sm:$0xff] %v2642_v58  ;;  %v1726_v60 = vpop.f32.mrb[116].mxu1  ;;  %v1439_v61 = vpop.f32.mrb[117].mxu0 }
 0x1fe   :  { %v2644_v62 = vpop.eup %2643  ;;  %v1727_v63 = vadd.f32 %v1726_v60, %v1437_v59  ;;  %v1728_v0 = vpop.f32.mrb[117].mxu1 }
 0x1ff   :  { %v1440_v1 = vpop.f32.mrb[118].mxu0  ;;  %2134 = vst [vmem:[%s3464_s3 + $0x1b8] sm:$0xff] %v2644_v62  ;;  %v1729_v2 = vpop.f32.mrb[118].mxu1 }
 0x200   :  { %v1442_v3 = vpop.f32.mrb[119].mxu0  ;;  %v2009_v4 = vadd.f32 %v3406_v29, %v1727_v63  ;;  %v1730_v5 = vadd.f32 %v1729_v2, %v1440_v1  ;;  %v1731_v6 = vpop.f32.mrb[119].mxu1 }
 0x202   :  { %2649 = vtanh.f32 %v2009_v4  ;;  %v2010_v7 = vadd.f32 %v3406_v29, %v1730_v5 }
 0x204   :  { %v2646_v8 = vpop.eup %2645  ;;  %2651 = vtanh.f32 %v2010_v7  ;;  %v1445_v9 = vpop.f32.mrb[120].mxu0 }
 0x205   :  { %2135 = vst [vmem:[%s3464_s3 + $0x1c0] sm:$0xff] %v2646_v8  ;;  %v1734_v10 = vpop.f32.mrb[120].mxu1  ;;  %v1447_v11 = vpop.f32.mrb[121].mxu0 }
 0x206   :  { %v2648_v12 = vpop.eup %2647  ;;  %v1735_v13 = vadd.f32 %v1734_v10, %v1445_v9  ;;  %v1736_v14 = vpop.f32.mrb[121].mxu1 }
 0x207   :  { %v1448_v15 = vpop.f32.mrb[122].mxu0  ;;  %2136 = vst [vmem:[%s3464_s3 + $0x1c8] sm:$0xff] %v2648_v12  ;;  %v1737_v16 = vpop.f32.mrb[122].mxu1 }
 0x208   :  { %v1450_v18 = vpop.f32.mrb[123].mxu0  ;;  %v2011_v19 = vadd.f32 %v3406_v29, %v1735_v13  ;;  %v1738_v20 = vadd.f32 %v1737_v16, %v1448_v15  ;;  %v1739_v21 = vpop.f32.mrb[123].mxu1 }
 0x20a   :  { %2653 = vtanh.f32 %v2011_v19  ;;  %v2012_v22 = vadd.f32 %v3406_v29, %v1738_v20 }
 0x20c   :  { %v2650_v23 = vpop.eup %2649  ;;  %2655 = vtanh.f32 %v2012_v22  ;;  %v1453_v24 = vpop.f32.mrb[124].mxu0 }
 0x20d   :  { %2137 = vst [vmem:[%s3464_s3 + $0x1d0] sm:$0xff] %v2650_v23  ;;  %v1742_v25 = vpop.f32.mrb[124].mxu1  ;;  %v1455_v26 = vpop.f32.mrb[125].mxu0 }
 0x20e   :  { %v2652_v27 = vpop.eup %2651  ;;  %v1743_v28 = vadd.f32 %v1742_v25, %v1453_v24  ;;  %v1744_v30 = vpop.f32.mrb[125].mxu1 }
 0x20f   :  { %v1456_v31 = vpop.f32.mrb[126].mxu0  ;;  %2138 = vst [vmem:[%s3464_s3 + $0x1d8] sm:$0xff] %v2652_v27  ;;  %v1745_v32 = vpop.f32.mrb[126].mxu1 }
 0x210   :  { %v1458_v33 = vpop.f32.mrb[127].mxu0  ;;  %v2013_v34 = vadd.f32 %v3406_v29, %v1743_v28  ;;  %v1746_v17 = vadd.f32 %v1745_v32, %v1456_v31  ;;  %v1747_v35 = vpop.f32.mrb[127].mxu1 }
 0x212   :  { %2657 = vtanh.f32 %v2013_v34  ;;  %v2014_v36 = vadd.f32 %v3406_v29, %v1746_v17 }
 0x214   :  { %v2654_v37 = vpop.eup %2653  ;;  %2659 = vtanh.f32 %v2014_v36 }
 0x215   :  { %2139 = vst [vmem:[%s3464_s3 + $0x1e0] sm:$0xff] %v2654_v37 }
 0x216   :  { %v2656_v38 = vpop.eup %2655 }
 0x217   :  { %2140 = vst [vmem:[%s3464_s3 + $0x1e8] sm:$0xff] %v2656_v38 }
 0x21c   :  { %v2658_v39 = vpop.eup %2657 }
 0x21d   :  { %2141 = vst [vmem:[%s3464_s3 + $0x1f0] sm:$0xff] %v2658_v39 }
 0x21e   :  { %v2660_v40 = vpop.eup %2659 }
 0x21f   :  { %2142 = vst [vmem:[%s3464_s3 + $0x1f8] sm:$0xff] %v2660_v40 }

</bundles_post_ra>
